<compile_context>
chip_gen: v7x
topology: tpu7x:2x2x1
jax: 0.10.0
libtpu: 0.0.40
codegen_flags: <defaults>
</compile_context>

<pallas_src>
import functools
import numpy as np

import jax
import jax.numpy as jnp
from jax.experimental import pallas as pl
from jax.experimental.pallas import tpu as pltpu

BN_EPS = 1e-5
BN_SCALE = float(1.0 / np.sqrt(1.0 + BN_EPS))  # eval BN: gamma=1, beta=0, mean=0, var=1


def _round_up(v, m):
    return (v + m - 1) // m * m


# ------------------------------- fused kernel --------------------------------

def _ir_block_kernel(*refs, row_bases, col_bases, h_out, w_out, has_expand,
                     add_residual):
    """One batch image of the fused InvertedResidual block.

    refs = (x_ref, [we_ref], wd_ref, wp_ref, o_ref, h_ref)
      x_ref : (1, R, Wq, Cin)        bf16  padded (phase-split for stride 2) image
      we_ref: (Cin, hidden)          bf16  expand 1x1 weights, BN folded (optional)
      wd_ref: (9, hidden)            bf16  depthwise taps (ky*3+kx major), BN folded
      wp_ref: (hidden, Cout)         bf16  project 1x1 weights, BN folded
      o_ref : (1, h_out, w_out, Cout) bf16
      h_ref : (R, Wq, hidden)        bf16  VMEM scratch -- hidden never leaves VMEM
    """
    if has_expand:
        x_ref, we_ref, wd_ref, wp_ref, o_ref, h_ref = refs
    else:
        x_ref, wd_ref, wp_ref, o_ref, h_ref = refs

    rows, wq, c_in = x_ref.shape[1], x_ref.shape[2], x_ref.shape[3]
    hidden = h_ref.shape[-1]

    x = x_ref[0]                                            # (R, Wq, Cin) bf16

    # ---- expand 1x1 conv + folded BN + ReLU6 (zero-pad rows stay zero) -----
    if has_expand:
        h = jnp.dot(x.reshape(rows * wq, c_in), we_ref[...],
                    preferred_element_type=jnp.float32)
        h = jnp.clip(h, 0.0, 6.0)
        h_ref[...] = h.reshape(rows, wq, hidden).astype(h_ref.dtype)
    else:
        h_ref[...] = x

    # ---- depthwise 3x3 + folded BN + ReLU6, valid column window only -------
    wd = wd_ref[...]                                        # (9, hidden) bf16, hoisted
    acc = None
    for ky in range(3):
        rb = row_bases[ky]
        for kx in range(3):
            cb = col_bases[kx]
            tap = h_ref[rb:rb + h_out, cb:cb + w_out, :]    # (h_out, w_out, hidden)
            prod = tap * wd[ky * 3 + kx]                    # bf16 products (VPU)
            acc = prod.astype(jnp.float32) if acc is None else acc + prod
    y = jnp.clip(acc, 0.0, 6.0).astype(jnp.bfloat16)        # folded BN + ReLU6

    # ---- project 1x1 conv + folded BN (linear), f32 accumulation on MXU ----
    out = jnp.dot(y.reshape(h_out * w_out, hidden), wp_ref[...],
                  preferred_element_type=jnp.float32)
    out = out.reshape(h_out, w_out, -1)
    if add_residual:
        # residual = centre tap of the (already loaded) padded input
        out = out + x[1:1 + h_out, 1:1 + w_out, :].astype(jnp.float32)
    o_ref[0] = out.astype(o_ref.dtype)


# ------------------------------- host wrapper --------------------------------

def _prep_input(x_nhwc, stride, w_out_a):
    """Zero-pad (and, for stride 2, phase-split) the NHWC input; one HBM pass."""
    _, h, w, _ = x_nhwc.shape
    h_out, w_out = h // stride, w // stride
    xp = jnp.pad(x_nhwc, ((0, 0), (1, 1), (1, 1), (0, 0)))  # 3x3 conv, padding=1
    if stride == 2:
        # even/odd phase split: strided 3x3 taps become contiguous slices in-kernel
        xp = jnp.concatenate([xp[:, 0::2], xp[:, 1::2]], axis=1)
        xp = jnp.concatenate([xp[:, :, 0::2], xp[:, :, 1::2]], axis=2)
        row_bases = (0, h_out + 1, 1)
        col_bases = (0, w_out + 1, 1)
    else:
        row_bases = (0, 1, 2)
        col_bases = (0, 1, 2)
    w_data = xp.shape[2]
    wq = _round_up(max(w_data, max(col_bases) + w_out_a), 8)
    xp = jnp.pad(xp, ((0, 0), (0, 0), (0, wq - w_data), (0, 0)))
    return xp, row_bases, col_bases


def inverted_residual(x_nchw, params, *, stride):
    """Forward pass of InvertedResidual (eval-mode BN folded into the weights)."""
    we, wd, wp = params["expand_w"], params["dw_w"], params["project_w"]
    hidden = wd.shape[-1]
    c_out = wp.shape[-1]

    x = jnp.transpose(x_nchw, (0, 2, 3, 1)).astype(jnp.bfloat16)  # NCHW -> NHWC bf16
    n, h, w, c_in = x.shape
    if stride == 2:
        assert h % 2 == 0 and w % 2 == 0
    h_out, w_out = h // stride, w // stride
    w_out_a = _round_up(w_out, 8)                 # 8-aligned output-column window
    use_shortcut = stride == 1 and c_in == c_out
    has_expand = we is not None

    xp, row_bases, col_bases = _prep_input(x, stride, w_out_a)
    rows, wq = xp.shape[1], xp.shape[2]

    in_specs = [pl.BlockSpec((1, rows, wq, c_in), lambda i: (i, 0, 0, 0))]
    args = [xp]
    if has_expand:
        in_specs.append(pl.BlockSpec((c_in, hidden), lambda i: (0, 0)))
        args.append(we)
    in_specs += [pl.BlockSpec((9, hidden), lambda i: (0, 0)),
                 pl.BlockSpec((hidden, c_out), lambda i: (0, 0))]
    args += [wd, wp]

    kernel = functools.partial(
        _ir_block_kernel, row_bases=row_bases, col_bases=col_bases,
        h_out=h_out, w_out=w_out_a, has_expand=has_expand,
        add_residual=use_shortcut)

    flops = 2 * n * h_out * w_out_a * hidden * (9 + c_out)
    if has_expand:
        flops += 2 * n * rows * wq * c_in * hidden
    bytes_accessed = 2 * (xp.size + n * h_out * w_out_a * c_out
                          + (we.size if has_expand else 0) + wd.size + wp.size)

    out = pl.pallas_call(
        kernel,
        out_shape=jax.ShapeDtypeStruct((n, h_out, w_out_a, c_out), jnp.bfloat16),
        grid=(n,),
        in_specs=in_specs,
        out_specs=pl.BlockSpec((1, h_out, w_out_a, c_out), lambda i: (i, 0, 0, 0)),
        scratch_shapes=[pltpu.VMEM((rows, wq, hidden), jnp.bfloat16)],
        compiler_params=pltpu.CompilerParams(dimension_semantics=("parallel",)),
        cost_estimate=pl.CostEstimate(flops=int(flops), transcendentals=0,
                                      bytes_accessed=int(bytes_accessed)),
    )(*args)

    out = out[:, :, :w_out, :]                    # drop 8-alignment pad columns
    return jnp.transpose(out, (0, 3, 1, 2))       # NHWC -> NCHW (bf16)


# --------------------------- params + pure-JAX ref ---------------------------

def init_inverted_residual_params(key, in_ch, out_ch, expand_ratio):
    hidden = in_ch * expand_ratio
    k_e, k_d, k_p = jax.random.split(key, 3)

    def kaiming(k, shape, fan_out):
        return jax.random.normal(k, shape, jnp.float32) * np.sqrt(2.0 / fan_out)

    params = {"expand_w": None}
    if expand_ratio != 1:
        # torch Conv2d(in, hidden, 1).weight[:, :, 0, 0].T with eval-BN folded
        params["expand_w"] = (kaiming(k_e, (in_ch, hidden), hidden)
                              * BN_SCALE).astype(jnp.bfloat16)
    # tap-major depthwise weights: dw_w[ky*3+kx, c] = w[c, 0, ky, kx], BN folded
    params["dw_w"] = (kaiming(k_d, (9, hidden), 9.0) * BN_SCALE).astype(jnp.bfloat16)
    # torch Conv2d(hidden, out, 1).weight[:, :, 0, 0].T with eval-BN folded
    params["project_w"] = (kaiming(k_p, (hidden, out_ch), out_ch)
                           * BN_SCALE).astype(jnp.bfloat16)
    return params


def inverted_residual_ref(x_nchw, params, *, stride):
    """Pure-JAX reference using the same folded weights / matching precisions."""
    x = jnp.transpose(x_nchw, (0, 2, 3, 1)).astype(jnp.bfloat16)
    we, wd, wp = params["expand_w"], params["dw_w"], params["project_w"]
    hidden = wd.shape[-1]
    c_out = wp.shape[-1]
    if we is not None:
        h = jnp.dot(x, we, preferred_element_type=jnp.float32)
        h = jnp.clip(h, 0.0, 6.0).astype(jnp.bfloat16)  # kernel stores hidden in bf16
    else:
        h = x
    filt = wd.astype(jnp.float32).reshape(3, 3, 1, hidden)
    y = jax.lax.conv_general_dilated(
        h.astype(jnp.float32), filt, window_strides=(stride, stride),
        padding=((1, 1), (1, 1)), dimension_numbers=("NHWC", "HWIO", "NHWC"),
        feature_group_count=hidden)
    y = jnp.clip(y, 0.0, 6.0).astype(jnp.bfloat16)
    out = jnp.dot(y, wp, preferred_element_type=jnp.float32)
    if stride == 1 and x.shape[-1] == c_out:
        out = out + x.astype(jnp.float32)
    return jnp.transpose(out, (0, 3, 1, 2))             # f32 NCHW


# ----------------------------------- main ------------------------------------

if __name__ == "__main__":
    root = jax.random.PRNGKey(0)
    k_x, k_a, k_b, k_c = jax.random.split(root, 4)

    N, C_IN, H, W = 2, 32, 16, 16
    x = jax.random.normal(k_x, (N, C_IN, H, W), jnp.float32)

    configs = [
        dict(out_ch=32, stride=1, expand_ratio=6, key=k_a),  # expand + shortcut
        dict(out_ch=64, stride=2, expand_ratio=6, key=k_b),  # expand, strided
        dict(out_ch=16, stride=1, expand_ratio=1, key=k_c),  # no expand conv
    ]
    for cfg in configs:
        params = init_inverted_residual_params(
            cfg["key"], C_IN, cfg["out_ch"], cfg["expand_ratio"])
        fwd = jax.jit(functools.partial(inverted_residual, stride=cfg["stride"]))
        out = fwd(x, params)
        jax.block_until_ready(out)

        ho, wo = H // cfg["stride"], W // cfg["stride"]
        assert out.shape == (N, cfg["out_ch"], ho, wo), out.shape
        out32 = out.astype(jnp.float32)
        assert bool(jnp.all(jnp.isfinite(out32)))

        ref = inverted_residual_ref(x, params, stride=cfg["stride"])
        diff = jnp.abs(out32 - ref)
        tol = 5e-2 + 3e-2 * jnp.abs(ref)
        assert bool(jnp.all(diff <= tol)), (
            f"kernel/reference mismatch: max abs err = {float(jnp.max(diff))}")

    print("KERNEL_OK")
</pallas_src>

<mosaic_0001>
module attributes {stable_mosaic.version = 11 : i64} {
  func.func @_ir_block_kernel(%arg0: i32, %arg1: memref<1x18x24x32xbf16, #tpu.memory_space<vmem>>, %arg2: memref<32x192xbf16, #tpu.memory_space<vmem>>, %arg3: memref<9x192xbf16, #tpu.memory_space<vmem>>, %arg4: memref<192x32xbf16, #tpu.memory_space<vmem>>, %arg5: memref<1x16x16x32xbf16, #tpu.memory_space<vmem>>, %arg6: memref<18x24x192xbf16, #tpu.memory_space<vmem>>) attributes {dimension_semantics = [#tpu.dimension_semantics<parallel>], iteration_bounds = array<i64: 2>, scalar_prefetch = 0 : i64, scratch_operands = 1 : i64, tpu.core_type = #tpu.core_type<tc>, window_params = [{transform_indices = @transform_0, window_bounds = array<i64: 1, 18, 24, 32>}, {pipeline_mode = #tpu.pipeline_mode<synchronous>, transform_indices = @transform_1, window_bounds = array<i64: 32, 192>}, {pipeline_mode = #tpu.pipeline_mode<synchronous>, transform_indices = @transform_2, window_bounds = array<i64: 9, 192>}, {pipeline_mode = #tpu.pipeline_mode<synchronous>, transform_indices = @transform_3, window_bounds = array<i64: 192, 32>}, {transform_indices = @transform_4, window_bounds = array<i64: 1, 16, 16, 32>}]} {
    %c0 = arith.constant 0 : index
    %c0_0 = arith.constant 0 : index
    %c0_1 = arith.constant 0 : index
    %c0_2 = arith.constant 0 : index
    %0 = vector.load %arg1[%c0, %c0_0, %c0_1, %c0_2] : memref<1x18x24x32xbf16, #tpu.memory_space<vmem>>, vector<1x18x24x32xbf16>
    %1 = vector.shape_cast %0 : vector<1x18x24x32xbf16> to vector<18x24x32xbf16>
    %2 = vector.shape_cast %1 : vector<18x24x32xbf16> to vector<432x32xbf16>
    %c0_3 = arith.constant 0 : index
    %c0_4 = arith.constant 0 : index
    %3 = vector.load %arg2[%c0_3, %c0_4] : memref<32x192xbf16, #tpu.memory_space<vmem>>, vector<32x192xbf16>
    %cst = arith.constant dense<0.000000e+00> : vector<432x192xf32>
    %4 = tpu.matmul %2, %3, %cst {dimension_numbers = #tpu.dot_dimension_numbers<[1], [0], [0], [1], [0, 0, 1, 1], [], []>} : vector<432x32xbf16>, vector<32x192xbf16>, vector<432x192xf32> -> vector<432x192xf32>
    %cst_5 = arith.constant 0.000000e+00 : f32
    %cst_6 = arith.constant 6.000000e+00 : f32
    %5 = vector.broadcast %cst_5 : f32 to vector<432x192xf32>
    %6 = arith.maximumf %5, %4 : vector<432x192xf32>
    %7 = vector.broadcast %cst_6 : f32 to vector<432x192xf32>
    %8 = arith.minimumf %7, %6 : vector<432x192xf32>
    %9 = vector.shape_cast %8 : vector<432x192xf32> to vector<18x24x192xf32>
    %10 = arith.truncf %9 : vector<18x24x192xf32> to vector<18x24x192xbf16>
    %c0_7 = arith.constant 0 : index
    %c0_8 = arith.constant 0 : index
    %c0_9 = arith.constant 0 : index
    %11 = vector.load %arg6[%c0_7, %c0_8, %c0_9] : memref<18x24x192xbf16, #tpu.memory_space<vmem>>, vector<18x24x192xbf16>
    tpu.vector_store %arg6[%c0_7, %c0_8, %c0_9], %10 {strides = array<i32>} : memref<18x24x192xbf16, #tpu.memory_space<vmem>>, vector<18x24x192xbf16>,
    %c0_10 = arith.constant 0 : index
    %c0_11 = arith.constant 0 : index
    %12 = vector.load %arg3[%c0_10, %c0_11] : memref<9x192xbf16, #tpu.memory_space<vmem>>, vector<9x192xbf16>
    %c0_12 = arith.constant 0 : index
    %c0_13 = arith.constant 0 : index
    %c0_14 = arith.constant 0 : index
    %13 = vector.load %arg6[%c0_12, %c0_13, %c0_14] : memref<18x24x192xbf16, #tpu.memory_space<vmem>>, vector<16x16x192xbf16>
    %14 = vector.extract_strided_slice %12 {offsets = [0, 0], sizes = [1, 192], strides = [1, 1]} : vector<9x192xbf16> to vector<1x192xbf16>
    %15 = vector.shape_cast %14 : vector<1x192xbf16> to vector<192xbf16>
    %16 = vector.shape_cast %15 : vector<192xbf16> to vector<1x1x192xbf16>
    %17 = vector.broadcast %16 : vector<1x1x192xbf16> to vector<16x16x192xbf16>
    %18 = arith.mulf %13, %17 : vector<16x16x192xbf16>
    %19 = arith.extf %18 : vector<16x16x192xbf16> to vector<16x16x192xf32>
    %c0_15 = arith.constant 0 : index
    %c1 = arith.constant 1 : index
    %c0_16 = arith.constant 0 : index
    %20 = vector.load %arg6[%c0_15, %c1, %c0_16] : memref<18x24x192xbf16, #tpu.memory_space<vmem>>, vector<16x16x192xbf16>
    %21 = vector.extract_strided_slice %12 {offsets = [1, 0], sizes = [1, 192], strides = [1, 1]} : vector<9x192xbf16> to vector<1x192xbf16>
    %22 = vector.shape_cast %21 : vector<1x192xbf16> to vector<192xbf16>
    %23 = vector.shape_cast %22 : vector<192xbf16> to vector<1x1x192xbf16>
    %24 = vector.broadcast %23 : vector<1x1x192xbf16> to vector<16x16x192xbf16>
    %25 = arith.mulf %20, %24 : vector<16x16x192xbf16>
    %26 = arith.extf %25 : vector<16x16x192xbf16> to vector<16x16x192xf32>
    %27 = arith.addf %19, %26 : vector<16x16x192xf32>
    %c0_17 = arith.constant 0 : index
    %c2 = arith.constant 2 : index
    %c0_18 = arith.constant 0 : index
    %28 = vector.load %arg6[%c0_17, %c2, %c0_18] : memref<18x24x192xbf16, #tpu.memory_space<vmem>>, vector<16x16x192xbf16>
    %29 = vector.extract_strided_slice %12 {offsets = [2, 0], sizes = [1, 192], strides = [1, 1]} : vector<9x192xbf16> to vector<1x192xbf16>
    %30 = vector.shape_cast %29 : vector<1x192xbf16> to vector<192xbf16>
    %31 = vector.shape_cast %30 : vector<192xbf16> to vector<1x1x192xbf16>
    %32 = vector.broadcast %31 : vector<1x1x192xbf16> to vector<16x16x192xbf16>
    %33 = arith.mulf %28, %32 : vector<16x16x192xbf16>
    %34 = arith.extf %33 : vector<16x16x192xbf16> to vector<16x16x192xf32>
    %35 = arith.addf %27, %34 : vector<16x16x192xf32>
    %c1_19 = arith.constant 1 : index
    %c0_20 = arith.constant 0 : index
    %c0_21 = arith.constant 0 : index
    %36 = vector.load %arg6[%c1_19, %c0_20, %c0_21] : memref<18x24x192xbf16, #tpu.memory_space<vmem>>, vector<16x16x192xbf16>
    %37 = vector.extract_strided_slice %12 {offsets = [3, 0], sizes = [1, 192], strides = [1, 1]} : vector<9x192xbf16> to vector<1x192xbf16>
    %38 = vector.shape_cast %37 : vector<1x192xbf16> to vector<192xbf16>
    %39 = vector.shape_cast %38 : vector<192xbf16> to vector<1x1x192xbf16>
    %40 = vector.broadcast %39 : vector<1x1x192xbf16> to vector<16x16x192xbf16>
    %41 = arith.mulf %36, %40 : vector<16x16x192xbf16>
    %42 = arith.extf %41 : vector<16x16x192xbf16> to vector<16x16x192xf32>
    %43 = arith.addf %35, %42 : vector<16x16x192xf32>
    %c1_22 = arith.constant 1 : index
    %c1_23 = arith.constant 1 : index
    %c0_24 = arith.constant 0 : index
    %44 = vector.load %arg6[%c1_22, %c1_23, %c0_24] : memref<18x24x192xbf16, #tpu.memory_space<vmem>>, vector<16x16x192xbf16>
    %45 = vector.extract_strided_slice %12 {offsets = [4, 0], sizes = [1, 192], strides = [1, 1]} : vector<9x192xbf16> to vector<1x192xbf16>
    %46 = vector.shape_cast %45 : vector<1x192xbf16> to vector<192xbf16>
    %47 = vector.shape_cast %46 : vector<192xbf16> to vector<1x1x192xbf16>
    %48 = vector.broadcast %47 : vector<1x1x192xbf16> to vector<16x16x192xbf16>
    %49 = arith.mulf %44, %48 : vector<16x16x192xbf16>
    %50 = arith.extf %49 : vector<16x16x192xbf16> to vector<16x16x192xf32>
    %51 = arith.addf %43, %50 : vector<16x16x192xf32>
    %c1_25 = arith.constant 1 : index
    %c2_26 = arith.constant 2 : index
    %c0_27 = arith.constant 0 : index
    %52 = vector.load %arg6[%c1_25, %c2_26, %c0_27] : memref<18x24x192xbf16, #tpu.memory_space<vmem>>, vector<16x16x192xbf16>
    %53 = vector.extract_strided_slice %12 {offsets = [5, 0], sizes = [1, 192], strides = [1, 1]} : vector<9x192xbf16> to vector<1x192xbf16>
    %54 = vector.shape_cast %53 : vector<1x192xbf16> to vector<192xbf16>
    %55 = vector.shape_cast %54 : vector<192xbf16> to vector<1x1x192xbf16>
    %56 = vector.broadcast %55 : vector<1x1x192xbf16> to vector<16x16x192xbf16>
    %57 = arith.mulf %52, %56 : vector<16x16x192xbf16>
    %58 = arith.extf %57 : vector<16x16x192xbf16> to vector<16x16x192xf32>
    %59 = arith.addf %51, %58 : vector<16x16x192xf32>
    %c2_28 = arith.constant 2 : index
    %c0_29 = arith.constant 0 : index
    %c0_30 = arith.constant 0 : index
    %60 = vector.load %arg6[%c2_28, %c0_29, %c0_30] : memref<18x24x192xbf16, #tpu.memory_space<vmem>>, vector<16x16x192xbf16>
    %61 = vector.extract_strided_slice %12 {offsets = [6, 0], sizes = [1, 192], strides = [1, 1]} : vector<9x192xbf16> to vector<1x192xbf16>
    %62 = vector.shape_cast %61 : vector<1x192xbf16> to vector<192xbf16>
    %63 = vector.shape_cast %62 : vector<192xbf16> to vector<1x1x192xbf16>
    %64 = vector.broadcast %63 : vector<1x1x192xbf16> to vector<16x16x192xbf16>
    %65 = arith.mulf %60, %64 : vector<16x16x192xbf16>
    %66 = arith.extf %65 : vector<16x16x192xbf16> to vector<16x16x192xf32>
    %67 = arith.addf %59, %66 : vector<16x16x192xf32>
    %c2_31 = arith.constant 2 : index
    %c1_32 = arith.constant 1 : index
    %c0_33 = arith.constant 0 : index
    %68 = vector.load %arg6[%c2_31, %c1_32, %c0_33] : memref<18x24x192xbf16, #tpu.memory_space<vmem>>, vector<16x16x192xbf16>
    %69 = vector.extract_strided_slice %12 {offsets = [7, 0], sizes = [1, 192], strides = [1, 1]} : vector<9x192xbf16> to vector<1x192xbf16>
    %70 = vector.shape_cast %69 : vector<1x192xbf16> to vector<192xbf16>
    %71 = vector.shape_cast %70 : vector<192xbf16> to vector<1x1x192xbf16>
    %72 = vector.broadcast %71 : vector<1x1x192xbf16> to vector<16x16x192xbf16>
    %73 = arith.mulf %68, %72 : vector<16x16x192xbf16>
    %74 = arith.extf %73 : vector<16x16x192xbf16> to vector<16x16x192xf32>
    %75 = arith.addf %67, %74 : vector<16x16x192xf32>
    %c2_34 = arith.constant 2 : index
    %c2_35 = arith.constant 2 : index
    %c0_36 = arith.constant 0 : index
    %76 = vector.load %arg6[%c2_34, %c2_35, %c0_36] : memref<18x24x192xbf16, #tpu.memory_space<vmem>>, vector<16x16x192xbf16>
    %77 = vector.extract_strided_slice %12 {offsets = [8, 0], sizes = [1, 192], strides = [1, 1]} : vector<9x192xbf16> to vector<1x192xbf16>
    %78 = vector.shape_cast %77 : vector<1x192xbf16> to vector<192xbf16>
    %79 = vector.shape_cast %78 : vector<192xbf16> to vector<1x1x192xbf16>
    %80 = vector.broadcast %79 : vector<1x1x192xbf16> to vector<16x16x192xbf16>
    %81 = arith.mulf %76, %80 : vector<16x16x192xbf16>
    %82 = arith.extf %81 : vector<16x16x192xbf16> to vector<16x16x192xf32>
    %83 = arith.addf %75, %82 : vector<16x16x192xf32>
    %cst_37 = arith.constant 0.000000e+00 : f32
    %cst_38 = arith.constant 6.000000e+00 : f32
    %84 = vector.broadcast %cst_37 : f32 to vector<16x16x192xf32>
    %85 = arith.maximumf %84, %83 : vector<16x16x192xf32>
    %86 = vector.broadcast %cst_38 : f32 to vector<16x16x192xf32>
    %87 = arith.minimumf %86, %85 : vector<16x16x192xf32>
    %88 = arith.truncf %87 : vector<16x16x192xf32> to vector<16x16x192xbf16>
    %89 = vector.shape_cast %88 : vector<16x16x192xbf16> to vector<256x192xbf16>
    %c0_39 = arith.constant 0 : index
    %c0_40 = arith.constant 0 : index
    %90 = vector.load %arg4[%c0_39, %c0_40] : memref<192x32xbf16, #tpu.memory_space<vmem>>, vector<192x32xbf16>
    %cst_41 = arith.constant dense<0.000000e+00> : vector<256x32xf32>
    %91 = tpu.matmul %89, %90, %cst_41 {dimension_numbers = #tpu.dot_dimension_numbers<[1], [0], [0], [1], [0, 0, 1, 1], [], []>} : vector<256x192xbf16>, vector<192x32xbf16>, vector<256x32xf32> -> vector<256x32xf32>
    %92 = vector.shape_cast %91 : vector<256x32xf32> to vector<16x16x32xf32>
    %93 = vector.extract_strided_slice %1 {offsets = [1, 1, 0], sizes = [16, 16, 32], strides = [1, 1, 1]} : vector<18x24x32xbf16> to vector<16x16x32xbf16>
    %94 = arith.extf %93 : vector<16x16x32xbf16> to vector<16x16x32xf32>
    %95 = arith.addf %92, %94 : vector<16x16x32xf32>
    %96 = arith.truncf %95 : vector<16x16x32xf32> to vector<16x16x32xbf16>
    %c0_42 = arith.constant 0 : index
    %c0_43 = arith.constant 0 : index
    %c0_44 = arith.constant 0 : index
    %c0_45 = arith.constant 0 : index
    %97 = vector.load %arg5[%c0_42, %c0_43, %c0_44, %c0_45] : memref<1x16x16x32xbf16, #tpu.memory_space<vmem>>, vector<1x16x16x32xbf16>
    %98 = vector.shape_cast %97 : vector<1x16x16x32xbf16> to vector<16x16x32xbf16>
    %99 = vector.shape_cast %96 : vector<16x16x32xbf16> to vector<1x16x16x32xbf16>
    tpu.vector_store %arg5[%c0_42, %c0_43, %c0_44, %c0_45], %99 {strides = array<i32>} : memref<1x16x16x32xbf16, #tpu.memory_space<vmem>>, vector<1x16x16x32xbf16>,
    return
  }
  func.func @transform_0(%arg0: i32) -> (i32, i32, i32, i32) {
    %c0_i32 = arith.constant 0 : i32
    %c0_i32_0 = arith.constant 0 : i32
    %c0_i32_1 = arith.constant 0 : i32
    %c0_i32_2 = arith.constant 0 : i32
    return %arg0, %c0_i32, %c0_i32_0, %c0_i32_1 : i32, i32, i32, i32
  }
  func.func @transform_1(%arg0: i32) -> (i32, i32) {
    %c0_i32 = arith.constant 0 : i32
    %c0_i32_0 = arith.constant 0 : i32
    %c0_i32_1 = arith.constant 0 : i32
    return %c0_i32, %c0_i32_0 : i32, i32
  }
  func.func @transform_2(%arg0: i32) -> (i32, i32) {
    %c0_i32 = arith.constant 0 : i32
    %c0_i32_0 = arith.constant 0 : i32
    %c0_i32_1 = arith.constant 0 : i32
    return %c0_i32, %c0_i32_0 : i32, i32
  }
  func.func @transform_3(%arg0: i32) -> (i32, i32) {
    %c0_i32 = arith.constant 0 : i32
    %c0_i32_0 = arith.constant 0 : i32
    %c0_i32_1 = arith.constant 0 : i32
    return %c0_i32, %c0_i32_0 : i32, i32
  }
  func.func @transform_4(%arg0: i32) -> (i32, i32, i32, i32) {
    %c0_i32 = arith.constant 0 : i32
    %c0_i32_0 = arith.constant 0 : i32
    %c0_i32_1 = arith.constant 0 : i32
    %c0_i32_2 = arith.constant 0 : i32
    return %arg0, %c0_i32, %c0_i32_0, %c0_i32_1 : i32, i32, i32, i32
  }
}

</mosaic_0001>

<bundles_post_ra>
// kernel: inverted_residual.1
= control target key start
LH: loop header
LB: loop body
LE: loop exit
PB: predicated region body
PF: predicated region fallthrough
CT: control target
= control target key end

     0   :  { %9 = vsyncpa [#allocation4], 0  ;;  %s10284_s0 = inlined_call_operand.vmem [shape: bf16[2,18,24,32], index: 0, kind: input, shape index: {}]   ;;  %s10285_s1 = inlined_call_operand.vmem [shape: bf16[32,192], index: 1, kind: input, shape index: {}]   ;;  %s10286_s2 = inlined_call_operand.vmem [shape: bf16[9,192], index: 2, kind: input, shape index: {}]   ;;  %s10287_s3 = inlined_call_operand.vmem [shape: bf16[192,32], index: 3, kind: input, shape index: {}]   ;;  %s10288_s4 = inlined_call_operand.hbm [shape: bf16[2,16,16,32], index: 4, kind: output, shape index: {}]  }
   0x1   :  { %11 = vsyncpa [#allocation4 + $0x1], 0  ;;  %s6825_s15 = smov 0   ;;  %s6827_s16 = smov 0  }
   0x2   :  { %s6829_s17 = smov 0   ;;  %s6831_s18 = smov 0  }
   0x3 LB: > { %s6846_s19 = sadd.s32 4294967295, %s6794_s18   ;;  %s6307_s20 = sadd.s32 4294967294, %s6794_s18   ;;  %s6794_s18 = sphi %s6831_s18, %s10418_s18   ;;  %s6790_s17 = sphi %s6829_s17, %s10417_s17   ;;  %s6786_s16 = sphi %s6827_s16, %s10416_s16   ;;  %s6782_s15 = sphi %s6825_s15, %s10415_s15  }
   0x4   : > { %s6850_s21 = sadd.s32 1, %s6794_s18   ;;  %s113_s22 = sadd.s32 1, %s6790_s17 }
   0x5   : > { %s110_s23 = ssub.s32 %s6794_s18, %s6850_s21  ;;  %p123_p0 = scmp.ne.s32.totalorder %s6790_s17, %s6786_s16 }
   0x6   : > { %p111_p1 = scmp.eq.s32.totalorder %s110_s23, 0  ;;  %p124_p2 = scmp.eq.s32.totalorder %s6846_s19, 1 }
   0x7   : > { %p129_p3 = scmp.ne.s32.totalorder %s6786_s16, %s6782_s15  ;;  %p130_p4 = scmp.eq.s32.totalorder %s6307_s20, 1 }
   0x8   : > { %s6861_s24 = scalar_select %p111_p1, %s6790_s17, %s113_s22  }
   0x9   : > { %p6863_p5 = por %p124_p2, %p123_p0  ;;  %p6867_p6 = por %p130_p4, %p129_p3 }
   0xa   : > { %p6310_p7 = scmp.ge.s32.totalorder %s6794_s18, 1  ;;  %p165_p8 = scmp.lt.s32.totalorder %s6794_s18, 3 }
   0xc   : > { %p166_p9 = pnand %p6310_p7, %p165_p8 }
   0xe   : > { %169 = sbr.rel (%p166_p9) target bundleno = 1259 (0x4eb), region = 36 }
  0x15   : > { %v6633_v0 = vld [vmem:[%s10285_s1 + $0x4] ss:$8 sps:$4 sm:$0xff]   ;;  %p191_p10 = scmp.lt.s32.totalorder %s6846_s19, 1  ;;  %v6635_v1 = vld [vmem:[%s10285_s1] ss:$8 sps:$4 sm:$0xff]   ;;  %v6796_v2 = vmov 0   ;;  %v1470_v44 = vlaneseq }
  0x16   : > { %524 = vmatprep.mubr.bf16.mxu0 %v6796_v2  ;;  %5669 = vmatprep.subr.bf16.mxu1 %v6796_v2  ;;  %v6636_v3 = vld [vmem:[%s10285_s1 + $0x14] ss:$8 sps:$4 sm:$0xff]   ;;  %v6638_v4 = vld [vmem:[%s10285_s1 + $0x10] ss:$8 sps:$4 sm:$0xff]   ;;  %vm410_vm0 = vcmask 261120   ;;  %v6666_v19 = vld [vmem:[%s10287_s3] sm:$0xff]  }
  0x17   : > { %492 = vmatprep.subr.bf16.mxu0 %v6633_v0  ;;  %s192_s9 = scalar_select %p191_p10, %s6846_s19, 1  ;;  %5670 = vmatpush1.bf16.msra.mxu1 %v6666_v19  ;;  %v6667_v20 = vld [vmem:[%s10287_s3 + $0x8] sm:$0xff]   ;;  %v6668_v22 = vld [vmem:[%s10287_s3 + $0x10] sm:$0xff]   ;;  %v6669_v23 = vld [vmem:[%s10287_s3 + $0x18] sm:$0xff]   ;;  %v1471_v48 = vshrl.u32 %v1470_v44, 7  ;;  %vm1371_vm1 = vcmask 1043456  }
  0x18   : > { %493 = vmatpush1.bf16.msra.mxu0 %v6635_v1  ;;  %5671 = vmatprep.subr.bf16.mxu1 %v6796_v2  ;;  %v6670_v25 = vld [vmem:[%s10287_s3 + $0x20] sm:$0xff]   ;;  %v6671_v26 = vld [vmem:[%s10287_s3 + $0x28] sm:$0xff]   ;;  %v6672_v28 = vld [vmem:[%s10287_s3 + $0x30] sm:$0xff]   ;;  %vm1372_vm2 = vcmask 523268   ;;  %vm1859_vm4 = vcmask 1046528   ;;  %vm2418_vm5 = vcmask 1045504  }
  0x19   : > { %494 = vmatprep.subr.bf16.mxu0 %v6636_v3  ;;  %s6590_s10 = smul.u32 216, %s192_s9  ;;  %v6673_v29 = vld [vmem:[%s10287_s3 + $0x38] sm:$0xff]   ;;  %v6674_v31 = vld [vmem:[%s10287_s3 + $0x40] sm:$0xff]   ;;  %v6675_v32 = vld [vmem:[%s10287_s3 + $0x48] sm:$0xff]   ;;  %v1472_v52 = vsub.s32 0, %v1471_v48  ;;  %v7032_v57 = vsub.s32 1, %v1471_v48 }
  0x1a   : > { %v6676_v34 = vld [vmem:[%s10287_s3 + $0x50] sm:$0xff]   ;;  %v6677_v35 = vld [vmem:[%s10287_s3 + $0x58] sm:$0xff]   ;;  %v1428_v43 = vld [vmem:[%s10286_s2] sm:$0xff]  ;;  %vm5620_vm6 = vcmask 523264   ;;  %s188_s9 = sand.u32 1, %s6786_s16   ;;  %vm6198_vm7 = vcmask 257024  }
  0x1b   : > { %s6892_s13 = scalar_lea.vmem %s10284_s0, %s6590_s10  ;;  %5672 = vmatpush1.bf16.msra.mxu1 %v6667_v20  ;;  %v6425_v45 = vcombine.low %v1428_v43, %v1428_v43  ;;  %v6426_v46 = vcombine.high %v1428_v43, %v1428_v43  ;;  %v1429_v62 = vld [vmem:[%s10286_s2 + $0x8] sm:$0x11]  ;;  %vm7046_vm3 = vmor %vm1372_vm2, %vm1371_vm1  ;;  %s6311_s10 = sshll.u32 %s188_s9, 7 }
  0x1c   : > { %495 = vmatpush1.bf16.msra.mxu0 %v6638_v4  ;;  %v6639_v5 = vld [vmem:[%s6892_s13] sm:$0xff]   ;;  %v199_v6 = vld [vmem:[%s6892_s13 + $0x8] sm:$0xff]   ;;  %v201_v7 = vld [vmem:[%s6892_s13 + $0x10] sm:$0xff]   ;;  %5673 = vmatprep.subr.bf16.mxu1 %v6796_v2  ;;  %s10100_s11 = scalar_lea.vmem [#allocation3], %s6311_s10  ;;  %s6589_s12 = sshll.u32 %s6846_s19, 11 }
  0x1d   : > { %v203_v8 = vld [vmem:[%s6892_s13 + $0x18] sm:$0xff]   ;;  %v205_v9 = vld [vmem:[%s6892_s13 + $0x20] sm:$0xff]   ;;  %v207_v10 = vld [vmem:[%s6892_s13 + $0x28] sm:$0xff]   ;;  %v1599_v49 = vshrl.u32 %v6425_v45, 16  ;;  %v1606_v50 = vshrl.u32 %v6426_v46, 16  ;;  %v7024_v51 = vpack.i.b16 %v6425_v45, %v6425_v45  ;;  %v7026_v53 = vpack.i.b16 %v6426_v46, %v6426_v46  ;;  %s6245_s14 = sshll.u32 %s10100_s11, 4  ;;  %s10233_s22 = scalar_lea.hbm %s10288_s4, %s6589_s12  ;;  %s10235_s14 = int_to_ptr.vmem [resolvable:$true] %s6245_s14 }
  0x1e   : > { %v209_v11 = vld [vmem:[%s6892_s13 + $0x30] sm:$0xff]   ;;  %v211_v12 = vld [vmem:[%s6892_s13 + $0x38] sm:$0xff]   ;;  %v213_v13 = vld [vmem:[%s6892_s13 + $0x40] sm:$0xff]   ;;  %s10243_s19 = scalar_lea.sflag [#allocation4], %s188_s9  ;;  %s6732_s23 = scalar_lea.vmem %s10235_s14, 2048 }
  0x1f   : > { %6344 = vmatmul.mubr.msk.bf16.vlgmr.msra.gmra.mrb[0].mxu0 %vm410_vm0, %v6639_v5  ;;  %v215_v14 = vld [vmem:[%s6892_s13 + $0x48] sm:$0xff]   ;;  %v217_v15 = vld [vmem:[%s6892_s13 + $0x50] sm:$0xff]   ;;  %v219_v16 = vld [vmem:[%s6892_s13 + $0x58] sm:$0xff]   ;;  %5674 = vmatpush1.bf16.msra.mxu1 %v6668_v22  ;;  %v7028_v54 = vpack.i.b16 %v1599_v49, %v1599_v49  ;;  %v7030_v55 = vpack.i.b16 %v1606_v50, %v1606_v50  ;;  %v1473_v63 = vrot.slane %v7024_v51, %v1472_v52  ;;  %p6733_p11 = scmp.ne.s32.totalorder %s10235_s14, %s6732_s23  ;;  %s6797_s27 = smov [#allocation3]  }
  0x20   : > { %534 = vmatprep.mubr.bf16.mxu0 %v6796_v2  ;;  %v221_v17 = vld [vmem:[%s6892_s13 + $0x60] sm:$0xff]   ;;  %v223_v18 = vld [vmem:[%s6892_s13 + $0x68] sm:$0xff]   ;;  %v225_v21 = vld [vmem:[%s6892_s13 + $0x70] sm:$0xff]   ;;  %5675 = vmatprep.subr.bf16.mxu1 %v6796_v2  ;;  %v1480_v0 = vrot.slane %v7026_v53, %v1472_v52  ;;  %s6736_s28 = sshll.u32 %s6797_s27, 4  ;;  %s6737_s28 = int_to_ptr.vmem [resolvable:$false] %s6736_s28 }
  0x21   : > { %v227_v24 = vld [vmem:[%s6892_s13 + $0x78] sm:$0xff]   ;;  %v229_v27 = vld [vmem:[%s6892_s13 + $0x80] sm:$0xff]   ;;  %v231_v30 = vld [vmem:[%s6892_s13 + $0x88] sm:$0xff]   ;;  %v1605_v4 = vrot.slane %v7028_v54, %v1472_v52  ;;  %v1612_v5 = vrot.slane %v7030_v55, %v1472_v52  ;;  %p6734_p12 = pnand %p6733_p11, %p6863_p5  ;;  %s6738_s29 = scalar_lea.vmem %s6737_s28, 4096 }
  0x22   : > { %v233_v33 = vld [vmem:[%s6892_s13 + $0x90] sm:$0xff]   ;;  %v235_v36 = vld [vmem:[%s6892_s13 + $0x98] sm:$0xff]   ;;  %v237_v37 = vld [vmem:[%s6892_s13 + $0xa0] sm:$0xff]   ;;  %p6739_p0 = scmp.lt.s32.totalorder %s10235_s14, %s6737_s28  ;;  %p6740_p1 = scmp.lt.s32.totalorder %s6738_s29, %s6732_s23 }
  0x23   : > { %5676 = vmatpush1.bf16.msra.mxu1 %v6669_v23  ;;  %v239_v38 = vld [vmem:[%s6892_s13 + $0xa8] sm:$0xff]   ;;  %v241_v39 = vld [vmem:[%s6892_s13 + $0xb0] sm:$0xff]   ;;  %v243_v40 = vld [vmem:[%s6892_s13 + $0xb8] sm:$0xff]   ;;  %v2743_v23 = vrot.slane %v7028_v54, %v7032_v57  ;;  %p6735_p13 = pneg %p6734_p12 }
  0x24   : > { %5677 = vmatprep.subr.bf16.mxu1 %v6796_v2  ;;  %v245_v41 = vld [vmem:[%s6892_s13 + $0xc0] sm:$0xff]   ;;  %v247_v42 = vld [vmem:[%s6892_s13 + $0xc8] sm:$0xff]   ;;  %v6665_v47 = vld [vmem:[%s6892_s13 + $0xd0] sm:$0xff]   ;;  %p6741_p2 = por %p6740_p1, %p6739_p0 }
  0x26   : > { %p6742_p3 = pnand %p6741_p2, %p6735_p13 }
  0x27   : > { %6345 = vmatmul.mubr.msk.bf16.gmra.mrb[4].mxu0 %vm410_vm0, %v199_v6  ;;  %5678 = vmatpush1.bf16.msra.mxu1 %v6670_v25 }
  0x28   : > { %544 = vmatprep.mubr.bf16.mxu0 %v6796_v2  ;;  %5679 = vmatprep.subr.bf16.mxu1 %v6796_v2 }
  0x2b   : > { %5680 = vmatpush1.bf16.msra.mxu1 %v6671_v26  ;;  %v2747_v26 = vrot.slane %v7030_v55, %v7032_v57 }
  0x2c   : > { %5681 = vmatprep.subr.bf16.mxu1 %v6796_v2 }
  0x2f   : > { %6346 = vmatmul.mubr.msk.bf16.gmra.mrb[8].mxu0 %vm410_vm0, %v201_v7  ;;  %5682 = vmatpush1.bf16.msra.mxu1 %v6672_v28 }
  0x30   : > { %554 = vmatprep.mubr.bf16.mxu0 %v6796_v2  ;;  %5683 = vmatprep.subr.bf16.mxu1 %v6796_v2 }
  0x33   : > { %5684 = vmatpush1.bf16.msra.mxu1 %v6673_v29 }
  0x34   : > { %5685 = vmatprep.subr.bf16.mxu1 %v6796_v2 }
  0x37   : > { %6347 = vmatmul.mubr.msk.bf16.gmra.mrb[12].mxu0 %vm410_vm0, %v203_v8  ;;  %5686 = vmatpush1.bf16.msra.mxu1 %v6674_v31  ;;  %v2167_v8 = vrot.slane %v7024_v51, %v7032_v57 }
  0x38   : > { %564 = vmatprep.mubr.bf16.mxu0 %v6796_v2  ;;  %5687 = vmatprep.subr.bf16.mxu1 %v6796_v2 }
  0x3b   : > { %5688 = vmatpush1.bf16.msra.mxu1 %v6675_v32 }
  0x3c   : > { %5689 = vmatprep.subr.bf16.mxu1 %v6796_v2 }
  0x3f   : > { %6348 = vmatmul.mubr.msk.bf16.gmra.mrb[16].mxu0 %vm410_vm0, %v205_v9  ;;  %5690 = vmatpush1.bf16.msra.mxu1 %v6676_v34  ;;  %v2171_v9 = vrot.slane %v7026_v53, %v7032_v57 }
  0x40   : > { %574 = vmatprep.mubr.bf16.mxu0 %v6796_v2  ;;  %5691 = vmatprep.subr.bf16.mxu1 %v6796_v2 }
  0x41   : > { %v7056_v22 = vcombine.low %v2167_v8, %v2171_v9 }
  0x43   : > { %5692 = vmatpush1.bf16.msra.mxu1 %v6677_v35 }
  0x47   : > { %6349 = vmatmul.mubr.msk.bf16.gmra.mrb[20].mxu0 %vm410_vm0, %v207_v10 }
  0x48   : > { %584 = vmatprep.mubr.bf16.mxu0 %v6796_v2 }
  0x4f   : > { %6350 = vmatmul.mubr.msk.bf16.gmra.mrb[24].mxu0 %vm410_vm0, %v209_v11 }
  0x50   : > { %594 = vmatprep.mubr.bf16.mxu0 %v6796_v2 }
  0x57   : > { %6351 = vmatmul.mubr.msk.bf16.gmra.mrb[28].mxu0 %vm410_vm0, %v211_v12  ;;  %v6435_v12 = vcombine.low %v1429_v62, %v1429_v62 }
  0x58   : > { %604 = vmatprep.mubr.bf16.mxu0 %v6796_v2 }
  0x5f   : > { %6352 = vmatmul.mubr.msk.bf16.gmra.mrb[32].mxu0 %vm410_vm0, %v213_v13  ;;  %v6436_v13 = vcombine.high %v1429_v62, %v1429_v62 }
  0x60   : > { %614 = vmatprep.mubr.bf16.mxu0 %v6796_v2 }
  0x61   : > { %v4824_v28 = vpack.i.b16 %v6436_v13, %v6436_v13 }
  0x63   : > { %v4829_v46 = vrot.slane %v4824_v28, %v1472_v52 }
  0x67   : > { %6353 = vmatmul.mubr.msk.bf16.gmra.mrb[36].mxu0 %vm410_vm0, %v215_v14 }
  0x68   : > { %624 = vmatprep.mubr.bf16.mxu0 %v6796_v2 }
  0x6f   : > { %6354 = vmatmul.mubr.msk.bf16.gmra.mrb[40].mxu0 %vm410_vm0, %v217_v15 }
  0x70   : > { %634 = vmatprep.mubr.bf16.mxu0 %v6796_v2 }
  0x77   : > { %6355 = vmatmul.mubr.msk.bf16.gmra.mrb[44].mxu0 %vm410_vm0, %v219_v16  ;;  %v2932_v16 = vsub.s32 2, %v1471_v48 }
  0x78   : > { %644 = vmatprep.mubr.bf16.mxu0 %v6796_v2 }
  0x79   : > { %v2933_v31 = vrot.slane %v7024_v51, %v2932_v16  ;;  %v2937_v32 = vrot.slane %v7026_v53, %v2932_v16 }
  0x7b   : > { %v7074_v57 = vcombine.low %v2933_v31, %v2937_v32 }
  0x7f   : > { %6356 = vmatmul.mubr.msk.bf16.gmra.mrb[48].mxu0 %vm410_vm0, %v221_v17  ;;  %v7050_v17 = vcombine.low %v1473_v63, %v1480_v0 }
  0x80   : > { %654 = vmatprep.mubr.bf16.mxu0 %v6796_v2 }
  0x87   : > { %6357 = vmatmul.mubr.msk.bf16.gmra.mrb[52].mxu0 %vm410_vm0, %v223_v18  ;;  %v4065_v18 = vsub.s32 3, %v1471_v48 }
  0x88   : > { %664 = vmatprep.mubr.bf16.mxu0 %v6796_v2 }
  0x89   : > { %v4260_v44 = vrot.slane %v7030_v55, %v4065_v18 }
  0x8f   : > { %6358 = vmatmul.mubr.msk.bf16.gmra.mrb[56].mxu0 %vm410_vm0, %v225_v21  ;;  %v7054_v21 = vcombine.low %v1605_v4, %v1612_v5 }
  0x90   : > { %674 = vmatprep.mubr.bf16.mxu0 %v6796_v2 }
  0x97   : > { %6359 = vmatmul.mubr.msk.bf16.gmra.mrb[60].mxu0 %vm410_vm0, %v227_v24 }
  0x98   : > { %684 = vmatprep.mubr.bf16.mxu0 %v6796_v2 }
  0x9f   : > { %6360 = vmatmul.mubr.msk.bf16.gmra.mrb[64].mxu0 %vm410_vm0, %v229_v27  ;;  %v4817_v27 = vpack.i.b16 %v6435_v12, %v6435_v12 }
  0xa0   : > { %694 = vmatprep.mubr.bf16.mxu0 %v6796_v2 }
  0xa1   : > { %v4822_v45 = vrot.slane %v4817_v27, %v1472_v52 }
  0xa3   : > { %v7093_v0 = vcombine.low %v4822_v45, %v4829_v46 }
  0xa5   : > { %10296 = vst [vmem:[#allocation6_spill] sm:$0xff] %v7093_v0 }
  0xa7   : > { %6361 = vmatmul.mubr.msk.bf16.gmra.mrb[68].mxu0 %vm410_vm0, %v231_v30 }
  0xa8   : > { %704 = vmatprep.mubr.bf16.mxu0 %v6796_v2 }
  0xaf   : > { %6362 = vmatmul.mubr.msk.bf16.gmra.mrb[72].mxu0 %vm410_vm0, %v233_v33  ;;  %v3491_v33 = vrot.slane %v7028_v54, %v2932_v16 }
  0xb0   : > { %714 = vmatprep.mubr.bf16.mxu0 %v6796_v2 }
  0xb7   : > { %6363 = vmatmul.mubr.msk.bf16.gmra.mrb[76].mxu0 %vm410_vm0, %v235_v36 }
  0xb8   : > { %724 = vmatprep.mubr.bf16.mxu0 %v6796_v2 }
  0xbf   : > { %6364 = vmatmul.mubr.msk.bf16.gmra.mrb[80].mxu0 %vm410_vm0, %v237_v37  ;;  %v3495_v37 = vrot.slane %v7030_v55, %v2932_v16 }
  0xc0   : > { %734 = vmatprep.mubr.bf16.mxu0 %v6796_v2 }
  0xc7   : > { %6365 = vmatmul.mubr.msk.bf16.gmra.mrb[84].mxu0 %vm410_vm0, %v239_v38  ;;  %v4066_v38 = vrot.slane %v7024_v51, %v4065_v18  ;;  %v7076_v51 = vcombine.low %v3491_v33, %v3495_v37 }
  0xc8   : > { %744 = vmatprep.mubr.bf16.mxu0 %v6796_v2 }
  0xcf   : > { %6366 = vmatmul.mubr.msk.bf16.gmra.mrb[88].mxu0 %vm410_vm0, %v241_v39 }
  0xd0   : > { %754 = vmatprep.mubr.bf16.mxu0 %v6796_v2 }
  0xd7   : > { %6367 = vmatmul.mubr.msk.bf16.gmra.mrb[92].mxu0 %vm410_vm0, %v243_v40 }
  0xd8   : > { %764 = vmatprep.mubr.bf16.mxu0 %v6796_v2 }
  0xdf   : > { %6368 = vmatmul.mubr.msk.bf16.gmra.mrb[96].mxu0 %vm410_vm0, %v245_v41  ;;  %v4070_v41 = vrot.slane %v7026_v53, %v4065_v18 }
  0xe0   : > { %774 = vmatprep.mubr.bf16.mxu0 %v6796_v2 }
  0xe7   : > { %6369 = vmatmul.mubr.msk.bf16.gmra.mrb[100].mxu0 %vm410_vm0, %v247_v42  ;;  %v4256_v42 = vrot.slane %v7028_v54, %v4065_v18 }
  0xe8   : > { %784 = vmatprep.mubr.bf16.mxu0 %v6796_v2 }
  0xe9   : > { %v7091_v63 = vcombine.low %v4256_v42, %v4260_v44 }
  0xef   : > { %6370 = vmatmul.mubr.msk.bf16.gmra.mrb[104].mxu0 %vm410_vm0, %v6665_v47 }
  0xf2   : > { %v526_v56 = vpop.f32.mrb[0].mxu0 }
  0xf3   : > { %v795_v58 = vmax.f32 %v526_v56, 0.0  ;;  %v528_v59 = vpop.f32.mrb[1].mxu0  ;;  %v7072_v56 = vcombine.low %v2743_v23, %v2747_v26 }
  0xf4   : > { %v796_v60 = vmax.f32 %v528_v59, 0.0  ;;  %v530_v61 = vpop.f32.mrb[2].mxu0 }
  0xf5   : > { %v903_v1 = vmin.f32 %v795_v58, 6.0  ;;  %v797_v2 = vmax.f32 %v530_v61, 0.0  ;;  %v532_v3 = vpop.f32.mrb[3].mxu0  ;;  %v7086_v58 = vcombine.low %v4066_v38, %v4070_v41 }
  0xf6   : > { %v904_v6 = vmin.f32 %v796_v60, 6.0  ;;  %v798_v7 = vmax.f32 %v532_v3, 0.0 }
  0xf7   : > { %v905_v11 = vmin.f32 %v797_v2, 6.0 }
  0xf8   : > { %v6503_v14 = vpack.c.bf16 %v904_v6, %v903_v1  ;;  %v906_v15 = vmin.f32 %v798_v7, 6.0 }
  0xfa   : > { %1374 = vst.msk [vmem:[#allocation2] sm:$0xff] %vm7046_vm3, %v6503_v14  ;;  %v6504_v19 = vpack.c.bf16 %v906_v15, %v905_v11  ;;  %v536_v20 = vpop.f32.mrb[4].mxu0 }
  0xfb   : > { %v799_v24 = vmax.f32 %v536_v20, 0.0  ;;  %v538_v25 = vpop.f32.mrb[5].mxu0 }
  0xfc   : > { %1375 = vst.msk [vmem:[#allocation2 + $0x8] sm:$0xff] %vm7046_vm3, %v6504_v19  ;;  %v800_v29 = vmax.f32 %v538_v25, 0.0  ;;  %v540_v30 = vpop.f32.mrb[6].mxu0 }
  0xfd   : > { %v907_v34 = vmin.f32 %v799_v24, 6.0  ;;  %v801_v35 = vmax.f32 %v540_v30, 0.0  ;;  %v542_v36 = vpop.f32.mrb[7].mxu0 }
  0xfe   : > { %v908_v39 = vmin.f32 %v800_v29, 6.0  ;;  %v802_v40 = vmax.f32 %v542_v36, 0.0 }
  0xff   : > { %v909_v43 = vmin.f32 %v801_v35, 6.0 }
 0x100   : > { %v6505_v47 = vpack.c.bf16 %v908_v39, %v907_v34  ;;  %v910_v48 = vmin.f32 %v802_v40, 6.0 }
 0x101   : > { %v1430_v49 = vld [vmem:[#allocation2] sm:$0xff] }
 0x102   : > { %v2148_v50 = vld [vmem:[#allocation2] sm:$0xee]  ;;  %1376 = vst.msk [vmem:[#allocation2 + $0x10] sm:$0xff] %vm7046_vm3, %v6505_v47  ;;  %v6506_v53 = vpack.c.bf16 %v910_v48, %v909_v43  ;;  %v546_v54 = vpop.f32.mrb[8].mxu0  ;;  %v7081_v55 = vmul.bf16 %v7050_v17, %v1430_v49  ;;  %v7084_v52 = vmul.bf16 %v7054_v21, %v1430_v49 }
 0x103   : > { %v803_v59 = vmax.f32 %v546_v54, 0.0  ;;  %v548_v60 = vpop.f32.mrb[9].mxu0  ;;  %v1431_v61 = vld [vmem:[#allocation2 + $0x8] sm:$0xff]  ;;  %v7089_v62 = vmul.bf16 %v7056_v22, %v2148_v50 }
 0x104   : > { %1377 = vst.msk [vmem:[#allocation2 + $0x18] sm:$0xff] %vm7046_vm3, %v6506_v53  ;;  %v804_v1 = vmax.f32 %v548_v60, 0.0  ;;  %v550_v2 = vpop.f32.mrb[10].mxu0  ;;  %v7098_v3 = vmul.bf16 %v7050_v17, %v1431_v61  ;;  %v1520_v4 = vunpack.c.h.bf16 %v7081_v55  ;;  %v7102_v5 = vmul.bf16 %v7054_v21, %v1431_v61 }
 0x105   : > { %v911_v6 = vmin.f32 %v803_v59, 6.0  ;;  %v805_v7 = vmax.f32 %v550_v2, 0.0  ;;  %v552_v8 = vpop.f32.mrb[11].mxu0  ;;  %v1667_v9 = vunpack.c.l.bf16 %v7084_v52  ;;  %v1668_v11 = vunpack.c.h.bf16 %v7084_v52 }
 0x106   : > { %v912_v12 = vmin.f32 %v804_v1, 6.0  ;;  %v806_v13 = vmax.f32 %v552_v8, 0.0  ;;  %v1522_v14 = vunpack.c.h.bf16 %v7098_v3  ;;  %v1670_v15 = vunpack.c.h.bf16 %v7102_v5 }
 0x107   : > { %v913_v16 = vmin.f32 %v805_v7, 6.0  ;;  %v1863_v18 = vrot.slane %v1668_v11, 1  ;;  %v7109_v19 = vmul.bf16 %v7056_v22, %v1431_v61  ;;  %v2227_v20 = vunpack.c.h.bf16 %v7089_v62 }
 0x108   : > { %v6507_v23 = vpack.c.bf16 %v912_v12, %v911_v6  ;;  %v914_v24 = vmin.f32 %v806_v13, 6.0  ;;  %v1864_v25 = vrot.slane %v1670_v15, 1  ;;  %v1519_v26 = vunpack.c.l.bf16 %v7081_v55 }
 0x109   : > { %v1583_v27 = vld [vmem:[#allocation2 + $0x10] sm:$0x11]  ;;  %v2229_v28 = vunpack.c.h.bf16 %v7109_v19  ;;  %v2422_v29 = vrot.slane %v2227_v20, 2  ;;  %v1669_v31 = vunpack.c.l.bf16 %v7102_v5 }
 0x10a   : > { %1378 = vst.msk [vmem:[#allocation2 + $0x20] sm:$0xff] %vm7046_vm3, %v6507_v23  ;;  %v6508_v32 = vpack.c.bf16 %v914_v24, %v913_v16  ;;  %v556_v33 = vpop.f32.mrb[12].mxu0  ;;  %v7119_v34 = vmul.bf16 %v7054_v21, %v1583_v27  ;;  %v1865_v35 = vsel %vm1859_vm4, %v1863_v18, %v1864_v25  ;;  %v7123_v36 = vmul.bf16 %v7056_v22, %v1583_v27 }
 0x10b   : > { %v807_v37 = vmax.f32 %v556_v33, 0.0  ;;  %v558_v38 = vpop.f32.mrb[13].mxu0  ;;  %v2085_v39 = vadd.f32 %v1865_v35, %v1520_v4  ;;  %v2423_v40 = vrot.slane %v2229_v28, 2  ;;  %v7125_v41 = vld [vmem:[#allocation2 + $0x18] sm:$0xff] }
 0x10c   : > { %1379 = vst.msk [vmem:[#allocation2 + $0x28] sm:$0xff] %vm7046_vm3, %v6508_v32  ;;  %v808_v43 = vmax.f32 %v558_v38, 0.0  ;;  %v560_v44 = vpop.f32.mrb[14].mxu0  ;;  %v1672_v45 = vunpack.c.h.bf16 %v7119_v34  ;;  %v2231_v46 = vunpack.c.h.bf16 %v7123_v36  ;;  %v7134_v47 = vmul.bf16 %v7072_v56, %v7125_v41  ;;  %v3472_v2 = vld [vmem:[#allocation2 + $0x18] sm:$0xee] }
 0x10d   : > { %v915_v48 = vmin.f32 %v807_v37, 6.0  ;;  %v809_v49 = vmax.f32 %v560_v44, 0.0  ;;  %v562_v50 = vpop.f32.mrb[15].mxu0  ;;  %v2424_v53 = vsel %vm2418_vm5, %v2422_v29, %v2423_v40  ;;  %v7139_v54 = vmul.bf16 %v7074_v57, %v7125_v41 }
 0x10e   : > { %v916_v59 = vmin.f32 %v808_v43, 6.0  ;;  %v810_v60 = vmax.f32 %v562_v50, 0.0  ;;  %v1868_v61 = vrot.slane %v1672_v45, 1  ;;  %v2427_v1 = vrot.slane %v2231_v46, 2 }
 0x10f   : > { %v917_v4 = vmin.f32 %v809_v49, 6.0  ;;  %v2644_v6 = vadd.f32 %v2424_v53, %v2085_v39  ;;  %v2787_v7 = vunpack.c.h.bf16 %v7134_v47  ;;  %v2993_v8 = vunpack.c.h.bf16 %v7139_v54 }
 0x110   : > { %v6509_v11 = vpack.c.bf16 %v916_v59, %v915_v48  ;;  %v918_v12 = vmin.f32 %v810_v60, 6.0  ;;  %v1869_v13 = vsel %vm1859_vm4, %v1864_v25, %v1868_v61  ;;  %v2428_v15 = vsel %vm2418_vm5, %v2423_v40, %v2427_v1 }
 0x111   : > { %v2087_v16 = vadd.f32 %v1869_v13, %v1522_v14  ;;  %v7145_v18 = vld [vmem:[#allocation2 + $0x20] sm:$0xff]  ;;  %v2851_v20 = vadd.f32 %v2787_v7, %v2644_v6  ;;  %v3187_v23 = vrot.slane %v2993_v8, 1  ;;  %v7148_v24 = vmul.bf16 %v7076_v51, %v3472_v2 }
 0x112   : > { %1380 = vst.msk [vmem:[#allocation2 + $0x30] sm:$0xff] %vm7046_vm3, %v6509_v11  ;;  %v6510_v27 = vpack.c.bf16 %v918_v12, %v917_v4  ;;  %v566_v28 = vpop.f32.mrb[16].mxu0  ;;  %v7154_v29 = vmul.bf16 %v7072_v56, %v7145_v18  ;;  %v7158_v25 = vmul.bf16 %v7074_v57, %v7145_v18  ;;  %v7162_v14 = vmul.bf16 %v7076_v51, %v7145_v18 }
 0x113   : > { %v811_v32 = vmax.f32 %v566_v28, 0.0  ;;  %v568_v33 = vpop.f32.mrb[17].mxu0  ;;  %v2646_v35 = vadd.f32 %v2428_v15, %v2087_v16  ;;  %v2914_v37 = vld [vmem:[#allocation2 + $0x28] sm:$0x11]  ;;  %v3551_v38 = vunpack.c.h.bf16 %v7148_v24  ;;  %v1671_v39 = vunpack.c.l.bf16 %v7119_v34 }
 0x114   : > { %1381 = vst.msk [vmem:[#allocation2 + $0x38] sm:$0xff] %vm7046_vm3, %v6510_v27  ;;  %v812_v40 = vmax.f32 %v568_v33, 0.0  ;;  %v570_v43 = vpop.f32.mrb[18].mxu0  ;;  %v2789_v44 = vunpack.c.h.bf16 %v7154_v29  ;;  %v7170_v45 = vmul.bf16 %v7074_v57, %v2914_v37  ;;  %v2995_v46 = vunpack.c.h.bf16 %v7158_v25 }
 0x115   : > { %v919_v48 = vmin.f32 %v811_v32, 6.0  ;;  %v813_v49 = vmax.f32 %v570_v43, 0.0  ;;  %v572_v50 = vpop.f32.mrb[19].mxu0  ;;  %v7174_v53 = vmul.bf16 %v7076_v51, %v2914_v37  ;;  %v3553_v59 = vunpack.c.h.bf16 %v7162_v14 }
 0x116   : > { %v920_v60 = vmin.f32 %v812_v40, 6.0  ;;  %v814_v61 = vmax.f32 %v572_v50, 0.0  ;;  %v2853_v1 = vadd.f32 %v2789_v44, %v2646_v35  ;;  %v2997_v2 = vunpack.c.h.bf16 %v7170_v45 }
 0x117   : > { %v921_v4 = vmin.f32 %v813_v49, 6.0  ;;  %v3188_v6 = vrot.slane %v2995_v46, 1  ;;  %v3555_v7 = vunpack.c.h.bf16 %v7174_v53  ;;  %v3745_v8 = vrot.slane %v3551_v38, 2 }
 0x118   : > { %v6511_v11 = vpack.c.bf16 %v920_v60, %v919_v48  ;;  %v922_v12 = vmin.f32 %v814_v61, 6.0  ;;  %v3192_v13 = vrot.slane %v2997_v2, 1  ;;  %v3746_v15 = vrot.slane %v3553_v59, 2 }
 0x119   : > { %v3189_v16 = vsel %vm1859_vm4, %v3187_v23, %v3188_v6  ;;  %v3750_v27 = vrot.slane %v3555_v7, 2  ;;  %v7180_v28 = vld [vmem:[#allocation2 + $0x30] sm:$0xff]  ;;  %v1860_v32 = vrot.slane %v1667_v9, 1  ;;  %v7186_v33 = vrot.slane %v1669_v31, 1 }
 0x11a   : > { %1382 = vst.msk [vmem:[#allocation2 + $0x40] sm:$0xff] %vm7046_vm3, %v6511_v11  ;;  %v6512_v35 = vpack.c.bf16 %v922_v12, %v921_v4  ;;  %v576_v37 = vpop.f32.mrb[20].mxu0  ;;  %v3193_v38 = vsel %vm1859_vm4, %v3188_v6, %v3192_v13  ;;  %v3409_v40 = vadd.f32 %v3189_v16, %v2851_v20  ;;  %v3747_v23 = vsel %vm2418_vm5, %v3745_v8, %v3746_v15  ;;  %v4795_v59 = vld [vmem:[#allocation2 + $0x30] sm:$0xee] }
 0x11b   : > { %v815_v43 = vmax.f32 %v576_v37, 0.0  ;;  %v578_v44 = vpop.f32.mrb[21].mxu0  ;;  %v3411_v46 = vadd.f32 %v3193_v38, %v2853_v1  ;;  %v3751_v52 = vsel %vm2418_vm5, %v3746_v15, %v3750_v27  ;;  %v7193_v9 = vld [vmem:[#allocation2 + $0x38] sm:$0xff]  ;;  %v7197_v5 = vmul.bf16 %v7086_v58, %v7180_v28 }
 0x11c   : > { %1383 = vst.msk [vmem:[#allocation2 + $0x48] sm:$0xff] %vm7046_vm3, %v6512_v35  ;;  %v816_v31 = vmax.f32 %v578_v44, 0.0  ;;  %v580_v48 = vpop.f32.mrb[22].mxu0  ;;  %v3967_v49 = vadd.f32 %v3747_v23, %v3409_v40  ;;  %v7203_v20 = vmul.bf16 %v7086_v58, %v7193_v9  ;;  %v7207_v50 = vmul.bf16 %v7091_v63, %v7180_v28 }
 0x11d   : > { %v923_v60 = vmin.f32 %v815_v43, 6.0  ;;  %v817_v61 = vmax.f32 %v580_v48, 0.0  ;;  %v582_v1 = vpop.f32.mrb[23].mxu0  ;;  %v3969_v2 = vadd.f32 %v3751_v52, %v3411_v46  ;;  %v4110_v4 = vunpack.c.h.bf16 %v7197_v5 }
 0x11e   : > { %v924_v6 = vmin.f32 %v816_v31, 6.0  ;;  %v818_v7 = vmax.f32 %v582_v1, 0.0  ;;  %v4112_v8 = vunpack.c.h.bf16 %v7203_v20  ;;  %v7213_v11 = vmul.bf16 %v7091_v63, %v7193_v9 }
 0x11f   : > { %v925_v12 = vmin.f32 %v817_v61, 6.0  ;;  %v4174_v13 = vadd.f32 %v4110_v4, %v3967_v49  ;;  %v4316_v15 = vunpack.c.h.bf16 %v7207_v50  ;;  %v7217_v16 = vmul.bf16 %v7093_v0, %v4795_v59 }
 0x120   : > { %v6513_v27 = vpack.c.bf16 %v924_v6, %v923_v60  ;;  %v926_v35 = vmin.f32 %v818_v7, 6.0  ;;  %v4176_v37 = vadd.f32 %v4112_v8, %v3969_v2  ;;  %v4318_v38 = vunpack.c.h.bf16 %v7213_v11 }
 0x121   : > { %v4237_v40 = vld [vmem:[#allocation2 + $0x40] sm:$0x11]  ;;  %v4510_v23 = vrot.slane %v4316_v15, 1  ;;  %v7222_v43 = vmul.bf16 %v7093_v0, %v7193_v9  ;;  %v4885_v44 = vunpack.c.h.bf16 %v7217_v16  ;;  %v1862_v46 = vsel %vm1859_vm4, %v1860_v32, %v7186_v33 }
 0x122   : > { %1384 = vst.msk [vmem:[#allocation2 + $0x50] sm:$0xff] %vm7046_vm3, %v6513_v27  ;;  %v6514_v52 = vpack.c.bf16 %v926_v35, %v925_v12  ;;  %v586_v31 = vpop.f32.mrb[24].mxu0  ;;  %v7230_v48 = vmul.bf16 %v7091_v63, %v4237_v40  ;;  %v4511_v49 = vrot.slane %v4318_v38, 1  ;;  %v7233_v59 = vmul.bf16 %v7093_v0, %v4237_v40 }
 0x123   : > { %v819_v60 = vmax.f32 %v586_v31, 0.0  ;;  %v588_v61 = vpop.f32.mrb[25].mxu0  ;;  %v4887_v1 = vunpack.c.h.bf16 %v7222_v43  ;;  %v5079_v2 = vrot.slane %v4885_v44, 2  ;;  %v1866_v32 = vrot.slane %v1671_v39, 1 }
 0x124   : > { %1385 = vst.msk [vmem:[#allocation2 + $0x58] sm:$0xff] %vm7046_vm3, %v6514_v52  ;;  %v820_v4 = vmax.f32 %v588_v61, 0.0  ;;  %v590_v6 = vpop.f32.mrb[26].mxu0  ;;  %v4320_v7 = vunpack.c.h.bf16 %v7230_v48  ;;  %v4512_v8 = vsel %vm1859_vm4, %v4510_v23, %v4511_v49  ;;  %v4889_v12 = vunpack.c.h.bf16 %v7233_v59 }
 0x125   : > { %v927_v15 = vmin.f32 %v819_v60, 6.0  ;;  %v821_v27 = vmax.f32 %v590_v6, 0.0  ;;  %v592_v35 = vpop.f32.mrb[27].mxu0  ;;  %v4732_v38 = vadd.f32 %v4512_v8, %v4174_v13  ;;  %v5080_v40 = vrot.slane %v4887_v1, 2 }
 0x126   : > { %v928_v44 = vmin.f32 %v820_v4, 6.0  ;;  %v822_v31 = vmax.f32 %v592_v35, 0.0  ;;  %v4515_v34 = vrot.slane %v4320_v7, 1  ;;  %v5084_v39 = vrot.slane %v4889_v12, 2 }
 0x127   : > { %v929_v42 = vmin.f32 %v821_v27, 6.0  ;;  %v5081_v52 = vsel %vm2418_vm5, %v5079_v2, %v5080_v40  ;;  %v1867_v61 = vsel %vm1859_vm4, %v7186_v33, %v1866_v32  ;;  %v2084_v23 = vadd.f32 %v1862_v46, %v1519_v26 }
 0x128   : > { %v6515_v30 = vpack.c.bf16 %v928_v44, %v927_v15  ;;  %v930_v0 = vmin.f32 %v822_v31, 6.0  ;;  %v4516_v60 = vsel %vm1859_vm4, %v4511_v49, %v4515_v34  ;;  %v5085_v13 = vsel %vm2418_vm5, %v5080_v40, %v5084_v39 }
 0x129   : > { %v4734_v1 = vadd.f32 %v4516_v60, %v4176_v37  ;;  %v5301_v4 = vadd.f32 %v5081_v52, %v4732_v38  ;;  %v10297_v6 = vunpack.c.l.bf16 %v7098_v3  ;;  %v2228_v2 = vunpack.c.l.bf16 %v7109_v19 }
 0x12a   : > { %1386 = vst.msk [vmem:[#allocation2 + $0x60] sm:$0xff] %vm7046_vm3, %v6515_v30  ;;  %v6516_v33 = vpack.c.bf16 %v930_v0, %v929_v42  ;;  %v596_v55 = vpop.f32.mrb[28].mxu0  ;;  %v2230_v26 = vunpack.c.l.bf16 %v7123_v36  ;;  %v10298_v46 = vunpack.c.l.bf16 %v7089_v62  ;;  %v2786_v32 = vunpack.c.l.bf16 %v7134_v47 }
 0x12b   : > { %v2086_v7 = vadd.f32 %v1867_v61, %v10297_v6  ;;  %v823_v8 = vmax.f32 %v596_v55, 0.0  ;;  %v598_v37 = vpop.f32.mrb[29].mxu0  ;;  %v5303_v12 = vadd.f32 %v5085_v13, %v4734_v1  ;;  %v5365_v15 = vmax.f32 %v5301_v4, 0.0 }
 0x12c   : > { %v2419_v49 = vrot.slane %v10298_v46, 2  ;;  %v2420_v3 = vrot.slane %v2228_v2, 2  ;;  %1387 = vst.msk [vmem:[#allocation2 + $0x68] sm:$0xff] %vm7046_vm3, %v6516_v33  ;;  %v824_v19 = vmax.f32 %v598_v37, 0.0  ;;  %v600_v27 = vpop.f32.mrb[30].mxu0  ;;  %v2425_v30 = vrot.slane %v2230_v26, 2 }
 0x12d   : > { %v2788_v0 = vunpack.c.l.bf16 %v7154_v29  ;;  %v2992_v36 = vunpack.c.l.bf16 %v7139_v54  ;;  %v931_v42 = vmin.f32 %v823_v8, 6.0  ;;  %v825_v62 = vmax.f32 %v600_v27, 0.0  ;;  %v602_v35 = vpop.f32.mrb[31].mxu0 }
 0x12e   : > { %v5367_v38 = vmax.f32 %v5303_v12, 0.0  ;;  %v5429_v47 = vmin.f32 %v5365_v15, 6.0  ;;  %v932_v40 = vmin.f32 %v824_v19, 6.0  ;;  %v826_v44 = vmax.f32 %v602_v35, 0.0 }
 0x12f   : > { %v2421_v31 = vsel %vm2418_vm5, %v2419_v49, %v2420_v3  ;;  %v2426_v34 = vsel %vm2418_vm5, %v2420_v3, %v2425_v30  ;;  %v933_v39 = vmin.f32 %v825_v62, 6.0  ;;  %v2994_v29 = vunpack.c.l.bf16 %v7158_v25 }
 0x130   : > { %v5431_v52 = vmin.f32 %v5367_v38, 6.0  ;;  %v2643_v61 = vadd.f32 %v2421_v31, %v2084_v23  ;;  %v2645_v60 = vadd.f32 %v2426_v34, %v2086_v7  ;;  %v6517_v13 = vpack.c.bf16 %v932_v40, %v931_v42 }
 0x131   : > { %v934_v1 = vmin.f32 %v826_v44, 6.0  ;;  %v2996_v54 = vunpack.c.l.bf16 %v7170_v45  ;;  %v3184_v33 = vrot.slane %v2992_v36, 1  ;;  %v3185_v46 = vrot.slane %v2994_v29, 1 }
 0x132   : > { %v5493_v4 = vpack.c.bf16 %v5431_v52, %v5429_v47  ;;  %v2850_v6 = vadd.f32 %v2786_v32, %v2643_v61  ;;  %v2852_v2 = vadd.f32 %v2788_v0, %v2645_v60  ;;  %1388 = vst.msk [vmem:[#allocation2 + $0x70] sm:$0xff] %vm7046_vm3, %v6517_v13  ;;  %v606_v26 = vpop.f32.mrb[32].mxu0  ;;  %v3550_v23 = vunpack.c.l.bf16 %v7148_v24 }
 0x133   : > { %v6518_v55 = vpack.c.bf16 %v934_v1, %v933_v39  ;;  %v3190_v49 = vrot.slane %v2996_v54, 1  ;;  %v827_v7 = vmax.f32 %v606_v26, 0.0  ;;  %v608_v8 = vpop.f32.mrb[33].mxu0  ;;  %v3552_v25 = vunpack.c.l.bf16 %v7162_v14 }
 0x134   : > { %6450 = vmatprep.mubr.msk.bf16.mxu1 %vm5620_vm6, %v5493_v4  ;;  %v3554_v45 = vunpack.c.l.bf16 %v7174_v53  ;;  %v4109_v32 = vunpack.c.l.bf16 %v7197_v5  ;;  %v828_v37 = vmax.f32 %v608_v8, 0.0  ;;  %v610_v12 = vpop.f32.mrb[34].mxu0  ;;  %v3186_v15 = vsel %vm1859_vm4, %v3184_v33, %v3185_v46 }
 0x135   : > { %1389 = vst.msk [vmem:[#allocation2 + $0x78] sm:$0xff] %vm7046_vm3, %v6518_v55  ;;  %v3191_v3 = vsel %vm1859_vm4, %v3185_v46, %v3190_v49  ;;  %v3742_v24 = vrot.slane %v3550_v23, 2  ;;  %v935_v19 = vmin.f32 %v827_v7, 6.0  ;;  %v829_v27 = vmax.f32 %v610_v12, 0.0  ;;  %v612_v36 = vpop.f32.mrb[35].mxu0 }
 0x136   : > { %v3408_v30 = vadd.f32 %v3186_v15, %v2850_v6  ;;  %v3410_v0 = vadd.f32 %v3191_v3, %v2852_v2  ;;  %v936_v14 = vmin.f32 %v828_v37, 6.0  ;;  %v3743_v42 = vrot.slane %v3552_v25, 2 }
 0x137   : > { %v3748_v53 = vrot.slane %v3554_v45, 2  ;;  %v4111_v5 = vunpack.c.l.bf16 %v7203_v20  ;;  %v937_v62 = vmin.f32 %v829_v27, 6.0  ;;  %v4315_v35 = vunpack.c.l.bf16 %v7207_v50 }
 0x138   : > { %v4317_v38 = vunpack.c.l.bf16 %v7213_v11  ;;  %v4319_v47 = vunpack.c.l.bf16 %v7230_v48  ;;  %v6519_v40 = vpack.c.bf16 %v936_v14, %v935_v19  ;;  %v3744_v44 = vsel %vm2418_vm5, %v3742_v24, %v3743_v42 }
 0x139   : > { %v3749_v31 = vsel %vm2418_vm5, %v3743_v42, %v3748_v53  ;;  %v4884_v34 = vunpack.c.l.bf16 %v7217_v16  ;;  %v3966_v39 = vadd.f32 %v3744_v44, %v3408_v30  ;;  %v4507_v61 = vrot.slane %v4315_v35, 1  ;;  %v1584_v30 = vld [vmem:[#allocation2 + $0x28] sm:$0x11]  ;;  %v2149_v53 = vld [vmem:[#allocation2 + $0x18] sm:$0xee] }
 0x13a   : > { %v3968_v52 = vadd.f32 %v3749_v31, %v3410_v0  ;;  %v4508_v60 = vrot.slane %v4317_v38, 1  ;;  %1390 = vst.msk [vmem:[#allocation2 + $0x80] sm:$0xff] %vm7046_vm3, %v6519_v40  ;;  %v4513_v20 = vrot.slane %v4319_v47, 1  ;;  %v4886_v50 = vunpack.c.l.bf16 %v7222_v43  ;;  %v616_v13 = vpop.f32.mrb[36].mxu0 }
 0x13b   : > { %v4888_v11 = vunpack.c.l.bf16 %v7233_v59  ;;  %v5076_v48 = vrot.slane %v4884_v34, 2  ;;  %v4173_v1 = vadd.f32 %v4109_v32, %v3966_v39  ;;  %v830_v4 = vmax.f32 %v612_v36, 0.0  ;;  %v618_v16 = vpop.f32.mrb[37].mxu0 }
 0x13c   : > { %v4175_v29 = vadd.f32 %v4111_v5, %v3968_v52  ;;  %v4509_v54 = vsel %vm1859_vm4, %v4507_v61, %v4508_v60  ;;  %v4514_v6 = vsel %vm1859_vm4, %v4508_v60, %v4513_v20  ;;  %v5077_v2 = vrot.slane %v4886_v50, 2  ;;  %v620_v26 = vpop.f32.mrb[38].mxu0 }
 0x13d   : > { %v5082_v33 = vrot.slane %v4888_v11, 2  ;;  %v831_v55 = vmax.f32 %v616_v13, 0.0  ;;  %v4731_v46 = vadd.f32 %v4509_v54, %v4173_v1  ;;  %v938_v23 = vmin.f32 %v830_v4, 6.0  ;;  %v622_v7 = vpop.f32.mrb[39].mxu0 }
 0x13e   : > { %v4733_v49 = vadd.f32 %v4514_v6, %v4175_v29  ;;  %v832_v43 = vmax.f32 %v618_v16, 0.0  ;;  %v5078_v59 = vsel %vm2418_vm5, %v5076_v48, %v5077_v2  ;;  %v833_v45 = vmax.f32 %v620_v26, 0.0 }
 0x13f   : > { %v5083_v8 = vsel %vm2418_vm5, %v5077_v2, %v5082_v33  ;;  %v939_v25 = vmin.f32 %v831_v55, 6.0  ;;  %v5300_v32 = vadd.f32 %v5078_v59, %v4731_v46  ;;  %v6520_v12 = vpack.c.bf16 %v938_v23, %v937_v62  ;;  %v2915_v33 = vld [vmem:[#allocation2 + $0x40] sm:$0x11] }
 0x140   : > { %v5302_v37 = vadd.f32 %v5083_v8, %v4733_v49  ;;  %v940_v15 = vmin.f32 %v832_v43, 6.0  ;;  %v941_v3 = vmin.f32 %v833_v45, 6.0  ;;  %v834_v24 = vmax.f32 %v622_v7, 0.0  ;;  %v3473_v43 = vld [vmem:[#allocation2 + $0x30] sm:$0xee] }
 0x141   : > { %v7295_v19 = vmul.bf16 %v7050_v17, %v7125_v41  ;;  %v7299_v27 = vmul.bf16 %v7050_v17, %v7145_v18  ;;  %v5364_v0 = vmax.f32 %v5300_v32, 0.0  ;;  %1391 = vst.msk [vmem:[#allocation2 + $0x88] sm:$0xff] %vm7046_vm3, %v6520_v12  ;;  %v7305_v42 = vmul.bf16 %v7054_v21, %v7125_v41 }
 0x142   : > { %v5366_v36 = vmax.f32 %v5302_v37, 0.0  ;;  %v6521_v14 = vpack.c.bf16 %v940_v15, %v939_v25  ;;  %v942_v5 = vmin.f32 %v834_v24, 6.0  ;;  %v7311_v38 = vmul.bf16 %v7054_v21, %v7145_v18  ;;  %v7313_v47 = vpop.f32.mrb[40].mxu0 }
 0x143   : > { %v1524_v62 = vunpack.c.h.bf16 %v7295_v19  ;;  %v1526_v35 = vunpack.c.h.bf16 %v7299_v27  ;;  %v5428_v40 = vmin.f32 %v5364_v0, 6.0  ;;  %v7318_v41 = vmul.bf16 %v7054_v21, %v1584_v30  ;;  %v7321_v34 = vpop.f32.mrb[41].mxu0 }
 0x144   : > { %v5430_v44 = vmin.f32 %v5366_v36, 6.0  ;;  %1392 = vst.msk [vmem:[#allocation2 + $0x90] sm:$0xff] %vm7046_vm3, %v6521_v14  ;;  %v1674_v31 = vunpack.c.h.bf16 %v7305_v42  ;;  %v6522_v39 = vpack.c.bf16 %v942_v5, %v941_v3  ;;  %v1676_v52 = vunpack.c.h.bf16 %v7311_v38  ;;  %v7331_v20 = vpop.f32.mrb[42].mxu0 }
 0x145   : > { %v7325_v61 = vmul.bf16 %v7056_v22, %v2149_v53  ;;  %v7329_v60 = vmul.bf16 %v7056_v22, %v7145_v18  ;;  %v1678_v11 = vunpack.c.h.bf16 %v7318_v41  ;;  %v7335_v13 = vmul.bf16 %v7056_v22, %v1584_v30  ;;  %v7337_v1 = vpop.f32.mrb[43].mxu0 }
 0x146   : > { %v5492_v50 = vpack.c.bf16 %v5430_v44, %v5428_v40  ;;  %v1873_v48 = vrot.slane %v1674_v31, 1  ;;  %1393 = vst.msk [vmem:[#allocation2 + $0x98] sm:$0xff] %vm7046_vm3, %v6522_v39  ;;  %v1874_v29 = vrot.slane %v1676_v52, 1  ;;  %v7345_v4 = vmul.bf16 %v7072_v56, %v7180_v28  ;;  %v7385_v40 = vld [vmem:[#allocation2 + $0x50] sm:$0xff] }
 0x147   : > { %v2233_v54 = vunpack.c.h.bf16 %v7325_v61  ;;  %v2235_v18 = vunpack.c.h.bf16 %v7329_v60  ;;  %v1878_v16 = vrot.slane %v1678_v11, 1  ;;  %v2237_v6 = vunpack.c.h.bf16 %v7335_v13 }
 0x148   : > { %5702 = vmatmul.mubr.bf16.vlgmr.msra.gmra.mrb[0].mxu1 %v5492_v50  ;;  %v7350_v2 = vmul.bf16 %v7072_v56, %v7193_v9  ;;  %v7354_v55 = vmul.bf16 %v7074_v57, %v7180_v28  ;;  %v1875_v26 = vsel %vm1859_vm4, %v1873_v48, %v1874_v29  ;;  %v2791_v23 = vunpack.c.h.bf16 %v7345_v4 }
 0x149   : > { %v2432_v46 = vrot.slane %v2233_v54, 2  ;;  %v2433_v49 = vrot.slane %v2235_v18, 2  ;;  %v1879_v7 = vsel %vm1859_vm4, %v1874_v29, %v1878_v16  ;;  %v2089_v59 = vadd.f32 %v1875_v26, %v1524_v62 }
 0x14a   : > { %v2437_v8 = vrot.slane %v2237_v6, 2  ;;  %v2793_v25 = vunpack.c.h.bf16 %v7350_v2  ;;  %v2091_v45 = vadd.f32 %v1879_v7, %v1526_v35  ;;  %v7363_v37 = vmul.bf16 %v7074_v57, %v7193_v9  ;;  %v7368_v15 = vpop.f32.mrb[44].mxu0  ;;  %v7383_v35 = vld [vmem:[#allocation2 + $0x48] sm:$0xff] }
 0x14b   : > { %v2434_v32 = vsel %vm2418_vm5, %v2432_v46, %v2433_v49  ;;  %v7366_v12 = vmul.bf16 %v7074_v57, %v2915_v33  ;;  %v2999_v30 = vunpack.c.h.bf16 %v7354_v55  ;;  %v7373_v0 = vmul.bf16 %v7076_v51, %v3473_v43  ;;  %v7375_v36 = vpop.f32.mrb[45].mxu0  ;;  %v4238_v46 = vld [vmem:[#allocation2 + $0x58] sm:$0x11] }
 0x14c   : > { %v2438_v3 = vsel %vm2418_vm5, %v2433_v49, %v2437_v8  ;;  %v2648_v24 = vadd.f32 %v2434_v32, %v2089_v59  ;;  %v3001_v53 = vunpack.c.h.bf16 %v7363_v37  ;;  %v7381_v62 = vmul.bf16 %v7076_v51, %v7193_v9  ;;  %v7387_v44 = vpop.f32.mrb[46].mxu0  ;;  %v4796_v59 = vld [vmem:[#allocation2 + $0x48] sm:$0xee] }
 0x14d   : > { %v2650_v14 = vadd.f32 %v2438_v3, %v2091_v45  ;;  %v3003_v5 = vunpack.c.h.bf16 %v7366_v12  ;;  %10299 = vst [vmem:[#allocation7_spill] sm:$0xff] %v7387_v44  ;;  %v3197_v39 = vrot.slane %v2999_v30, 1  ;;  %v7390_v52 = vmul.bf16 %v7076_v51, %v2915_v33  ;;  %v7393_v11 = vpop.f32.mrb[47].mxu0 }
 0x14e   : > { %v2855_v31 = vadd.f32 %v2791_v23, %v2648_v24  ;;  %v3557_v50 = vunpack.c.h.bf16 %v7373_v0  ;;  %10300 = vst [vmem:[#allocation8_spill] sm:$0xff] %v7393_v11  ;;  %v3198_v29 = vrot.slane %v3001_v53, 1  ;;  %v3559_v18 = vunpack.c.h.bf16 %v7381_v62 }
 0x14f   : > { %v2857_v48 = vadd.f32 %v2793_v25, %v2650_v14  ;;  %v3202_v54 = vrot.slane %v3003_v5, 1  ;;  %v3561_v16 = vunpack.c.h.bf16 %v7390_v52  ;;  %v7399_v26 = vmul.bf16 %v7086_v58, %v7383_v35 }
 0x150   : > { %v3755_v6 = vrot.slane %v3557_v50, 2  ;;  %v7403_v33 = vmul.bf16 %v7086_v58, %v7385_v40  ;;  %v3199_v49 = vsel %vm1859_vm4, %v3197_v39, %v3198_v29  ;;  %v3756_v43 = vrot.slane %v3559_v18, 2  ;;  %v10302_v50 = vld [vmem:[#allocation6_spill] sm:$0xff] }
 0x151   : > { %v3203_v23 = vsel %vm1859_vm4, %v3198_v29, %v3202_v54  ;;  %v7409_v7 = vmul.bf16 %v7091_v63, %v7383_v35  ;;  %v3413_v8 = vadd.f32 %v3199_v49, %v2855_v31  ;;  %v3760_v45 = vrot.slane %v3561_v16, 2 }
 0x152   : > { %v3415_v25 = vadd.f32 %v3203_v23, %v2857_v48  ;;  %v4114_v32 = vunpack.c.h.bf16 %v7399_v26  ;;  %v3757_v3 = vsel %vm2418_vm5, %v3755_v6, %v3756_v43  ;;  %v4116_v24 = vunpack.c.h.bf16 %v7403_v33  ;;  %v7421_v53 = vpop.f32.mrb[48].mxu0 }
 0x153   : > { %v7416_v30 = vmul.bf16 %v7091_v63, %v7385_v40  ;;  %v7419_v14 = vmul.bf16 %v7091_v63, %v4238_v46  ;;  %10301 = vst [vmem:[#allocation9_spill] sm:$0xff] %v7421_v53  ;;  %v3761_v5 = vsel %vm2418_vm5, %v3756_v43, %v3760_v45  ;;  %v3971_v31 = vadd.f32 %v3757_v3, %v3413_v8  ;;  %v7428_v29 = vpop.f32.mrb[49].mxu0 }
 0x154   : > { %v4322_v39 = vunpack.c.h.bf16 %v7409_v7  ;;  %v7426_v48 = vmul.bf16 %v10302_v50, %v4796_v59  ;;  %10303 = vst [vmem:[#allocation10_spill] sm:$0xff] %v7428_v29  ;;  %v3973_v54 = vadd.f32 %v3761_v5, %v3415_v25  ;;  %v7434_v6 = vmul.bf16 %v10302_v50, %v7385_v40  ;;  %v7436_v49 = vpop.f32.mrb[50].mxu0 }
 0x155   : > { %v4324_v18 = vunpack.c.h.bf16 %v7416_v30  ;;  %v4326_v16 = vunpack.c.h.bf16 %v7419_v14  ;;  %10304 = vst [vmem:[#allocation11_spill] sm:$0xff] %v7436_v49  ;;  %v4178_v23 = vadd.f32 %v4114_v32, %v3971_v31  ;;  %v7439_v8 = vmul.bf16 %v10302_v50, %v4238_v46  ;;  %v7442_v45 = vpop.f32.mrb[51].mxu0 }
 0x156   : > { %v4520_v43 = vrot.slane %v4322_v39, 1  ;;  %v4891_v59 = vunpack.c.h.bf16 %v7426_v48  ;;  %10305 = vst [vmem:[#allocation12_spill] sm:$0xff] %v7442_v45  ;;  %v4180_v25 = vadd.f32 %v4116_v24, %v3973_v54  ;;  %v4893_v29 = vunpack.c.h.bf16 %v7434_v6 }
 0x157   : > { %v4521_v3 = vrot.slane %v4324_v18, 1  ;;  %v4525_v5 = vrot.slane %v4326_v16, 1  ;;  %v4895_v53 = vunpack.c.h.bf16 %v7439_v8  ;;  %v1523_v44 = vunpack.c.l.bf16 %v7295_v19 }
 0x158   : > { %v5089_v11 = vrot.slane %v4891_v59, 2  ;;  %v1525_v32 = vunpack.c.l.bf16 %v7299_v27  ;;  %v5090_v39 = vrot.slane %v4893_v29, 2  ;;  %v1673_v49 = vunpack.c.l.bf16 %v7305_v42 }
 0x159   : > { %v4522_v31 = vsel %vm1859_vm4, %v4520_v43, %v4521_v3  ;;  %v4526_v46 = vsel %vm1859_vm4, %v4521_v3, %v4525_v5  ;;  %v5094_v54 = vrot.slane %v4895_v53, 2  ;;  %v1675_v18 = vunpack.c.l.bf16 %v7311_v38 }
 0x15a   : > { %v4736_v45 = vadd.f32 %v4522_v31, %v4178_v23  ;;  %v4738_v24 = vadd.f32 %v4526_v46, %v4180_v25  ;;  %v5091_v16 = vsel %vm2418_vm5, %v5089_v11, %v5090_v39  ;;  %v1677_v59 = vunpack.c.l.bf16 %v7318_v41  ;;  %v7455_v27 = vpop.f32.mrb[52].mxu0 }
 0x15b   : > { %v1870_v50 = vrot.slane %v1673_v49, 1  ;;  %v2232_v19 = vunpack.c.l.bf16 %v7325_v61  ;;  %v5095_v43 = vsel %vm2418_vm5, %v5090_v39, %v5094_v54  ;;  %v1871_v29 = vrot.slane %v1675_v18, 1  ;;  %v7459_v23 = vpop.f32.mrb[53].mxu0 }
 0x15c   : > { %v5305_v3 = vadd.f32 %v5091_v16, %v4736_v45  ;;  %v2234_v42 = vunpack.c.l.bf16 %v7329_v60  ;;  %v5307_v53 = vadd.f32 %v5095_v43, %v4738_v24  ;;  %v1876_v25 = vrot.slane %v1677_v59, 1  ;;  %v7462_v5 = vpop.f32.mrb[54].mxu0 }
 0x15d   : > { %v2236_v38 = vunpack.c.l.bf16 %v7335_v13  ;;  %v2429_v11 = vrot.slane %v2232_v19, 2  ;;  %v1872_v61 = vsel %vm1859_vm4, %v1870_v50, %v1871_v29  ;;  %v2790_v31 = vunpack.c.l.bf16 %v7345_v4  ;;  %v7466_v46 = vpop.f32.mrb[55].mxu0 }
 0x15e   : > { %v5369_v41 = vmax.f32 %v5305_v3, 0.0  ;;  %v2430_v49 = vrot.slane %v2234_v42, 2  ;;  %10306 = vst [vmem:[#allocation13_spill] sm:$0xff] %v7466_v46  ;;  %v5371_v45 = vmax.f32 %v5307_v53, 0.0  ;;  %v1877_v60 = vsel %vm1859_vm4, %v1871_v29, %v1876_v25 }
 0x15f   : > { %v2088_v39 = vadd.f32 %v1872_v61, %v1523_v44  ;;  %v2435_v54 = vrot.slane %v2236_v38, 2  ;;  %v2090_v18 = vadd.f32 %v1877_v60, %v1525_v32  ;;  %v2792_v16 = vunpack.c.l.bf16 %v7350_v2 }
 0x160   : > { %v5433_v24 = vmin.f32 %v5369_v41, 6.0  ;;  %v2431_v13 = vsel %vm2418_vm5, %v2429_v11, %v2430_v49  ;;  %v5435_v59 = vmin.f32 %v5371_v45, 6.0  ;;  %v2998_v43 = vunpack.c.l.bf16 %v7354_v55 }
 0x161   : > { %v2436_v19 = vsel %vm2418_vm5, %v2430_v49, %v2435_v54  ;;  %v2647_v50 = vadd.f32 %v2431_v13, %v2088_v39  ;;  %v3000_v3 = vunpack.c.l.bf16 %v7363_v37  ;;  %v3002_v42 = vunpack.c.l.bf16 %v7366_v12 }
 0x162   : > { %v2649_v4 = vadd.f32 %v2436_v19, %v2090_v18  ;;  %v3556_v44 = vunpack.c.l.bf16 %v7373_v0  ;;  %v5495_v29 = vpack.c.bf16 %v5435_v59, %v5433_v24  ;;  %v3194_v32 = vrot.slane %v2998_v43, 1  ;;  %v7477_v38 = vpop.f32.mrb[56].mxu0 }
 0x163   : > { %v2854_v53 = vadd.f32 %v2790_v31, %v2647_v50  ;;  %v3558_v25 = vunpack.c.l.bf16 %v7381_v62  ;;  %10307 = vst [vmem:[#allocation14_spill] sm:$0xff] %v7477_v38  ;;  %v3195_v11 = vrot.slane %v3000_v3, 1  ;;  %v3200_v41 = vrot.slane %v3002_v42, 1  ;;  %v7480_v55 = vpop.f32.mrb[57].mxu0 }
 0x164   : > { %v2856_v2 = vadd.f32 %v2792_v16, %v2649_v4  ;;  %v3560_v61 = vunpack.c.l.bf16 %v7390_v52  ;;  %10308 = vst [vmem:[#allocation15_spill] sm:$0xff] %v7480_v55  ;;  %6451 = vmatprep.mubr.msk.bf16.mxu1 %vm5620_vm6, %v5495_v29  ;;  %v3752_v37 = vrot.slane %v3556_v44, 2  ;;  %v4113_v0 = vunpack.c.l.bf16 %v7399_v26  ;;  %v10311_v55 = vld [vmem:[#allocation7_spill] sm:$0xff] }
 0x165   : > { %v3753_v12 = vrot.slane %v3558_v25, 2  ;;  %v4115_v49 = vunpack.c.l.bf16 %v7403_v33  ;;  %v3196_v31 = vsel %vm1859_vm4, %v3194_v32, %v3195_v11  ;;  %v3201_v62 = vsel %vm1859_vm4, %v3195_v11, %v3200_v41 }
 0x166   : > { %v3758_v45 = vrot.slane %v3560_v61, 2  ;;  %v4321_v60 = vunpack.c.l.bf16 %v7409_v7  ;;  %v3412_v39 = vadd.f32 %v3196_v31, %v2854_v53  ;;  %v3414_v54 = vadd.f32 %v3201_v62, %v2856_v2 }
 0x167   : > { %v3754_v52 = vsel %vm2418_vm5, %v3752_v37, %v3753_v12  ;;  %v4323_v24 = vunpack.c.l.bf16 %v7416_v30  ;;  %v4325_v13 = vunpack.c.l.bf16 %v7419_v14  ;;  %v4890_v33 = vunpack.c.l.bf16 %v7426_v48 }
 0x168   : > { %v3759_v18 = vsel %vm2418_vm5, %v3753_v12, %v3758_v45  ;;  %v4517_v26 = vrot.slane %v4321_v60, 1  ;;  %v3970_v16 = vadd.f32 %v3754_v52, %v3412_v39  ;;  %v4892_v50 = vunpack.c.l.bf16 %v7434_v6 }
 0x169   : > { %v3972_v59 = vadd.f32 %v3759_v18, %v3414_v54  ;;  %v4518_v19 = vrot.slane %v4323_v24, 1  ;;  %v4523_v43 = vrot.slane %v4325_v13, 1  ;;  %v4894_v7 = vunpack.c.l.bf16 %v7439_v8  ;;  %v7524_v13 = vpop.f32.mrb[58].mxu0 }
 0x16a   : > { %v5086_v4 = vrot.slane %v4890_v33, 2  ;;  %v835_v3 = vmax.f32 %v7313_v47, 0.0  ;;  %v4177_v42 = vadd.f32 %v4113_v0, %v3970_v16  ;;  %v5087_v29 = vrot.slane %v4892_v50, 2  ;;  %10309 = vst [vmem:[#allocation16_spill] sm:$0xff] %v7524_v13 }
 0x16b   : > { %v4179_v30 = vadd.f32 %v4115_v49, %v3972_v59  ;;  %v4519_v44 = vsel %vm1859_vm4, %v4517_v26, %v4518_v19  ;;  %v4524_v14 = vsel %vm1859_vm4, %v4518_v19, %v4523_v43  ;;  %v5092_v53 = vrot.slane %v4894_v7, 2 }
 0x16c   : > { %v943_v48 = vmin.f32 %v835_v3, 6.0  ;;  %v836_v32 = vmax.f32 %v7321_v34, 0.0  ;;  %v4735_v25 = vadd.f32 %v4519_v44, %v4177_v42  ;;  %v5088_v6 = vsel %vm2418_vm5, %v5086_v4, %v5087_v29 }
 0x16d   : > { %v4737_v2 = vadd.f32 %v4524_v14, %v4179_v30  ;;  %v837_v8 = vmax.f32 %v7331_v20, 0.0  ;;  %v5093_v11 = vsel %vm2418_vm5, %v5087_v29, %v5092_v53  ;;  %v838_v41 = vmax.f32 %v7337_v1, 0.0  ;;  %v2150_v20 = vld [vmem:[#allocation2 + $0x30] sm:$0xee] }
 0x16e   : > { %v944_v47 = vmin.f32 %v836_v32, 6.0  ;;  %v839_v61 = vmax.f32 %v7368_v15, 0.0  ;;  %v5304_v37 = vadd.f32 %v5088_v6, %v4735_v25  ;;  %v840_v49 = vmax.f32 %v7375_v36, 0.0  ;;  %v1585_v15 = vld [vmem:[#allocation2 + $0x40] sm:$0x11] }
 0x16f   : > { %v5306_v12 = vadd.f32 %v5093_v11, %v4737_v2  ;;  %v945_v0 = vmin.f32 %v837_v8, 6.0  ;;  %v946_v34 = vmin.f32 %v838_v41, 6.0  ;;  %v7507_v45 = vmul.bf16 %v7050_v17, %v7180_v28  ;;  %v2916_v25 = vld [vmem:[#allocation2 + $0x58] sm:$0x11] }
 0x170   : > { %v6523_v31 = vpack.c.bf16 %v944_v47, %v943_v48  ;;  %v947_v62 = vmin.f32 %v839_v61, 6.0  ;;  %v5368_v60 = vmax.f32 %v5304_v37, 0.0  ;;  %v948_v54 = vmin.f32 %v840_v49, 6.0  ;;  %v3474_v47 = vld [vmem:[#allocation2 + $0x48] sm:$0xee] }
 0x171   : > { %v5370_v39 = vmax.f32 %v5306_v12, 0.0  ;;  %v7511_v1 = vmul.bf16 %v7050_v17, %v7193_v9  ;;  %v6524_v36 = vpack.c.bf16 %v946_v34, %v945_v0  ;;  %v1528_v52 = vunpack.c.h.bf16 %v7507_v45 }
 0x172   : > { %1394 = vst.msk [vmem:[#allocation2 + $0xa0] sm:$0xff] %vm7046_vm3, %v6523_v31  ;;  %v7518_v24 = vmul.bf16 %v7054_v21, %v7180_v28  ;;  %v7522_v18 = vmul.bf16 %v7054_v21, %v7193_v9  ;;  %v5432_v26 = vmin.f32 %v5368_v60, 6.0  ;;  %v6525_v16 = vpack.c.bf16 %v948_v54, %v947_v62  ;;  %v7579_v54 = vld [vmem:[#allocation2 + $0x60] sm:$0xff] }
 0x173   : > { %v5434_v33 = vmin.f32 %v5370_v39, 6.0  ;;  %v1530_v59 = vunpack.c.h.bf16 %v7511_v1  ;;  %1395 = vst.msk [vmem:[#allocation2 + $0xa8] sm:$0xff] %vm7046_vm3, %v6524_v36  ;;  %v7530_v19 = vmul.bf16 %v7054_v21, %v1585_v15  ;;  %v7535_v43 = vmul.bf16 %v7056_v22, %v2150_v20 }
 0x174   : > { %v1680_v28 = vunpack.c.h.bf16 %v7518_v24  ;;  %v1682_v50 = vunpack.c.h.bf16 %v7522_v18  ;;  %1396 = vst.msk [vmem:[#allocation2 + $0xb0] sm:$0xff] %vm7046_vm3, %v6525_v16  ;;  %v7541_v4 = vmul.bf16 %v7056_v22, %v7193_v9  ;;  %v7544_v3 = vmul.bf16 %v7056_v22, %v1585_v15 }
 0x175   : > { %v5494_v7 = vpack.c.bf16 %v5434_v33, %v5432_v26  ;;  %v7548_v42 = vmul.bf16 %v7072_v56, %v7383_v35  ;;  %v1684_v30 = vunpack.c.h.bf16 %v7530_v19  ;;  %v2239_v14 = vunpack.c.h.bf16 %v7535_v43 }
 0x176   : > { %v1883_v44 = vrot.slane %v1680_v28, 1  ;;  %v1884_v29 = vrot.slane %v1682_v50, 1  ;;  %v2241_v53 = vunpack.c.h.bf16 %v7541_v4  ;;  %v2243_v48 = vunpack.c.h.bf16 %v7544_v3  ;;  %v7591_v50 = vld [vmem:[#allocation2 + $0x68] sm:$0xff] }
 0x177   : > { %5710 = vmatmul.mubr.bf16.gmra.mrb[4].mxu1 %v5494_v7  ;;  %v7556_v9 = vmul.bf16 %v7072_v56, %v7385_v40  ;;  %v2795_v32 = vunpack.c.h.bf16 %v7548_v42  ;;  %v1888_v6 = vrot.slane %v1684_v30, 1  ;;  %v2442_v8 = vrot.slane %v2239_v14, 2 }
 0x178   : > { %v1885_v2 = vsel %vm1859_vm4, %v1883_v44, %v1884_v29  ;;  %v7562_v11 = vmul.bf16 %v7074_v57, %v7383_v35  ;;  %v2443_v61 = vrot.slane %v2241_v53, 2  ;;  %v2447_v37 = vrot.slane %v2243_v48, 2 }
 0x179   : > { %v2093_v41 = vadd.f32 %v1885_v2, %v1528_v52  ;;  %v2797_v12 = vunpack.c.h.bf16 %v7556_v9  ;;  %v1889_v0 = vsel %vm1859_vm4, %v1884_v29, %v1888_v6  ;;  %v7568_v49 = vmul.bf16 %v7074_v57, %v7385_v40  ;;  %v4239_v6 = vld [vmem:[#allocation2 + $0x70] sm:$0x11] }
 0x17a   : > { %v7571_v31 = vmul.bf16 %v7074_v57, %v2916_v25  ;;  %v3005_v34 = vunpack.c.h.bf16 %v7562_v11  ;;  %v2095_v62 = vadd.f32 %v1889_v0, %v1530_v59  ;;  %v2444_v20 = vsel %vm2418_vm5, %v2442_v8, %v2443_v61 }
 0x17b   : > { %v2448_v60 = vsel %vm2418_vm5, %v2443_v61, %v2447_v37  ;;  %v7577_v39 = vmul.bf16 %v7076_v51, %v3474_v47  ;;  %v2652_v15 = vadd.f32 %v2444_v20, %v2093_v41  ;;  %v3007_v36 = vunpack.c.h.bf16 %v7568_v49  ;;  %v4797_v41 = vld [vmem:[#allocation2 + $0x60] sm:$0xee] }
 0x17c   : > { %v3009_v52 = vunpack.c.h.bf16 %v7571_v31  ;;  %v3207_v26 = vrot.slane %v3005_v34, 1  ;;  %v2654_v33 = vadd.f32 %v2448_v60, %v2095_v62  ;;  %v7585_v16 = vmul.bf16 %v7076_v51, %v7385_v40 }
 0x17d   : > { %v7588_v59 = vmul.bf16 %v7076_v51, %v2916_v25  ;;  %v3563_v28 = vunpack.c.h.bf16 %v7577_v39  ;;  %v2859_v7 = vadd.f32 %v2795_v32, %v2652_v15  ;;  %v3208_v30 = vrot.slane %v3007_v36, 1 }
 0x17e   : > { %v3212_v44 = vrot.slane %v3009_v52, 1  ;;  %v7595_v29 = vmul.bf16 %v7086_v58, %v7579_v54  ;;  %v2861_v14 = vadd.f32 %v2797_v12, %v2654_v33  ;;  %v3565_v53 = vunpack.c.h.bf16 %v7585_v16  ;;  %v10310_v52 = vld [vmem:[#allocation6_spill] sm:$0xff] }
 0x17f   : > { %v3567_v48 = vunpack.c.h.bf16 %v7588_v59  ;;  %v3765_v2 = vrot.slane %v3563_v28, 2  ;;  %v3209_v25 = vsel %vm1859_vm4, %v3207_v26, %v3208_v30  ;;  %v7603_v32 = vmul.bf16 %v7086_v58, %v7591_v50 }
 0x180   : > { %v3213_v8 = vsel %vm1859_vm4, %v3208_v30, %v3212_v44  ;;  %v4118_v47 = vunpack.c.h.bf16 %v7595_v29  ;;  %v3417_v61 = vadd.f32 %v3209_v25, %v2859_v7  ;;  %v3766_v12 = vrot.slane %v3565_v53, 2 }
 0x181   : > { %v3419_v37 = vadd.f32 %v3213_v8, %v2861_v14  ;;  %v3770_v0 = vrot.slane %v3567_v48, 2  ;;  %v4120_v34 = vunpack.c.h.bf16 %v7603_v32  ;;  %v7609_v62 = vmul.bf16 %v7091_v63, %v7579_v54 }
 0x182   : > { %v7613_v20 = vmul.bf16 %v7091_v63, %v7591_v50  ;;  %v7616_v60 = vmul.bf16 %v7091_v63, %v4239_v6  ;;  %v3767_v15 = vsel %vm2418_vm5, %v3765_v2, %v3766_v12  ;;  %v7621_v26 = vmul.bf16 %v10310_v52, %v4797_v41 }
 0x183   : > { %v3771_v36 = vsel %vm2418_vm5, %v3766_v12, %v3770_v0  ;;  %v7625_v33 = vmul.bf16 %v10310_v52, %v7591_v50  ;;  %v3975_v28 = vadd.f32 %v3767_v15, %v3417_v61  ;;  %v4328_v30 = vunpack.c.h.bf16 %v7609_v62  ;;  %v7635_v0 = vpop.f32.mrb[59].mxu0 }
 0x184   : > { %v3977_v7 = vadd.f32 %v3771_v36, %v3419_v37  ;;  %v4330_v44 = vunpack.c.h.bf16 %v7613_v20  ;;  %v4332_v14 = vunpack.c.h.bf16 %v7616_v60  ;;  %v7631_v53 = vmul.bf16 %v10310_v52, %v4239_v6  ;;  %v7638_v13 = vpop.f32.mrb[60].mxu0 }
 0x185   : > { %v4897_v48 = vunpack.c.h.bf16 %v7621_v26  ;;  %v4899_v2 = vunpack.c.h.bf16 %v7625_v33  ;;  %v4182_v25 = vadd.f32 %v4118_v47, %v3975_v28  ;;  %v4530_v41 = vrot.slane %v4328_v30, 1 }
 0x186   : > { %v4184_v8 = vadd.f32 %v4120_v34, %v3977_v7  ;;  %v4531_v12 = vrot.slane %v4330_v44, 1  ;;  %v4535_v61 = vrot.slane %v4332_v14, 1  ;;  %v4901_v37 = vunpack.c.h.bf16 %v7631_v53  ;;  %v7644_v34 = vpop.f32.mrb[61].mxu0 }
 0x187   : > { %v5099_v15 = vrot.slane %v4897_v48, 2  ;;  %v5100_v36 = vrot.slane %v4899_v2, 2  ;;  %v841_v38 = vmax.f32 %v10311_v55, 0.0  ;;  %v1527_v46 = vunpack.c.l.bf16 %v7507_v45  ;;  %10312 = vst [vmem:[#allocation6_spill] sm:$0xff] %v7644_v34  ;;  %v7648_v14 = vpop.f32.mrb[62].mxu0 }
 0x188   : > { %v4532_v6 = vsel %vm1859_vm4, %v4530_v41, %v4531_v12  ;;  %v1529_v47 = vunpack.c.l.bf16 %v7511_v1  ;;  %v4536_v28 = vsel %vm1859_vm4, %v4531_v12, %v4535_v61  ;;  %v5104_v44 = vrot.slane %v4901_v37, 2  ;;  %10313 = vst [vmem:[#allocation7_spill] sm:$0xff] %v7648_v14  ;;  %v7654_v45 = vpop.f32.mrb[63].mxu0 }
 0x189   : > { %v4740_v7 = vadd.f32 %v4532_v6, %v4182_v25  ;;  %v5101_v30 = vsel %vm2418_vm5, %v5099_v15, %v5100_v36  ;;  %v4742_v48 = vadd.f32 %v4536_v28, %v4184_v8  ;;  %v7650_v2 = vmin.f32 %v841_v38, 6.0  ;;  %10314 = vst [vmem:[#allocation17_spill] sm:$0xff] %v7654_v45 }
 0x18a   : > { %v1679_v41 = vunpack.c.l.bf16 %v7518_v24  ;;  %v1681_v55 = vunpack.c.l.bf16 %v7522_v18  ;;  %v5105_v1 = vsel %vm2418_vm5, %v5100_v36, %v5104_v44  ;;  %v1683_v12 = vunpack.c.l.bf16 %v7530_v19 }
 0x18b   : > { %v5309_v34 = vadd.f32 %v5101_v30, %v4740_v7  ;;  %v2238_v25 = vunpack.c.l.bf16 %v7535_v43  ;;  %v5311_v61 = vadd.f32 %v5105_v1, %v4742_v48  ;;  %v2240_v8 = vunpack.c.l.bf16 %v7541_v4 }
 0x18c   : > { %v1880_v37 = vrot.slane %v1679_v41, 1  ;;  %v1881_v15 = vrot.slane %v1681_v55, 1  ;;  %v1886_v6 = vrot.slane %v1683_v12, 1  ;;  %v2242_v24 = vunpack.c.l.bf16 %v7544_v3 }
 0x18d   : > { %v5373_v38 = vmax.f32 %v5309_v34, 0.0  ;;  %v2439_v28 = vrot.slane %v2238_v25, 2  ;;  %v5375_v18 = vmax.f32 %v5311_v61, 0.0  ;;  %v2440_v14 = vrot.slane %v2240_v8, 2 }
 0x18e   : > { %v1882_v45 = vsel %vm1859_vm4, %v1880_v37, %v1881_v15  ;;  %v2794_v36 = vunpack.c.l.bf16 %v7548_v42  ;;  %v1887_v19 = vsel %vm1859_vm4, %v1881_v15, %v1886_v6  ;;  %v2445_v30 = vrot.slane %v2242_v24, 2 }
 0x18f   : > { %v5437_v7 = vmin.f32 %v5373_v38, 6.0  ;;  %v2092_v43 = vadd.f32 %v1882_v45, %v1527_v46  ;;  %v5439_v44 = vmin.f32 %v5375_v18, 6.0  ;;  %v2094_v48 = vadd.f32 %v1887_v19, %v1529_v47 }
 0x190   : > { %v2441_v4 = vsel %vm2418_vm5, %v2439_v28, %v2440_v14  ;;  %v2796_v34 = vunpack.c.l.bf16 %v7556_v9  ;;  %v2446_v3 = vsel %vm2418_vm5, %v2440_v14, %v2445_v30  ;;  %v3004_v55 = vunpack.c.l.bf16 %v7562_v11 }
 0x191   : > { %v2651_v41 = vadd.f32 %v2441_v4, %v2092_v43  ;;  %v3006_v1 = vunpack.c.l.bf16 %v7568_v49  ;;  %v5497_v12 = vpack.c.bf16 %v5439_v44, %v5437_v7  ;;  %v2653_v42 = vadd.f32 %v2446_v3, %v2094_v48  ;;  %v10315_v3 = vld [vmem:[#allocation8_spill] sm:$0xff] }
 0x192   : > { %v3008_v25 = vunpack.c.l.bf16 %v7571_v31  ;;  %v3562_v46 = vunpack.c.l.bf16 %v7577_v39  ;;  %v3204_v61 = vrot.slane %v3004_v55, 1  ;;  %v3564_v37 = vunpack.c.l.bf16 %v7585_v16 }
 0x193   : > { %v2858_v45 = vadd.f32 %v2794_v36, %v2651_v41  ;;  %v3205_v47 = vrot.slane %v3006_v1, 1  ;;  %6452 = vmatprep.mubr.msk.bf16.mxu1 %vm5620_vm6, %v5497_v12  ;;  %v2860_v9 = vadd.f32 %v2796_v34, %v2653_v42  ;;  %v3566_v15 = vunpack.c.l.bf16 %v7588_v59 }
 0x194   : > { %v3210_v14 = vrot.slane %v3008_v25, 1  ;;  %v3762_v11 = vrot.slane %v3562_v46, 2  ;;  %v3763_v8 = vrot.slane %v3564_v37, 2  ;;  %v4117_v38 = vunpack.c.l.bf16 %v7595_v29  ;;  %v10316_v25 = vld [vmem:[#allocation9_spill] sm:$0xff] }
 0x195   : > { %v3206_v49 = vsel %vm1859_vm4, %v3204_v61, %v3205_v47  ;;  %v4119_v31 = vunpack.c.l.bf16 %v7603_v32  ;;  %v3768_v24 = vrot.slane %v3566_v15, 2  ;;  %v4327_v16 = vunpack.c.l.bf16 %v7609_v62  ;;  %v10317_v61 = vld [vmem:[#allocation10_spill] sm:$0xff] }
 0x196   : > { %v3211_v39 = vsel %vm1859_vm4, %v3205_v47, %v3210_v14  ;;  %v3416_v6 = vadd.f32 %v3206_v49, %v2858_v45  ;;  %v3764_v18 = vsel %vm2418_vm5, %v3762_v11, %v3763_v8  ;;  %v4329_v36 = vunpack.c.l.bf16 %v7613_v20 }
 0x197   : > { %v3418_v28 = vadd.f32 %v3211_v39, %v2860_v9  ;;  %v4331_v59 = vunpack.c.l.bf16 %v7616_v60  ;;  %v3769_v7 = vsel %vm2418_vm5, %v3763_v8, %v3768_v24  ;;  %v4527_v43 = vrot.slane %v4327_v16, 1 }
 0x198   : > { %v3974_v19 = vadd.f32 %v3764_v18, %v3416_v6  ;;  %v4896_v29 = vunpack.c.l.bf16 %v7621_v26  ;;  %v4528_v30 = vrot.slane %v4329_v36, 1  ;;  %v4898_v48 = vunpack.c.l.bf16 %v7625_v33  ;;  %v1586_v6 = vld [vmem:[#allocation2 + $0x58] sm:$0x11] }
 0x199   : > { %v3976_v32 = vadd.f32 %v3769_v7, %v3418_v28  ;;  %v4533_v44 = vrot.slane %v4331_v59, 1  ;;  %v4900_v62 = vunpack.c.l.bf16 %v7631_v53  ;;  %v842_v41 = vmax.f32 %v10315_v3, 0.0  ;;  %v10318_v53 = vld [vmem:[#allocation11_spill] sm:$0xff] }
 0x19a   : > { %v4181_v4 = vadd.f32 %v4117_v38, %v3974_v19  ;;  %v5096_v34 = vrot.slane %v4896_v29, 2  ;;  %v4529_v60 = vsel %vm1859_vm4, %v4527_v43, %v4528_v30  ;;  %v5097_v1 = vrot.slane %v4898_v48, 2  ;;  %v2151_v19 = vld [vmem:[#allocation2 + $0x48] sm:$0xee] }
 0x19b   : > { %v4183_v20 = vadd.f32 %v4119_v31, %v3976_v32  ;;  %v4534_v55 = vsel %vm1859_vm4, %v4528_v30, %v4533_v44  ;;  %v5102_v42 = vrot.slane %v4900_v62, 2  ;;  %v950_v26 = vmin.f32 %v842_v41, 6.0  ;;  %v10319_v31 = vld [vmem:[#allocation12_spill] sm:$0xff] }
 0x19c   : > { %v4739_v12 = vadd.f32 %v4529_v60, %v4181_v4  ;;  %v843_v46 = vmax.f32 %v10316_v25, 0.0  ;;  %v5098_v33 = vsel %vm2418_vm5, %v5096_v34, %v5097_v1  ;;  %v844_v47 = vmax.f32 %v10317_v61, 0.0 }
 0x19d   : > { %v4741_v45 = vadd.f32 %v4534_v55, %v4183_v20  ;;  %v845_v37 = vmax.f32 %v10318_v53, 0.0  ;;  %v5103_v9 = vsel %vm2418_vm5, %v5097_v1, %v5102_v42  ;;  %v6526_v15 = vpack.c.bf16 %v950_v26, %v7650_v2 }
 0x19e   : > { %v5308_v14 = vadd.f32 %v5098_v33, %v4739_v12  ;;  %v951_v11 = vmin.f32 %v843_v46, 6.0  ;;  %v952_v8 = vmin.f32 %v844_v47, 6.0  ;;  %v846_v39 = vmax.f32 %v10319_v31, 0.0  ;;  %v2917_v33 = vld [vmem:[#allocation2 + $0x70] sm:$0x11] }
 0x19f   : > { %v5310_v49 = vadd.f32 %v5103_v9, %v4741_v45  ;;  %v953_v38 = vmin.f32 %v845_v37, 6.0  ;;  %1397 = vst.msk [vmem:[#allocation2 + $0xb8] sm:$0xff] %vm7046_vm3, %v6526_v15  ;;  %v7700_v16 = vmul.bf16 %v7050_v17, %v7383_v35  ;;  %v7704_v28 = vmul.bf16 %v7050_v17, %v7385_v40  ;;  %v3475_v47 = vld [vmem:[#allocation2 + $0x60] sm:$0xee] }
 0x1a0   : > { %v5372_v24 = vmax.f32 %v5308_v14, 0.0  ;;  %v7708_v2 = vmul.bf16 %v7054_v21, %v7383_v35  ;;  %v6527_v36 = vpack.c.bf16 %v952_v8, %v951_v11  ;;  %v954_v59 = vmin.f32 %v846_v39, 6.0 }
 0x1a1   : > { %v5374_v18 = vmax.f32 %v5310_v49, 0.0  ;;  %v7712_v7 = vmul.bf16 %v7054_v21, %v7385_v40  ;;  %v1532_v29 = vunpack.c.h.bf16 %v7700_v16  ;;  %v1534_v32 = vunpack.c.h.bf16 %v7704_v28 }
 0x1a2   : > { %v5436_v43 = vmin.f32 %v5372_v24, 6.0  ;;  %v7717_v30 = vmul.bf16 %v7054_v21, %v1586_v6  ;;  %1398 = vst.msk [vmem:[#allocation2 + $0xc0] sm:$0xff] %vm7046_vm3, %v6527_v36  ;;  %v6528_v35 = vpack.c.bf16 %v954_v59, %v953_v38  ;;  %v1686_v48 = vunpack.c.h.bf16 %v7708_v2 }
 0x1a3   : > { %v5438_v44 = vmin.f32 %v5374_v18, 6.0  ;;  %v1688_v4 = vunpack.c.h.bf16 %v7712_v7  ;;  %v7725_v34 = vmul.bf16 %v7056_v22, %v2151_v19  ;;  %v7729_v3 = vmul.bf16 %v7056_v22, %v7385_v40  ;;  %v7773_v19 = vld [vmem:[#allocation2 + $0x78] sm:$0xff] }
 0x1a4   : > { %v1690_v62 = vunpack.c.h.bf16 %v7717_v30  ;;  %v7732_v41 = vmul.bf16 %v7056_v22, %v1586_v6  ;;  %1399 = vst.msk [vmem:[#allocation2 + $0xc8] sm:$0xff] %vm7046_vm3, %v6528_v35  ;;  %v1893_v60 = vrot.slane %v1686_v48, 1  ;;  %v7738_v1 = vmul.bf16 %v7072_v56, %v7579_v54  ;;  %v7779_v35 = vld [vmem:[#allocation2 + $0x80] sm:$0xff] }
 0x1a5   : > { %v5496_v20 = vpack.c.bf16 %v5438_v44, %v5436_v43  ;;  %v1894_v55 = vrot.slane %v1688_v4, 1  ;;  %v2245_v42 = vunpack.c.h.bf16 %v7725_v34  ;;  %v2247_v26 = vunpack.c.h.bf16 %v7729_v3 }
 0x1a6   : > { %v1898_v12 = vrot.slane %v1690_v62, 1  ;;  %v2249_v40 = vunpack.c.h.bf16 %v7732_v41  ;;  %v7746_v46 = vmul.bf16 %v7072_v56, %v7591_v50  ;;  %v2799_v45 = vunpack.c.h.bf16 %v7738_v1 }
 0x1a7   : > { %5718 = vmatmul.mubr.bf16.gmra.mrb[8].mxu1 %v5496_v20  ;;  %v1895_v25 = vsel %vm1859_vm4, %v1893_v60, %v1894_v55  ;;  %v7751_v61 = vmul.bf16 %v7074_v57, %v7579_v54  ;;  %v2452_v9 = vrot.slane %v2245_v42, 2  ;;  %v2453_v14 = vrot.slane %v2247_v26, 2 }
 0x1a8   : > { %v1899_v53 = vsel %vm1859_vm4, %v1894_v55, %v1898_v12  ;;  %v2097_v37 = vadd.f32 %v1895_v25, %v1532_v29  ;;  %v2457_v11 = vrot.slane %v2249_v40, 2  ;;  %v2801_v49 = vunpack.c.h.bf16 %v7746_v46 }
 0x1a9   : > { %v2099_v15 = vadd.f32 %v1899_v53, %v1534_v32  ;;  %v7757_v8 = vmul.bf16 %v7074_v57, %v7591_v50  ;;  %v2454_v38 = vsel %vm2418_vm5, %v2452_v9, %v2453_v14  ;;  %v7761_v31 = vmul.bf16 %v7074_v57, %v2917_v33 }
 0x1aa   : > { %v3011_v39 = vunpack.c.h.bf16 %v7751_v61  ;;  %v7765_v6 = vmul.bf16 %v7076_v51, %v3475_v47  ;;  %v2458_v24 = vsel %vm2418_vm5, %v2453_v14, %v2457_v11  ;;  %v2656_v18 = vadd.f32 %v2454_v38, %v2097_v37  ;;  %v4798_v14 = vld [vmem:[#allocation2 + $0x78] sm:$0xee] }
 0x1ab   : > { %v3013_v36 = vunpack.c.h.bf16 %v7757_v8  ;;  %v7771_v59 = vmul.bf16 %v7076_v51, %v7591_v50  ;;  %v2658_v43 = vadd.f32 %v2458_v24, %v2099_v15  ;;  %v3015_v29 = vunpack.c.h.bf16 %v7761_v31 }
 0x1ac   : > { %v3217_v32 = vrot.slane %v3011_v39, 1  ;;  %v7777_v44 = vmul.bf16 %v7076_v51, %v2917_v33  ;;  %v2863_v48 = vadd.f32 %v2799_v45, %v2656_v18  ;;  %v3569_v62 = vunpack.c.h.bf16 %v7765_v6  ;;  %v4240_v33 = vld [vmem:[#allocation2 + $0x88] sm:$0x11] }
 0x1ad   : > { %v3218_v4 = vrot.slane %v3013_v36, 1  ;;  %v3571_v20 = vunpack.c.h.bf16 %v7771_v59  ;;  %v2865_v60 = vadd.f32 %v2801_v49, %v2658_v43  ;;  %v3222_v55 = vrot.slane %v3015_v29, 1 }
 0x1ae   : > { %v3573_v12 = vunpack.c.h.bf16 %v7777_v44  ;;  %v7786_v42 = vmul.bf16 %v7086_v58, %v7773_v19  ;;  %v3775_v40 = vrot.slane %v3569_v62, 2  ;;  %v7791_v45 = vmul.bf16 %v7086_v58, %v7779_v35 }
 0x1af   : > { %v3219_v26 = vsel %vm1859_vm4, %v3217_v32, %v3218_v4  ;;  %v3776_v25 = vrot.slane %v3571_v20, 2  ;;  %v3223_v47 = vsel %vm1859_vm4, %v3218_v4, %v3222_v55  ;;  %v7799_v38 = vmul.bf16 %v7091_v63, %v7773_v19  ;;  %v7822_v55 = vpop.f32.mrb[64].mxu0 }
 0x1b0   : > { %v3421_v53 = vadd.f32 %v3219_v26, %v2863_v48  ;;  %v3780_v37 = vrot.slane %v3573_v12, 2  ;;  %v4122_v9 = vunpack.c.h.bf16 %v7786_v42  ;;  %v3423_v15 = vadd.f32 %v3223_v47, %v2865_v60  ;;  %10320 = vst [vmem:[#allocation8_spill] sm:$0xff] %v7822_v55  ;;  %v7826_v47 = vpop.f32.mrb[65].mxu0 }
 0x1b1   : > { %v3777_v11 = vsel %vm2418_vm5, %v3775_v40, %v3776_v25  ;;  %v4124_v49 = vunpack.c.h.bf16 %v7791_v45  ;;  %v7804_v18 = vmul.bf16 %v7091_v63, %v7779_v35  ;;  %v7807_v36 = vmul.bf16 %v7091_v63, %v4240_v33  ;;  %10321 = vst [vmem:[#allocation9_spill] sm:$0xff] %v7826_v47 }
 0x1b2   : > { %v3781_v39 = vsel %vm2418_vm5, %v3776_v25, %v3780_v37  ;;  %v3979_v24 = vadd.f32 %v3777_v11, %v3421_v53  ;;  %v4334_v29 = vunpack.c.h.bf16 %v7799_v38  ;;  %v7811_v32 = vmul.bf16 %v10310_v52, %v4798_v14 }
 0x1b3   : > { %v3981_v43 = vadd.f32 %v3781_v39, %v3423_v15  ;;  %v7815_v48 = vmul.bf16 %v10310_v52, %v7779_v35  ;;  %v4336_v62 = vunpack.c.h.bf16 %v7804_v18  ;;  %v4338_v20 = vunpack.c.h.bf16 %v7807_v36  ;;  %v7830_v15 = vpop.f32.mrb[66].mxu0 }
 0x1b4   : > { %v4186_v4 = vadd.f32 %v4122_v9, %v3979_v24  ;;  %v7820_v60 = vmul.bf16 %v10310_v52, %v4240_v33  ;;  %v4540_v26 = vrot.slane %v4334_v29, 1  ;;  %v4903_v40 = vunpack.c.h.bf16 %v7811_v32  ;;  %10322 = vst [vmem:[#allocation10_spill] sm:$0xff] %v7830_v15  ;;  %v7834_v24 = vpop.f32.mrb[67].mxu0 }
 0x1b5   : > { %v4188_v12 = vadd.f32 %v4124_v49, %v3981_v43  ;;  %v4905_v25 = vunpack.c.h.bf16 %v7815_v48  ;;  %v4541_v53 = vrot.slane %v4336_v62, 1  ;;  %v4545_v37 = vrot.slane %v4338_v20, 1  ;;  %10323 = vst [vmem:[#allocation11_spill] sm:$0xff] %v7834_v24  ;;  %v7839_v47 = vpop.f32.mrb[68].mxu0 }
 0x1b6   : > { %v4907_v9 = vunpack.c.h.bf16 %v7820_v60  ;;  %v1531_v14 = vunpack.c.l.bf16 %v7700_v16  ;;  %v5109_v33 = vrot.slane %v4903_v40, 2  ;;  %v1533_v39 = vunpack.c.l.bf16 %v7704_v28  ;;  %v7843_v28 = vpop.f32.mrb[69].mxu0 }
 0x1b7   : > { %v5110_v11 = vrot.slane %v4905_v25, 2  ;;  %v1685_v49 = vunpack.c.l.bf16 %v7708_v2  ;;  %v4542_v43 = vsel %vm1859_vm4, %v4540_v26, %v4541_v53  ;;  %v4546_v29 = vsel %vm1859_vm4, %v4541_v53, %v4545_v37 }
 0x1b8   : > { %v5114_v62 = vrot.slane %v4907_v9, 2  ;;  %v1687_v20 = vunpack.c.l.bf16 %v7712_v7  ;;  %v4744_v16 = vadd.f32 %v4542_v43, %v4186_v4  ;;  %v4746_v55 = vadd.f32 %v4546_v29, %v4188_v12 }
 0x1b9   : > { %v5111_v40 = vsel %vm2418_vm5, %v5109_v33, %v5110_v11  ;;  %v1689_v25 = vunpack.c.l.bf16 %v7717_v30  ;;  %v1890_v24 = vrot.slane %v1685_v49, 1  ;;  %v2244_v26 = vunpack.c.l.bf16 %v7725_v34 }
 0x1ba   : > { %v5115_v2 = vsel %vm2418_vm5, %v5110_v11, %v5114_v62  ;;  %v1891_v15 = vrot.slane %v1687_v20, 1  ;;  %v5313_v53 = vadd.f32 %v5111_v40, %v4744_v16  ;;  %v2246_v7 = vunpack.c.l.bf16 %v7729_v3 }
 0x1bb   : > { %v5315_v37 = vadd.f32 %v5115_v2, %v4746_v55  ;;  %v1896_v9 = vrot.slane %v1689_v25, 1  ;;  %v2248_v12 = vunpack.c.l.bf16 %v7732_v41  ;;  %v2449_v33 = vrot.slane %v2244_v26, 2 }
 0x1bc   : > { %v1892_v4 = vsel %vm1859_vm4, %v1890_v24, %v1891_v15  ;;  %v2798_v30 = vunpack.c.l.bf16 %v7738_v1  ;;  %v5377_v43 = vmax.f32 %v5313_v53, 0.0  ;;  %v2450_v20 = vrot.slane %v2246_v7, 2 }
 0x1bd   : > { %v5379_v29 = vmax.f32 %v5315_v37, 0.0  ;;  %v1897_v11 = vsel %vm1859_vm4, %v1891_v15, %v1896_v9  ;;  %v2096_v49 = vadd.f32 %v1892_v4, %v1531_v14  ;;  %v2455_v34 = vrot.slane %v2248_v12, 2 }
 0x1be   : > { %v2098_v62 = vadd.f32 %v1897_v11, %v1533_v39  ;;  %v2800_v55 = vunpack.c.l.bf16 %v7746_v46  ;;  %v5441_v16 = vmin.f32 %v5377_v43, 6.0  ;;  %v3010_v3 = vunpack.c.l.bf16 %v7751_v61 }
 0x1bf   : > { %v5443_v40 = vmin.f32 %v5379_v29, 6.0  ;;  %v3012_v24 = vunpack.c.l.bf16 %v7757_v8  ;;  %v2451_v41 = vsel %vm2418_vm5, %v2449_v33, %v2450_v20  ;;  %v2456_v1 = vsel %vm2418_vm5, %v2450_v20, %v2455_v34 }
 0x1c0   : > { %v3014_v25 = vunpack.c.l.bf16 %v7761_v31  ;;  %v3568_v15 = vunpack.c.l.bf16 %v7765_v6  ;;  %v2655_v39 = vadd.f32 %v2451_v41, %v2096_v49  ;;  %v2657_v2 = vadd.f32 %v2456_v1, %v2098_v62 }
 0x1c1   : > { %v5499_v14 = vpack.c.bf16 %v5443_v40, %v5441_v16  ;;  %v3214_v26 = vrot.slane %v3010_v3, 1  ;;  %v3215_v53 = vrot.slane %v3012_v24, 1  ;;  %v3570_v37 = vunpack.c.l.bf16 %v7771_v59 }
 0x1c2   : > { %v3220_v46 = vrot.slane %v3014_v25, 1  ;;  %v3572_v61 = vunpack.c.l.bf16 %v7777_v44  ;;  %v2862_v8 = vadd.f32 %v2798_v30, %v2655_v39  ;;  %v2864_v9 = vadd.f32 %v2800_v55, %v2657_v2 }
 0x1c3   : > { %6453 = vmatprep.mubr.msk.bf16.mxu1 %vm5620_vm6, %v5499_v14  ;;  %v3772_v7 = vrot.slane %v3568_v15, 2  ;;  %v4121_v4 = vunpack.c.l.bf16 %v7786_v42  ;;  %v3216_v31 = vsel %vm1859_vm4, %v3214_v26, %v3215_v53  ;;  %v3773_v12 = vrot.slane %v3570_v37, 2 }
 0x1c4   : > { %v3221_v6 = vsel %vm1859_vm4, %v3215_v53, %v3220_v46  ;;  %v3778_v33 = vrot.slane %v3572_v61, 2  ;;  %v3420_v43 = vadd.f32 %v3216_v31, %v2862_v8  ;;  %v4123_v11 = vunpack.c.l.bf16 %v7791_v45  ;;  %v10324_v53 = vld [vmem:[#allocation13_spill] sm:$0xff]  ;;  %v10325_v8 = vld [vmem:[#allocation14_spill] sm:$0xff]  ;;  %v10326_v31 = vld [vmem:[#allocation15_spill] sm:$0xff] }
 0x1c5   : > { %v3422_v29 = vadd.f32 %v3221_v6, %v2864_v9  ;;  %v4333_v59 = vunpack.c.l.bf16 %v7799_v38  ;;  %v3774_v44 = vsel %vm2418_vm5, %v3772_v7, %v3773_v12  ;;  %v4335_v49 = vunpack.c.l.bf16 %v7804_v18 }
 0x1c6   : > { %v3779_v30 = vsel %vm2418_vm5, %v3773_v12, %v3778_v33  ;;  %v4337_v42 = vunpack.c.l.bf16 %v7807_v36  ;;  %v3978_v62 = vadd.f32 %v3774_v44, %v3420_v43  ;;  %v4902_v55 = vunpack.c.l.bf16 %v7811_v32  ;;  %v2152_v12 = vld [vmem:[#allocation2 + $0x60] sm:$0xee] }
 0x1c7   : > { %v3980_v20 = vadd.f32 %v3779_v30, %v3422_v29  ;;  %v4537_v34 = vrot.slane %v4333_v59, 1  ;;  %v4538_v16 = vrot.slane %v4335_v49, 1  ;;  %v4904_v3 = vunpack.c.l.bf16 %v7815_v48 }
 0x1c8   : > { %v4543_v40 = vrot.slane %v4337_v42, 1  ;;  %v4906_v45 = vunpack.c.l.bf16 %v7820_v60  ;;  %v4185_v38 = vadd.f32 %v4121_v4, %v3978_v62  ;;  %v5106_v41 = vrot.slane %v4902_v55, 2  ;;  %v7903_v55 = vpop.f32.mrb[70].mxu0 }
 0x1c9   : > { %v4187_v24 = vadd.f32 %v4123_v11, %v3980_v20  ;;  %v847_v1 = vmax.f32 %v7455_v27, 0.0  ;;  %v4539_v18 = vsel %vm1859_vm4, %v4537_v34, %v4538_v16  ;;  %v5107_v25 = vrot.slane %v4904_v3, 2  ;;  %v1587_v11 = vld [vmem:[#allocation2 + $0x70] sm:$0x11]  ;;  %10327 = vst [vmem:[#allocation12_spill] sm:$0xff] %v7903_v55 }
 0x1ca   : > { %v4544_v36 = vsel %vm1859_vm4, %v4538_v16, %v4543_v40  ;;  %v5112_v15 = vrot.slane %v4906_v45, 2  ;;  %v4743_v14 = vadd.f32 %v4539_v18, %v4185_v38  ;;  %v848_v2 = vmax.f32 %v7459_v23, 0.0 }
 0x1cb   : > { %v4745_v39 = vadd.f32 %v4544_v36, %v4187_v24  ;;  %v955_v32 = vmin.f32 %v847_v1, 6.0  ;;  %v5108_v48 = vsel %vm2418_vm5, %v5106_v41, %v5107_v25  ;;  %v849_v26 = vmax.f32 %v7462_v5, 0.0 }
 0x1cc   : > { %v5113_v60 = vsel %vm2418_vm5, %v5107_v25, %v5112_v15  ;;  %v850_v46 = vmax.f32 %v10324_v53, 0.0  ;;  %v5312_v27 = vadd.f32 %v5108_v48, %v4743_v14  ;;  %v956_v61 = vmin.f32 %v848_v2, 6.0 }
 0x1cd   : > { %v5314_v37 = vadd.f32 %v5113_v60, %v4745_v39  ;;  %v851_v9 = vmax.f32 %v10325_v8, 0.0  ;;  %v957_v7 = vmin.f32 %v849_v26, 6.0  ;;  %v852_v6 = vmax.f32 %v10326_v31, 0.0  ;;  %v2918_v26 = vld [vmem:[#allocation2 + $0x88] sm:$0x11] }
 0x1ce   : > { %v958_v4 = vmin.f32 %v850_v46, 6.0  ;;  %v7886_v23 = vmul.bf16 %v7050_v17, %v7579_v54  ;;  %v5376_v33 = vmax.f32 %v5312_v27, 0.0  ;;  %v6529_v29 = vpack.c.bf16 %v956_v61, %v955_v32  ;;  %v3476_v61 = vld [vmem:[#allocation2 + $0x78] sm:$0xee] }
 0x1cf   : > { %v5378_v43 = vmax.f32 %v5314_v37, 0.0  ;;  %v959_v5 = vmin.f32 %v851_v9, 6.0  ;;  %v960_v44 = vmin.f32 %v852_v6, 6.0  ;;  %v7890_v30 = vmul.bf16 %v7050_v17, %v7591_v50 }
 0x1d0   : > { %v6530_v59 = vpack.c.bf16 %v958_v4, %v957_v7  ;;  %v1536_v49 = vunpack.c.h.bf16 %v7886_v23  ;;  %v5440_v42 = vmin.f32 %v5376_v33, 6.0  ;;  %1400 = vst.msk [vmem:[#allocation2 + $0xd0] sm:$0xff] %vm7046_vm3, %v6529_v29  ;;  %v7897_v20 = vmul.bf16 %v7054_v21, %v7579_v54 }
 0x1d1   : > { %v5442_v62 = vmin.f32 %v5378_v43, 6.0  ;;  %v7901_v34 = vmul.bf16 %v7054_v21, %v7591_v50  ;;  %v6531_v16 = vpack.c.bf16 %v960_v44, %v959_v5  ;;  %v1538_v40 = vunpack.c.h.bf16 %v7890_v30 }
 0x1d2   : > { %1401 = vst.msk [vmem:[#allocation2 + $0xd8] sm:$0xff] %vm7046_vm3, %v6530_v59  ;;  %v7909_v3 = vmul.bf16 %v7054_v21, %v1587_v11  ;;  %v7912_v45 = vmul.bf16 %v7056_v22, %v2152_v12  ;;  %v1692_v38 = vunpack.c.h.bf16 %v7897_v20  ;;  %v7918_v41 = vmul.bf16 %v7056_v22, %v7591_v50  ;;  %v7959_v59 = vld [vmem:[#allocation2 + $0x90] sm:$0xff] }
 0x1d3   : > { %v5498_v54 = vpack.c.bf16 %v5442_v62, %v5440_v42  ;;  %v1694_v24 = vunpack.c.h.bf16 %v7901_v34  ;;  %1402 = vst.msk [vmem:[#allocation2 + $0xe0] sm:$0xff] %vm7046_vm3, %v6531_v16  ;;  %v7924_v18 = vmul.bf16 %v7056_v22, %v1587_v11  ;;  %v7929_v25 = vmul.bf16 %v7072_v56, %v7773_v19  ;;  %v7966_v16 = vld [vmem:[#allocation2 + $0x98] sm:$0xff] }
 0x1d4   : > { %v1696_v1 = vunpack.c.h.bf16 %v7909_v3  ;;  %v2251_v36 = vunpack.c.h.bf16 %v7912_v45  ;;  %v1903_v15 = vrot.slane %v1692_v38, 1  ;;  %v2253_v50 = vunpack.c.h.bf16 %v7918_v41 }
 0x1d5   : > { %5726 = vmatmul.mubr.bf16.gmra.mrb[12].mxu1 %v5498_v54  ;;  %v1904_v14 = vrot.slane %v1694_v24, 1  ;;  %v7934_v39 = vmul.bf16 %v7072_v56, %v7779_v35  ;;  %v2255_v2 = vunpack.c.h.bf16 %v7924_v18  ;;  %v2803_v60 = vunpack.c.h.bf16 %v7929_v25 }
 0x1d6   : > { %v1908_v32 = vrot.slane %v1696_v1, 1  ;;  %v2462_v48 = vrot.slane %v2251_v36, 2  ;;  %v2463_v46 = vrot.slane %v2253_v50, 2  ;;  %v7942_v37 = vmul.bf16 %v7074_v57, %v7773_v19 }
 0x1d7   : > { %v1905_v53 = vsel %vm1859_vm4, %v1903_v15, %v1904_v14  ;;  %v2805_v27 = vunpack.c.h.bf16 %v7934_v39  ;;  %v2467_v7 = vrot.slane %v2255_v2, 2  ;;  %v7947_v4 = vmul.bf16 %v7074_v57, %v7779_v35 }
 0x1d8   : > { %v1909_v8 = vsel %vm1859_vm4, %v1904_v14, %v1908_v32  ;;  %v2101_v9 = vadd.f32 %v1905_v53, %v1536_v49  ;;  %v2464_v6 = vsel %vm2418_vm5, %v2462_v48, %v2463_v46  ;;  %v7951_v12 = vmul.bf16 %v7074_v57, %v2918_v26 }
 0x1d9   : > { %v2103_v31 = vadd.f32 %v1909_v8, %v1538_v40  ;;  %v3017_v33 = vunpack.c.h.bf16 %v7942_v37  ;;  %v2468_v43 = vsel %vm2418_vm5, %v2463_v46, %v2467_v7  ;;  %v3019_v5 = vunpack.c.h.bf16 %v7947_v4 }
 0x1da   : > { %v2660_v29 = vadd.f32 %v2464_v6, %v2101_v9  ;;  %v7957_v11 = vmul.bf16 %v7076_v51, %v3476_v61  ;;  %v3021_v49 = vunpack.c.h.bf16 %v7951_v12  ;;  %v7964_v62 = vmul.bf16 %v7076_v51, %v7779_v35 }
 0x1db   : > { %v2662_v44 = vadd.f32 %v2468_v43, %v2103_v31  ;;  %v3227_v42 = vrot.slane %v3017_v33, 1  ;;  %v3228_v54 = vrot.slane %v3019_v5, 1  ;;  %v7969_v38 = vmul.bf16 %v7076_v51, %v2918_v26  ;;  %v4799_v26 = vld [vmem:[#allocation2 + $0x90] sm:$0xee] }
 0x1dc   : > { %v2867_v40 = vadd.f32 %v2803_v60, %v2660_v29  ;;  %v3575_v24 = vunpack.c.h.bf16 %v7957_v11  ;;  %v3232_v36 = vrot.slane %v3021_v49, 1  ;;  %v3577_v15 = vunpack.c.h.bf16 %v7964_v62  ;;  %v4241_v60 = vld [vmem:[#allocation2 + $0xa0] sm:$0x11] }
 0x1dd   : > { %v2869_v1 = vadd.f32 %v2805_v27, %v2662_v44  ;;  %v7975_v14 = vmul.bf16 %v7086_v58, %v7959_v59  ;;  %v3229_v50 = vsel %vm1859_vm4, %v3227_v42, %v3228_v54  ;;  %v3579_v32 = vunpack.c.h.bf16 %v7969_v38 }
 0x1de   : > { %v3785_v2 = vrot.slane %v3575_v24, 2  ;;  %v7981_v48 = vmul.bf16 %v7086_v58, %v7966_v16  ;;  %v3233_v53 = vsel %vm1859_vm4, %v3228_v54, %v3232_v36  ;;  %v3425_v46 = vadd.f32 %v3229_v50, %v2867_v40 }
 0x1df   : > { %v3786_v27 = vrot.slane %v3577_v15, 2  ;;  %v4126_v61 = vunpack.c.h.bf16 %v7975_v14  ;;  %v3427_v8 = vadd.f32 %v3233_v53, %v2869_v1  ;;  %v3790_v9 = vrot.slane %v3579_v32, 2 }
 0x1e0   : > { %v4128_v7 = vunpack.c.h.bf16 %v7981_v48  ;;  %v7988_v31 = vmul.bf16 %v7091_v63, %v7959_v59  ;;  %v7993_v33 = vmul.bf16 %v7091_v63, %v7966_v16  ;;  %v7996_v43 = vmul.bf16 %v7091_v63, %v4241_v60 }
 0x1e1   : > { %v3787_v6 = vsel %vm2418_vm5, %v3785_v2, %v3786_v27  ;;  %v7999_v29 = vmul.bf16 %v10310_v52, %v4799_v26  ;;  %v3791_v5 = vsel %vm2418_vm5, %v3786_v27, %v3790_v9  ;;  %v8005_v42 = vmul.bf16 %v10310_v52, %v7966_v16  ;;  %v8014_v2 = vpop.f32.mrb[71].mxu0 }
 0x1e2   : > { %v3983_v44 = vadd.f32 %v3787_v6, %v3425_v46  ;;  %v4340_v49 = vunpack.c.h.bf16 %v7988_v31  ;;  %v3985_v40 = vadd.f32 %v3791_v5, %v3427_v8  ;;  %v4342_v54 = vunpack.c.h.bf16 %v7993_v33  ;;  %10328 = vst [vmem:[#allocation13_spill] sm:$0xff] %v8014_v2  ;;  %v8017_v8 = vpop.f32.mrb[72].mxu0  ;;  %v10329_v5 = vld [vmem:[#allocation16_spill] sm:$0xff] }
 0x1e3   : > { %v4344_v24 = vunpack.c.h.bf16 %v7996_v43  ;;  %v8010_v1 = vmul.bf16 %v10310_v52, %v4241_v60  ;;  %v4909_v50 = vunpack.c.h.bf16 %v7999_v29  ;;  %v4911_v32 = vunpack.c.h.bf16 %v8005_v42 }
 0x1e4   : > { %v4190_v36 = vadd.f32 %v4126_v61, %v3983_v44  ;;  %v4550_v15 = vrot.slane %v4340_v49, 1  ;;  %v4192_v26 = vadd.f32 %v4128_v7, %v3985_v40  ;;  %v4551_v53 = vrot.slane %v4342_v54, 1  ;;  %v8021_v44 = vpop.f32.mrb[73].mxu0 }
 0x1e5   : > { %v4555_v46 = vrot.slane %v4344_v24, 1  ;;  %v4913_v27 = vunpack.c.h.bf16 %v8010_v1  ;;  %v5119_v9 = vrot.slane %v4909_v50, 2  ;;  %v5120_v6 = vrot.slane %v4911_v32, 2  ;;  %10330 = vst [vmem:[#allocation14_spill] sm:$0xff] %v8021_v44  ;;  %v8026_v40 = vpop.f32.mrb[74].mxu0 }
 0x1e6   : > { %v853_v60 = vmax.f32 %v10329_v5, 0.0  ;;  %v1535_v61 = vunpack.c.l.bf16 %v7886_v23  ;;  %v4552_v49 = vsel %vm1859_vm4, %v4550_v15, %v4551_v53  ;;  %v1537_v7 = vunpack.c.l.bf16 %v7890_v30  ;;  %v8031_v5 = vpop.f32.mrb[75].mxu0 }
 0x1e7   : > { %v4556_v55 = vsel %vm1859_vm4, %v4551_v53, %v4555_v46  ;;  %v5124_v2 = vrot.slane %v4913_v27, 2  ;;  %v4748_v54 = vadd.f32 %v4552_v49, %v4190_v36  ;;  %v5121_v50 = vsel %vm2418_vm5, %v5119_v9, %v5120_v6  ;;  %10331 = vst [vmem:[#allocation15_spill] sm:$0xff] %v8031_v5 }
 0x1e8   : > { %v4750_v24 = vadd.f32 %v4556_v55, %v4192_v26  ;;  %v8029_v32 = vmin.f32 %v853_v60, 6.0  ;;  %v1691_v44 = vunpack.c.l.bf16 %v7897_v20  ;;  %v1693_v15 = vunpack.c.l.bf16 %v7901_v34 }
 0x1e9   : > { %v5125_v23 = vsel %vm2418_vm5, %v5120_v6, %v5124_v2  ;;  %v1695_v53 = vunpack.c.l.bf16 %v7909_v3  ;;  %v5317_v46 = vadd.f32 %v5121_v50, %v4748_v54  ;;  %v2250_v27 = vunpack.c.l.bf16 %v7912_v45 }
 0x1ea   : > { %v5319_v30 = vadd.f32 %v5125_v23, %v4750_v24  ;;  %v2252_v55 = vunpack.c.l.bf16 %v7918_v41  ;;  %v1900_v36 = vrot.slane %v1691_v44, 1  ;;  %v1901_v26 = vrot.slane %v1693_v15, 1 }
 0x1eb   : > { %v1906_v9 = vrot.slane %v1695_v53, 1  ;;  %v2254_v60 = vunpack.c.l.bf16 %v7924_v18  ;;  %v5381_v49 = vmax.f32 %v5317_v46, 0.0  ;;  %v2459_v2 = vrot.slane %v2250_v27, 2 }
 0x1ec   : > { %v5383_v5 = vmax.f32 %v5319_v30, 0.0  ;;  %v2460_v6 = vrot.slane %v2252_v55, 2  ;;  %v1902_v20 = vsel %vm1859_vm4, %v1900_v36, %v1901_v26  ;;  %v2802_v54 = vunpack.c.l.bf16 %v7929_v25 }
 0x1ed   : > { %v1907_v34 = vsel %vm1859_vm4, %v1901_v26, %v1906_v9  ;;  %v2465_v3 = vrot.slane %v2254_v60, 2  ;;  %v5445_v24 = vmin.f32 %v5381_v49, 6.0  ;;  %v2100_v50 = vadd.f32 %v1902_v20, %v1535_v61 }
 0x1ee   : > { %v5447_v45 = vmin.f32 %v5383_v5, 6.0  ;;  %v2102_v41 = vadd.f32 %v1907_v34, %v1537_v7  ;;  %v2461_v44 = vsel %vm2418_vm5, %v2459_v2, %v2460_v6  ;;  %v2804_v18 = vunpack.c.l.bf16 %v7934_v39 }
 0x1ef   : > { %v2466_v23 = vsel %vm2418_vm5, %v2460_v6, %v2465_v3  ;;  %v3016_v15 = vunpack.c.l.bf16 %v7942_v37  ;;  %v2659_v46 = vadd.f32 %v2461_v44, %v2100_v50  ;;  %v3018_v27 = vunpack.c.l.bf16 %v7947_v4 }
 0x1f0   : > { %v5501_v53 = vpack.c.bf16 %v5447_v45, %v5445_v24  ;;  %v2661_v30 = vadd.f32 %v2466_v23, %v2102_v41  ;;  %v3020_v55 = vunpack.c.l.bf16 %v7951_v12  ;;  %v3574_v5 = vunpack.c.l.bf16 %v7957_v11 }
 0x1f1   : > { %v3224_v25 = vrot.slane %v3016_v15, 1  ;;  %v3576_v61 = vunpack.c.l.bf16 %v7964_v62  ;;  %v2866_v7 = vadd.f32 %v2802_v54, %v2659_v46  ;;  %v3225_v26 = vrot.slane %v3018_v27, 1 }
 0x1f2   : > { %6454 = vmatprep.mubr.msk.bf16.mxu1 %vm5620_vm6, %v5501_v53  ;;  %v2868_v36 = vadd.f32 %v2804_v18, %v2661_v30  ;;  %v3578_v39 = vunpack.c.l.bf16 %v7969_v38  ;;  %v3230_v37 = vrot.slane %v3020_v55, 1  ;;  %v3782_v9 = vrot.slane %v3574_v5, 2 }
 0x1f3   : > { %v3783_v60 = vrot.slane %v3576_v61, 2  ;;  %v4125_v49 = vunpack.c.l.bf16 %v7975_v14  ;;  %v3226_v4 = vsel %vm1859_vm4, %v3224_v25, %v3225_v26  ;;  %v4127_v2 = vunpack.c.l.bf16 %v7981_v48  ;;  %v10332_v25 = vld [vmem:[#allocation6_spill] sm:$0xff] }
 0x1f4   : > { %v3788_v12 = vrot.slane %v3578_v39, 2  ;;  %v4339_v11 = vunpack.c.l.bf16 %v7988_v31  ;;  %v3231_v62 = vsel %vm1859_vm4, %v3225_v26, %v3230_v37  ;;  %v3424_v6 = vadd.f32 %v3226_v4, %v2866_v7  ;;  %v10333_v7 = vld [vmem:[#allocation7_spill] sm:$0xff] }
 0x1f5   : > { %v3784_v20 = vsel %vm2418_vm5, %v3782_v9, %v3783_v60  ;;  %v4341_v34 = vunpack.c.l.bf16 %v7993_v33  ;;  %v3426_v38 = vadd.f32 %v3231_v62, %v2868_v36  ;;  %v4343_v54 = vunpack.c.l.bf16 %v7996_v43  ;;  %v10334_v9 = vld [vmem:[#allocation17_spill] sm:$0xff] }
 0x1f6   : > { %v3789_v3 = vsel %vm2418_vm5, %v3783_v60, %v3788_v12  ;;  %v4547_v14 = vrot.slane %v4339_v11, 1  ;;  %v3982_v24 = vadd.f32 %v3784_v20, %v3424_v6  ;;  %v4908_v50 = vunpack.c.l.bf16 %v7999_v29  ;;  %v2153_v20 = vld [vmem:[#allocation2 + $0x78] sm:$0xee] }
 0x1f7   : > { %v4548_v45 = vrot.slane %v4341_v34, 1  ;;  %v4910_v48 = vunpack.c.l.bf16 %v8005_v42  ;;  %v3984_v31 = vadd.f32 %v3789_v3, %v3426_v38  ;;  %v4553_v41 = vrot.slane %v4343_v54, 1 }
 0x1f8   : > { %v4912_v44 = vunpack.c.l.bf16 %v8010_v1  ;;  %v854_v23 = vmax.f32 %v7635_v0, 0.0  ;;  %v4189_v18 = vadd.f32 %v4125_v49, %v3982_v24  ;;  %v5116_v15 = vrot.slane %v4908_v50, 2 }
 0x1f9   : > { %v4549_v33 = vsel %vm1859_vm4, %v4547_v14, %v4548_v45  ;;  %v5117_v53 = vrot.slane %v4910_v48, 2  ;;  %v4191_v46 = vadd.f32 %v4127_v2, %v3984_v31  ;;  %v4554_v43 = vsel %vm1859_vm4, %v4548_v45, %v4553_v41 }
 0x1fa   : > { %v5122_v30 = vrot.slane %v4912_v44, 2  ;;  %v962_v27 = vmin.f32 %v854_v23, 6.0  ;;  %v4747_v55 = vadd.f32 %v4549_v33, %v4189_v18  ;;  %v855_v42 = vmax.f32 %v7638_v13, 0.0 }
 0x1fb   : > { %v5118_v29 = vsel %vm2418_vm5, %v5116_v15, %v5117_v53  ;;  %v856_v5 = vmax.f32 %v10332_v25, 0.0  ;;  %v4749_v1 = vadd.f32 %v4554_v43, %v4191_v46  ;;  %v857_v36 = vmax.f32 %v10333_v7, 0.0 }
 0x1fc   : > { %v5123_v0 = vsel %vm2418_vm5, %v5117_v53, %v5122_v30  ;;  %v6532_v61 = vpack.c.bf16 %v962_v27, %v8029_v32  ;;  %v5316_v26 = vadd.f32 %v5118_v29, %v4747_v55  ;;  %v963_v39 = vmin.f32 %v855_v42, 6.0  ;;  %v1588_v32 = vld [vmem:[#allocation2 + $0x88] sm:$0x11]  ;;  %v2919_v29 = vld [vmem:[#allocation2 + $0xa0] sm:$0x11] }
 0x1fd   : > { %v964_v37 = vmin.f32 %v856_v5, 6.0  ;;  %v858_v60 = vmax.f32 %v10334_v9, 0.0  ;;  %v5318_v49 = vadd.f32 %v5123_v0, %v4749_v1  ;;  %v965_v4 = vmin.f32 %v857_v36, 6.0  ;;  %v3477_v0 = vld [vmem:[#allocation2 + $0x90] sm:$0xee] }
 0x1fe   : > { %1403 = vst.msk [vmem:[#allocation2 + $0xe8] sm:$0xff] %vm7046_vm3, %v6532_v61  ;;  %v8079_v13 = vmul.bf16 %v7050_v17, %v7773_v19  ;;  %v8083_v12 = vmul.bf16 %v7050_v17, %v7779_v35  ;;  %v5380_v2 = vmax.f32 %v5316_v26, 0.0  ;;  %v8087_v6 = vmul.bf16 %v7054_v21, %v7773_v19 }
 0x1ff   : > { %v6533_v11 = vpack.c.bf16 %v964_v37, %v963_v39  ;;  %v966_v62 = vmin.f32 %v858_v60, 6.0  ;;  %v5382_v34 = vmax.f32 %v5318_v49, 0.0  ;;  %v8093_v54 = vmul.bf16 %v7054_v21, %v7779_v35 }
 0x200   : > { %v1540_v38 = vunpack.c.h.bf16 %v8079_v13  ;;  %v1542_v3 = vunpack.c.h.bf16 %v8083_v12  ;;  %v5444_v14 = vmin.f32 %v5380_v2, 6.0  ;;  %v8098_v45 = vmul.bf16 %v7054_v21, %v1588_v32 }
 0x201   : > { %1404 = vst.msk [vmem:[#allocation2 + $0xf0] sm:$0xff] %vm7046_vm3, %v6533_v11  ;;  %v6534_v24 = vpack.c.bf16 %v966_v62, %v965_v4  ;;  %v1698_v19 = vunpack.c.h.bf16 %v8087_v6  ;;  %v5446_v50 = vmin.f32 %v5382_v34, 6.0  ;;  %v1700_v48 = vunpack.c.h.bf16 %v8093_v54 }
 0x202   : > { %v8103_v31 = vmul.bf16 %v7056_v22, %v2153_v20  ;;  %v8107_v41 = vmul.bf16 %v7056_v22, %v7779_v35  ;;  %v1702_v44 = vunpack.c.h.bf16 %v8098_v45  ;;  %v8113_v18 = vmul.bf16 %v7056_v22, %v1588_v32 }
 0x203   : > { %1405 = vst.msk [vmem:[#allocation2 + $0xf8] sm:$0xff] %vm7046_vm3, %v6534_v24  ;;  %v1913_v23 = vrot.slane %v1698_v19, 1  ;;  %v8117_v33 = vmul.bf16 %v7072_v56, %v7959_v59  ;;  %v5500_v15 = vpack.c.bf16 %v5446_v50, %v5444_v14  ;;  %v1914_v53 = vrot.slane %v1700_v48, 1 }
 0x204   : > { %v2257_v46 = vunpack.c.h.bf16 %v8103_v31  ;;  %v2259_v35 = vunpack.c.h.bf16 %v8107_v41  ;;  %v1918_v43 = vrot.slane %v1702_v44, 1  ;;  %v2261_v30 = vunpack.c.h.bf16 %v8113_v18 }
 0x205   : > { %v8124_v27 = vmul.bf16 %v7072_v56, %v7966_v16  ;;  %v2807_v55 = vunpack.c.h.bf16 %v8117_v33  ;;  %5734 = vmatmul.mubr.bf16.gmra.mrb[16].mxu1 %v5500_v15  ;;  %v1915_v42 = vsel %vm1859_vm4, %v1913_v23, %v1914_v53  ;;  %v8130_v1 = vmul.bf16 %v7074_v57, %v7959_v59 }
 0x206   : > { %v2472_v25 = vrot.slane %v2257_v46, 2  ;;  %v2473_v5 = vrot.slane %v2259_v35, 2  ;;  %v1919_v61 = vsel %vm1859_vm4, %v1914_v53, %v1918_v43  ;;  %v2105_v7 = vadd.f32 %v1915_v42, %v1540_v38  ;;  %v8153_v38 = vld [vmem:[#allocation2 + $0xa8] sm:$0xff] }
 0x207   : > { %v2477_v36 = vrot.slane %v2261_v30, 2  ;;  %v2809_v26 = vunpack.c.h.bf16 %v8124_v27  ;;  %v2107_v39 = vadd.f32 %v1919_v61, %v1542_v3  ;;  %v8137_v9 = vmul.bf16 %v7074_v57, %v7966_v16  ;;  %v8155_v3 = vld [vmem:[#allocation2 + $0xb0] sm:$0xff]  ;;  %v4242_v30 = vld [vmem:[#allocation2 + $0xb8] sm:$0x11] }
 0x208   : > { %v2474_v37 = vsel %vm2418_vm5, %v2472_v25, %v2473_v5  ;;  %v8140_v60 = vmul.bf16 %v7074_v57, %v2919_v29  ;;  %v3023_v32 = vunpack.c.h.bf16 %v8130_v1  ;;  %v8145_v2 = vmul.bf16 %v7076_v51, %v3477_v0 }
 0x209   : > { %v2478_v49 = vsel %vm2418_vm5, %v2473_v5, %v2477_v36  ;;  %v2664_v4 = vadd.f32 %v2474_v37, %v2105_v7  ;;  %v3025_v62 = vunpack.c.h.bf16 %v8137_v9  ;;  %v8151_v34 = vmul.bf16 %v7076_v51, %v7966_v16  ;;  %v4800_v5 = vld [vmem:[#allocation2 + $0xa8] sm:$0xee] }
 0x20a   : > { %v2666_v11 = vadd.f32 %v2478_v49, %v2107_v39  ;;  %v3027_v20 = vunpack.c.h.bf16 %v8140_v60  ;;  %v3237_v24 = vrot.slane %v3023_v32, 1  ;;  %v8158_v19 = vmul.bf16 %v7076_v51, %v2919_v29 }
 0x20b   : > { %v2871_v14 = vadd.f32 %v2807_v55, %v2664_v4  ;;  %v3581_v50 = vunpack.c.h.bf16 %v8145_v2  ;;  %v3238_v44 = vrot.slane %v3025_v62, 1  ;;  %v3583_v15 = vunpack.c.h.bf16 %v8151_v34 }
 0x20c   : > { %v2873_v48 = vadd.f32 %v2809_v26, %v2666_v11  ;;  %v3242_v23 = vrot.slane %v3027_v20, 1  ;;  %v3585_v53 = vunpack.c.h.bf16 %v8158_v19  ;;  %v8165_v35 = vmul.bf16 %v7086_v58, %v8153_v38 }
 0x20d   : > { %v3795_v46 = vrot.slane %v3581_v50, 2  ;;  %v8169_v43 = vmul.bf16 %v7086_v58, %v8155_v3  ;;  %v3239_v55 = vsel %vm1859_vm4, %v3237_v24, %v3238_v44  ;;  %v3796_v42 = vrot.slane %v3583_v15, 2 }
 0x20e   : > { %v3243_v29 = vsel %vm1859_vm4, %v3238_v44, %v3242_v23  ;;  %v8175_v25 = vmul.bf16 %v7091_v63, %v8153_v38  ;;  %v3429_v0 = vadd.f32 %v3239_v55, %v2871_v14  ;;  %v3800_v7 = vrot.slane %v3585_v53, 2 }
 0x20f   : > { %v3431_v61 = vadd.f32 %v3243_v29, %v2873_v48  ;;  %v4130_v36 = vunpack.c.h.bf16 %v8165_v35  ;;  %v3797_v26 = vsel %vm2418_vm5, %v3795_v46, %v3796_v42  ;;  %v4132_v39 = vunpack.c.h.bf16 %v8169_v43  ;;  %v8198_v48 = vpop.f32.mrb[76].mxu0 }
 0x210   : > { %v8182_v37 = vmul.bf16 %v7091_v63, %v8155_v3  ;;  %v8185_v49 = vmul.bf16 %v7091_v63, %v4242_v30  ;;  %v3801_v4 = vsel %vm2418_vm5, %v3796_v42, %v3800_v7  ;;  %v3987_v32 = vadd.f32 %v3797_v26, %v3429_v0  ;;  %v8204_v46 = vpop.f32.mrb[77].mxu0 }
 0x211   : > { %v4346_v11 = vunpack.c.h.bf16 %v8175_v25  ;;  %v8190_v62 = vmul.bf16 %v10310_v52, %v4800_v5  ;;  %v3989_v20 = vadd.f32 %v3801_v4, %v3431_v61  ;;  %v8196_v50 = vmul.bf16 %v10310_v52, %v8155_v3  ;;  %10335 = vst [vmem:[#allocation16_spill] sm:$0xff] %v8204_v46  ;;  %v8207_v0 = vpop.f32.mrb[78].mxu0 }
 0x212   : > { %v4348_v14 = vunpack.c.h.bf16 %v8182_v37  ;;  %v4350_v24 = vunpack.c.h.bf16 %v8185_v49  ;;  %v4194_v44 = vadd.f32 %v4130_v36, %v3987_v32  ;;  %v8201_v15 = vmul.bf16 %v10310_v52, %v4242_v30  ;;  %10336 = vst [vmem:[#allocation6_spill] sm:$0xff] %v8207_v0  ;;  %v8212_v30 = vpop.f32.mrb[79].mxu0 }
 0x213   : > { %v4560_v23 = vrot.slane %v4346_v11, 1  ;;  %v4915_v53 = vunpack.c.h.bf16 %v8190_v62  ;;  %v4196_v55 = vadd.f32 %v4132_v39, %v3989_v20  ;;  %v4917_v5 = vunpack.c.h.bf16 %v8196_v50  ;;  %10337 = vst [vmem:[#allocation7_spill] sm:$0xff] %v8212_v30  ;;  %v8217_v20 = vpop.f32.mrb[80].mxu0 }
 0x214   : > { %v4561_v29 = vrot.slane %v4348_v14, 1  ;;  %v4565_v42 = vrot.slane %v4350_v24, 1  ;;  %v4919_v61 = vunpack.c.h.bf16 %v8201_v15  ;;  %v1539_v36 = vunpack.c.l.bf16 %v8079_v13  ;;  %10338 = vst [vmem:[#allocation17_spill] sm:$0xff] %v8217_v20  ;;  %v8220_v46 = vpop.f32.mrb[81].mxu0 }
 0x215   : > { %v5129_v7 = vrot.slane %v4915_v53, 2  ;;  %v1541_v26 = vunpack.c.l.bf16 %v8083_v12  ;;  %v5130_v39 = vrot.slane %v4917_v5, 2  ;;  %v1697_v11 = vunpack.c.l.bf16 %v8087_v6  ;;  %10339 = vst [vmem:[#allocation18_spill] sm:$0xff] %v8220_v46 }
 0x216   : > { %v4562_v4 = vsel %vm1859_vm4, %v4560_v23, %v4561_v29  ;;  %v4566_v32 = vsel %vm1859_vm4, %v4561_v29, %v4565_v42  ;;  %v5134_v0 = vrot.slane %v4919_v61, 2  ;;  %v1699_v53 = vunpack.c.l.bf16 %v8093_v54 }
 0x217   : > { %v4752_v14 = vadd.f32 %v4562_v4, %v4194_v44  ;;  %v4754_v24 = vadd.f32 %v4566_v32, %v4196_v55  ;;  %v5131_v13 = vsel %vm2418_vm5, %v5129_v7, %v5130_v39  ;;  %v1701_v12 = vunpack.c.l.bf16 %v8098_v45 }
 0x218   : > { %v1910_v30 = vrot.slane %v1697_v11, 1  ;;  %v2256_v23 = vunpack.c.l.bf16 %v8103_v31  ;;  %v5135_v29 = vsel %vm2418_vm5, %v5130_v39, %v5134_v0  ;;  %v1911_v6 = vrot.slane %v1699_v53, 1 }
 0x219   : > { %v5321_v42 = vadd.f32 %v5131_v13, %v4752_v14  ;;  %v2258_v5 = vunpack.c.l.bf16 %v8107_v41  ;;  %v5323_v44 = vadd.f32 %v5135_v29, %v4754_v24  ;;  %v1916_v55 = vrot.slane %v1701_v12, 1 }
 0x21a   : > { %v2260_v61 = vunpack.c.l.bf16 %v8113_v18  ;;  %v2469_v54 = vrot.slane %v2256_v23, 2  ;;  %v1912_v32 = vsel %vm1859_vm4, %v1910_v30, %v1911_v6  ;;  %v2806_v45 = vunpack.c.l.bf16 %v8117_v33 }
 0x21b   : > { %v5385_v4 = vmax.f32 %v5321_v42, 0.0  ;;  %v2470_v7 = vrot.slane %v2258_v5, 2  ;;  %v5387_v11 = vmax.f32 %v5323_v44, 0.0  ;;  %v1917_v31 = vsel %vm1859_vm4, %v1911_v6, %v1916_v55 }
 0x21c   : > { %v2104_v46 = vadd.f32 %v1912_v32, %v1539_v36  ;;  %v2475_v0 = vrot.slane %v2260_v61, 2  ;;  %v2106_v14 = vadd.f32 %v1917_v31, %v1541_v26  ;;  %v2808_v24 = vunpack.c.l.bf16 %v8124_v27 }
 0x21d   : > { %v5449_v39 = vmin.f32 %v5385_v4, 6.0  ;;  %v2471_v41 = vsel %vm2418_vm5, %v2469_v54, %v2470_v7  ;;  %v5451_v53 = vmin.f32 %v5387_v11, 6.0  ;;  %v3022_v30 = vunpack.c.l.bf16 %v8130_v1 }
 0x21e   : > { %v2476_v18 = vsel %vm2418_vm5, %v2470_v7, %v2475_v0  ;;  %v2663_v13 = vadd.f32 %v2471_v41, %v2104_v46  ;;  %v3024_v33 = vunpack.c.l.bf16 %v8137_v9  ;;  %v3026_v23 = vunpack.c.l.bf16 %v8140_v60 }
 0x21f   : > { %v2665_v12 = vadd.f32 %v2476_v18, %v2106_v14  ;;  %v3580_v36 = vunpack.c.l.bf16 %v8145_v2  ;;  %v5503_v29 = vpack.c.bf16 %v5451_v53, %v5449_v39  ;;  %v3234_v26 = vrot.slane %v3022_v30, 1  ;;  %v10340_v53 = vld [vmem:[#allocation8_spill] sm:$0xff] }
 0x220   : > { %v2870_v42 = vadd.f32 %v2806_v45, %v2663_v13  ;;  %v3582_v6 = vunpack.c.l.bf16 %v8151_v34  ;;  %v3235_v27 = vrot.slane %v3024_v33, 1  ;;  %v3240_v44 = vrot.slane %v3026_v23, 1  ;;  %v10341_v23 = vld [vmem:[#allocation9_spill] sm:$0xff] }
 0x221   : > { %v2872_v5 = vadd.f32 %v2808_v24, %v2665_v12  ;;  %v3584_v55 = vunpack.c.l.bf16 %v8158_v19  ;;  %6455 = vmatprep.mubr.msk.bf16.mxu1 %vm5620_vm6, %v5503_v29  ;;  %v3792_v1 = vrot.slane %v3580_v36, 2  ;;  %v4129_v9 = vunpack.c.l.bf16 %v8165_v35 }
 0x222   : > { %v3793_v46 = vrot.slane %v3582_v6, 2  ;;  %v4131_v60 = vunpack.c.l.bf16 %v8169_v43  ;;  %v3236_v2 = vsel %vm1859_vm4, %v3234_v26, %v3235_v27  ;;  %v3241_v61 = vsel %vm1859_vm4, %v3235_v27, %v3240_v44  ;;  %v10342_v26 = vld [vmem:[#allocation10_spill] sm:$0xff]  ;;  %v10343_v27 = vld [vmem:[#allocation11_spill] sm:$0xff] }
 0x223   : > { %v3798_v54 = vrot.slane %v3584_v55, 2  ;;  %v4345_v34 = vunpack.c.l.bf16 %v8175_v25  ;;  %v3428_v4 = vadd.f32 %v3236_v2, %v2870_v42  ;;  %v3430_v32 = vadd.f32 %v3241_v61, %v2872_v5 }
 0x224   : > { %v3794_v7 = vsel %vm2418_vm5, %v3792_v1, %v3793_v46  ;;  %v4347_v19 = vunpack.c.l.bf16 %v8182_v37  ;;  %v4349_v11 = vunpack.c.l.bf16 %v8185_v49  ;;  %v4914_v43 = vunpack.c.l.bf16 %v8190_v62 }
 0x225   : > { %v3799_v45 = vsel %vm2418_vm5, %v3793_v46, %v3798_v54  ;;  %v4557_v35 = vrot.slane %v4345_v34, 1  ;;  %v3986_v31 = vadd.f32 %v3794_v7, %v3428_v4  ;;  %v4916_v14 = vunpack.c.l.bf16 %v8196_v50  ;;  %v2154_v4 = vld [vmem:[#allocation2 + $0x90] sm:$0xee] }
 0x226   : > { %v3988_v0 = vadd.f32 %v3799_v45, %v3430_v32  ;;  %v4558_v39 = vrot.slane %v4347_v19, 1  ;;  %v4563_v41 = vrot.slane %v4349_v11, 1  ;;  %v4918_v25 = vunpack.c.l.bf16 %v8201_v15 }
 0x227   : > { %v5126_v24 = vrot.slane %v4914_v43, 2  ;;  %v859_v18 = vmax.f32 %v10340_v53, 0.0  ;;  %v4193_v13 = vadd.f32 %v4129_v9, %v3986_v31  ;;  %v5127_v12 = vrot.slane %v4916_v14, 2  ;;  %v8282_v31 = vpop.f32.mrb[82].mxu0 }
 0x228   : > { %v4195_v37 = vadd.f32 %v4131_v60, %v3988_v0  ;;  %v4559_v30 = vsel %vm1859_vm4, %v4557_v35, %v4558_v39  ;;  %v4564_v49 = vsel %vm1859_vm4, %v4558_v39, %v4563_v41  ;;  %v5132_v33 = vrot.slane %v4918_v25, 2  ;;  %10344 = vst [vmem:[#allocation8_spill] sm:$0xff] %v8282_v31 }
 0x229   : > { %v967_v62 = vmin.f32 %v859_v18, 6.0  ;;  %v860_v36 = vmax.f32 %v10341_v23, 0.0  ;;  %v4751_v29 = vadd.f32 %v4559_v30, %v4193_v13  ;;  %v5128_v50 = vsel %vm2418_vm5, %v5126_v24, %v5127_v12 }
 0x22a   : > { %v4753_v42 = vadd.f32 %v4564_v49, %v4195_v37  ;;  %v861_v15 = vmax.f32 %v10342_v26, 0.0  ;;  %v5133_v6 = vsel %vm2418_vm5, %v5127_v12, %v5132_v33  ;;  %v862_v44 = vmax.f32 %v10343_v27, 0.0 }
 0x22b   : > { %v968_v5 = vmin.f32 %v860_v36, 6.0  ;;  %v863_v55 = vmax.f32 %v7839_v47, 0.0  ;;  %v5320_v1 = vadd.f32 %v5128_v50, %v4751_v29  ;;  %v864_v60 = vmax.f32 %v7843_v28, 0.0  ;;  %v1589_v47 = vld [vmem:[#allocation2 + $0xa0] sm:$0x11] }
 0x22c   : > { %v5322_v46 = vadd.f32 %v5133_v6, %v4753_v42  ;;  %v969_v9 = vmin.f32 %v861_v15, 6.0  ;;  %v970_v61 = vmin.f32 %v862_v44, 6.0  ;;  %v8265_v34 = vmul.bf16 %v7050_v17, %v7959_v59  ;;  %v2920_v42 = vld [vmem:[#allocation2 + $0xb8] sm:$0x11] }
 0x22d   : > { %v6535_v2 = vpack.c.bf16 %v968_v5, %v967_v62  ;;  %v971_v54 = vmin.f32 %v863_v55, 6.0  ;;  %v5384_v32 = vmax.f32 %v5320_v1, 0.0  ;;  %v972_v19 = vmin.f32 %v864_v60, 6.0  ;;  %v3478_v5 = vld [vmem:[#allocation2 + $0xa8] sm:$0xee] }
 0x22e   : > { %v5386_v7 = vmax.f32 %v5322_v46, 0.0  ;;  %v8269_v45 = vmul.bf16 %v7050_v17, %v7966_v16  ;;  %v6536_v28 = vpack.c.bf16 %v970_v61, %v969_v9  ;;  %v1544_v11 = vunpack.c.h.bf16 %v8265_v34 }
 0x22f   : > { %1406 = vst.msk [vmem:[#allocation2 + $0x100] sm:$0xff] %vm7046_vm3, %v6535_v2  ;;  %v8276_v35 = vmul.bf16 %v7054_v21, %v7959_v59  ;;  %v8280_v43 = vmul.bf16 %v7054_v21, %v7966_v16  ;;  %v5448_v0 = vmin.f32 %v5384_v32, 6.0  ;;  %v6537_v14 = vpack.c.bf16 %v972_v19, %v971_v54 }
 0x230   : > { %v5450_v39 = vmin.f32 %v5386_v7, 6.0  ;;  %v1546_v41 = vunpack.c.h.bf16 %v8269_v45  ;;  %1407 = vst.msk [vmem:[#allocation2 + $0x108] sm:$0xff] %vm7046_vm3, %v6536_v28  ;;  %v8288_v25 = vmul.bf16 %v7054_v21, %v1589_v47  ;;  %v8293_v53 = vmul.bf16 %v7056_v22, %v2154_v4  ;;  %v8337_v7 = vld [vmem:[#allocation2 + $0xc0] sm:$0xff] }
 0x231   : > { %v1704_v59 = vunpack.c.h.bf16 %v8276_v35  ;;  %v1706_v24 = vunpack.c.h.bf16 %v8280_v43  ;;  %1408 = vst.msk [vmem:[#allocation2 + $0x110] sm:$0xff] %vm7046_vm3, %v6537_v14  ;;  %v8299_v13 = vmul.bf16 %v7056_v22, %v7966_v16  ;;  %v8302_v37 = vmul.bf16 %v7056_v22, %v1589_v47 }
 0x232   : > { %v5502_v18 = vpack.c.bf16 %v5450_v39, %v5448_v0  ;;  %v8306_v30 = vmul.bf16 %v7072_v56, %v8153_v38  ;;  %v1708_v12 = vunpack.c.h.bf16 %v8288_v25  ;;  %v2263_v62 = vunpack.c.h.bf16 %v8293_v53 }
 0x233   : > { %v1923_v49 = vrot.slane %v1704_v59, 1  ;;  %v1924_v33 = vrot.slane %v1706_v24, 1  ;;  %v2265_v23 = vunpack.c.h.bf16 %v8299_v13  ;;  %v2267_v36 = vunpack.c.h.bf16 %v8302_v37  ;;  %v8349_v59 = vld [vmem:[#allocation2 + $0xc8] sm:$0xff] }
 0x234   : > { %5742 = vmatmul.mubr.bf16.gmra.mrb[20].mxu1 %v5502_v18  ;;  %v8314_v16 = vmul.bf16 %v7072_v56, %v8155_v3  ;;  %v2811_v29 = vunpack.c.h.bf16 %v8306_v30  ;;  %v1928_v26 = vrot.slane %v1708_v12, 1  ;;  %v2482_v15 = vrot.slane %v2263_v62, 2 }
 0x235   : > { %v1925_v50 = vsel %vm1859_vm4, %v1923_v49, %v1924_v33  ;;  %v8320_v6 = vmul.bf16 %v7074_v57, %v8153_v38  ;;  %v2483_v44 = vrot.slane %v2265_v23, 2  ;;  %v2487_v55 = vrot.slane %v2267_v36, 2 }
 0x236   : > { %v2109_v27 = vadd.f32 %v1925_v50, %v1544_v11  ;;  %v2813_v1 = vunpack.c.h.bf16 %v8314_v16  ;;  %v1929_v46 = vsel %vm1859_vm4, %v1924_v33, %v1928_v26  ;;  %v8326_v9 = vmul.bf16 %v7074_v57, %v8155_v3  ;;  %v4243_v50 = vld [vmem:[#allocation2 + $0xd0] sm:$0x11] }
 0x237   : > { %v8329_v60 = vmul.bf16 %v7074_v57, %v2920_v42  ;;  %v3029_v2 = vunpack.c.h.bf16 %v8320_v6  ;;  %v2111_v61 = vadd.f32 %v1929_v46, %v1546_v41  ;;  %v2484_v54 = vsel %vm2418_vm5, %v2482_v15, %v2483_v44 }
 0x238   : > { %v2488_v4 = vsel %vm2418_vm5, %v2483_v44, %v2487_v55  ;;  %v8335_v32 = vmul.bf16 %v7076_v51, %v3478_v5  ;;  %v2668_v19 = vadd.f32 %v2484_v54, %v2109_v27  ;;  %v3031_v47 = vunpack.c.h.bf16 %v8326_v9  ;;  %v4801_v5 = vld [vmem:[#allocation2 + $0xc0] sm:$0xee] }
 0x239   : > { %v3033_v28 = vunpack.c.h.bf16 %v8329_v60  ;;  %v3247_v11 = vrot.slane %v3029_v2, 1  ;;  %v2670_v0 = vadd.f32 %v2488_v4, %v2111_v61  ;;  %v8343_v39 = vmul.bf16 %v7076_v51, %v8155_v3 }
 0x23a   : > { %v8346_v14 = vmul.bf16 %v7076_v51, %v2920_v42  ;;  %v3587_v41 = vunpack.c.h.bf16 %v8335_v32  ;;  %v2875_v24 = vadd.f32 %v2811_v29, %v2668_v19  ;;  %v3248_v18 = vrot.slane %v3031_v47, 1 }
 0x23b   : > { %v3252_v12 = vrot.slane %v3033_v28, 1  ;;  %v8353_v49 = vmul.bf16 %v7086_v58, %v8337_v7  ;;  %v2877_v33 = vadd.f32 %v2813_v1, %v2670_v0  ;;  %v3589_v62 = vunpack.c.h.bf16 %v8343_v39 }
 0x23c   : > { %v3591_v23 = vunpack.c.h.bf16 %v8346_v14  ;;  %v3805_v36 = vrot.slane %v3587_v41, 2  ;;  %v3249_v42 = vsel %vm1859_vm4, %v3247_v11, %v3248_v18  ;;  %v8361_v29 = vmul.bf16 %v7086_v58, %v8349_v59 }
 0x23d   : > { %v3253_v26 = vsel %vm1859_vm4, %v3248_v18, %v3252_v12  ;;  %v4134_v15 = vunpack.c.h.bf16 %v8353_v49  ;;  %v3433_v27 = vadd.f32 %v3249_v42, %v2875_v24  ;;  %v3806_v55 = vrot.slane %v3589_v62, 2 }
 0x23e   : > { %v3435_v44 = vadd.f32 %v3253_v26, %v2877_v33  ;;  %v3810_v1 = vrot.slane %v3591_v23, 2  ;;  %v4136_v46 = vunpack.c.h.bf16 %v8361_v29  ;;  %v8367_v2 = vmul.bf16 %v7091_v63, %v8337_v7 }
 0x23f   : > { %v8371_v61 = vmul.bf16 %v7091_v63, %v8349_v59  ;;  %v8374_v54 = vmul.bf16 %v7091_v63, %v4243_v50  ;;  %v3807_v4 = vsel %vm2418_vm5, %v3805_v36, %v3806_v55  ;;  %v8379_v47 = vmul.bf16 %v10310_v52, %v4801_v5  ;;  %v8393_v5 = vpop.f32.mrb[83].mxu0 }
 0x240   : > { %v3811_v19 = vsel %vm2418_vm5, %v3806_v55, %v3810_v1  ;;  %v8383_v28 = vmul.bf16 %v10310_v52, %v8349_v59  ;;  %v3991_v11 = vadd.f32 %v3807_v4, %v3433_v27  ;;  %v4352_v41 = vunpack.c.h.bf16 %v8367_v2  ;;  %v8396_v4 = vpop.f32.mrb[84].mxu0 }
 0x241   : > { %v3993_v0 = vadd.f32 %v3811_v19, %v3435_v44  ;;  %v4354_v24 = vunpack.c.h.bf16 %v8371_v61  ;;  %v4356_v18 = vunpack.c.h.bf16 %v8374_v54  ;;  %v8389_v12 = vmul.bf16 %v10310_v52, %v4243_v50  ;;  %v10345_v19 = vld [vmem:[#allocation12_spill] sm:$0xff] }
 0x242   : > { %v4921_v33 = vunpack.c.h.bf16 %v8379_v47  ;;  %v4923_v62 = vunpack.c.h.bf16 %v8383_v28  ;;  %v4198_v23 = vadd.f32 %v4134_v15, %v3991_v11  ;;  %v4570_v42 = vrot.slane %v4352_v41, 1 }
 0x243   : > { %v4200_v36 = vadd.f32 %v4136_v46, %v3993_v0  ;;  %v4571_v26 = vrot.slane %v4354_v24, 1  ;;  %v4575_v27 = vrot.slane %v4356_v18, 1  ;;  %v4925_v44 = vunpack.c.h.bf16 %v8389_v12  ;;  %v8402_v46 = vpop.f32.mrb[85].mxu0 }
 0x244   : > { %v5139_v55 = vrot.slane %v4921_v33, 2  ;;  %v5140_v1 = vrot.slane %v4923_v62, 2  ;;  %v865_v31 = vmax.f32 %v10345_v19, 0.0  ;;  %v1543_v20 = vunpack.c.l.bf16 %v8265_v34  ;;  %10346 = vst [vmem:[#allocation9_spill] sm:$0xff] %v8402_v46  ;;  %v8406_v18 = vpop.f32.mrb[86].mxu0 }
 0x245   : > { %v4572_v50 = vsel %vm1859_vm4, %v4570_v42, %v4571_v26  ;;  %v1545_v15 = vunpack.c.l.bf16 %v8269_v45  ;;  %v4576_v11 = vsel %vm1859_vm4, %v4571_v26, %v4575_v27  ;;  %v5144_v24 = vrot.slane %v4925_v44, 2  ;;  %10347 = vst [vmem:[#allocation10_spill] sm:$0xff] %v8406_v18  ;;  %v8412_v34 = vpop.f32.mrb[87].mxu0 }
 0x246   : > { %v4756_v0 = vadd.f32 %v4572_v50, %v4198_v23  ;;  %v5141_v41 = vsel %vm2418_vm5, %v5139_v55, %v5140_v1  ;;  %v4758_v33 = vadd.f32 %v4576_v11, %v4200_v36  ;;  %v8408_v62 = vmin.f32 %v865_v31, 6.0  ;;  %10348 = vst [vmem:[#allocation11_spill] sm:$0xff] %v8412_v34 }
 0x247   : > { %v1703_v42 = vunpack.c.l.bf16 %v8276_v35  ;;  %v1705_v19 = vunpack.c.l.bf16 %v8280_v43  ;;  %v5145_v45 = vsel %vm2418_vm5, %v5140_v1, %v5144_v24  ;;  %v1707_v26 = vunpack.c.l.bf16 %v8288_v25 }
 0x248   : > { %v5325_v46 = vadd.f32 %v5141_v41, %v4756_v0  ;;  %v2262_v23 = vunpack.c.l.bf16 %v8293_v53  ;;  %v5327_v27 = vadd.f32 %v5145_v45, %v4758_v33  ;;  %v2264_v36 = vunpack.c.l.bf16 %v8299_v13 }
 0x249   : > { %v1920_v44 = vrot.slane %v1703_v42, 1  ;;  %v1921_v55 = vrot.slane %v1705_v19, 1  ;;  %v1926_v50 = vrot.slane %v1707_v26, 1  ;;  %v2266_v35 = vunpack.c.l.bf16 %v8302_v37 }
 0x24a   : > { %v5389_v31 = vmax.f32 %v5325_v46, 0.0  ;;  %v2479_v11 = vrot.slane %v2262_v23, 2  ;;  %v5391_v43 = vmax.f32 %v5327_v27, 0.0  ;;  %v2480_v18 = vrot.slane %v2264_v36, 2 }
 0x24b   : > { %v1922_v34 = vsel %vm1859_vm4, %v1920_v44, %v1921_v55  ;;  %v2810_v1 = vunpack.c.l.bf16 %v8306_v30  ;;  %v1927_v25 = vsel %vm1859_vm4, %v1921_v55, %v1926_v50  ;;  %v2485_v41 = vrot.slane %v2266_v35, 2 }
 0x24c   : > { %v5453_v0 = vmin.f32 %v5389_v31, 6.0  ;;  %v2108_v53 = vadd.f32 %v1922_v34, %v1543_v20  ;;  %v5455_v24 = vmin.f32 %v5391_v43, 6.0  ;;  %v2110_v33 = vadd.f32 %v1927_v25, %v1545_v15 }
 0x24d   : > { %v2481_v13 = vsel %vm2418_vm5, %v2479_v11, %v2480_v18  ;;  %v2812_v46 = vunpack.c.l.bf16 %v8314_v16  ;;  %v2486_v37 = vsel %vm2418_vm5, %v2480_v18, %v2485_v41  ;;  %v3028_v19 = vunpack.c.l.bf16 %v8320_v6 }
 0x24e   : > { %v2667_v42 = vadd.f32 %v2481_v13, %v2108_v53  ;;  %v3030_v45 = vunpack.c.l.bf16 %v8326_v9  ;;  %v5505_v26 = vpack.c.bf16 %v5455_v24, %v5453_v0  ;;  %v2669_v30 = vadd.f32 %v2486_v37, %v2110_v33  ;;  %v10349_v37 = vld [vmem:[#allocation13_spill] sm:$0xff] }
 0x24f   : > { %v3032_v23 = vunpack.c.l.bf16 %v8329_v60  ;;  %v3586_v20 = vunpack.c.l.bf16 %v8335_v32  ;;  %v3244_v27 = vrot.slane %v3028_v19, 1  ;;  %v3588_v44 = vunpack.c.l.bf16 %v8343_v39 }
 0x250   : > { %v2874_v34 = vadd.f32 %v2810_v1, %v2667_v42  ;;  %v3245_v15 = vrot.slane %v3030_v45, 1  ;;  %6456 = vmatprep.mubr.msk.bf16.mxu1 %vm5620_vm6, %v5505_v26  ;;  %v2876_v16 = vadd.f32 %v2812_v46, %v2669_v30  ;;  %v3590_v55 = vunpack.c.l.bf16 %v8346_v14 }
 0x251   : > { %v3250_v18 = vrot.slane %v3032_v23, 1  ;;  %v3802_v6 = vrot.slane %v3586_v20, 2  ;;  %v3803_v36 = vrot.slane %v3588_v44, 2  ;;  %v4133_v31 = vunpack.c.l.bf16 %v8353_v49 }
 0x252   : > { %v3246_v9 = vsel %vm1859_vm4, %v3244_v27, %v3245_v15  ;;  %v4135_v60 = vunpack.c.l.bf16 %v8361_v29  ;;  %v3808_v35 = vrot.slane %v3590_v55, 2  ;;  %v4351_v39 = vunpack.c.l.bf16 %v8367_v2 }
 0x253   : > { %v3251_v32 = vsel %vm1859_vm4, %v3245_v15, %v3250_v18  ;;  %v3432_v50 = vadd.f32 %v3246_v9, %v2874_v34  ;;  %v3804_v43 = vsel %vm2418_vm5, %v3802_v6, %v3803_v36  ;;  %v4353_v1 = vunpack.c.l.bf16 %v8371_v61  ;;  %v10350_v34 = vld [vmem:[#allocation14_spill] sm:$0xff] }
 0x254   : > { %v3434_v11 = vadd.f32 %v3251_v32, %v2876_v16  ;;  %v4355_v14 = vunpack.c.l.bf16 %v8374_v54  ;;  %v3809_v0 = vsel %vm2418_vm5, %v3803_v36, %v3808_v35  ;;  %v4567_v53 = vrot.slane %v4351_v39, 1  ;;  %v10351_v36 = vld [vmem:[#allocation15_spill] sm:$0xff] }
 0x255   : > { %v3990_v25 = vadd.f32 %v3804_v43, %v3432_v50  ;;  %v4920_v49 = vunpack.c.l.bf16 %v8379_v47  ;;  %v4568_v41 = vrot.slane %v4353_v1, 1  ;;  %v4922_v33 = vunpack.c.l.bf16 %v8383_v28  ;;  %v2155_v43 = vld [vmem:[#allocation2 + $0xa8] sm:$0xee] }
 0x256   : > { %v3992_v29 = vadd.f32 %v3809_v0, %v3434_v11  ;;  %v4573_v24 = vrot.slane %v4355_v14, 1  ;;  %v4924_v2 = vunpack.c.l.bf16 %v8389_v12  ;;  %v866_v42 = vmax.f32 %v10349_v37, 0.0 }
 0x257   : > { %v4197_v13 = vadd.f32 %v4133_v31, %v3990_v25  ;;  %v5136_v46 = vrot.slane %v4920_v49, 2  ;;  %v4569_v54 = vsel %vm1859_vm4, %v4567_v53, %v4568_v41  ;;  %v5137_v45 = vrot.slane %v4922_v33, 2 }
 0x258   : > { %v4199_v61 = vadd.f32 %v4135_v60, %v3992_v29  ;;  %v4574_v19 = vsel %vm1859_vm4, %v4568_v41, %v4573_v24  ;;  %v5142_v30 = vrot.slane %v4924_v2, 2  ;;  %v974_v47 = vmin.f32 %v866_v42, 6.0  ;;  %v1590_v60 = vld [vmem:[#allocation2 + $0xb8] sm:$0x11] }
 0x259   : > { %v4755_v26 = vadd.f32 %v4569_v54, %v4197_v13  ;;  %v867_v23 = vmax.f32 %v8017_v8, 0.0  ;;  %v5138_v28 = vsel %vm2418_vm5, %v5136_v46, %v5137_v45  ;;  %v868_v27 = vmax.f32 %v10350_v34, 0.0 }
 0x25a   : > { %v4757_v20 = vadd.f32 %v4574_v19, %v4199_v61  ;;  %v869_v12 = vmax.f32 %v8026_v40, 0.0  ;;  %v5143_v15 = vsel %vm2418_vm5, %v5137_v45, %v5142_v30  ;;  %v6538_v16 = vpack.c.bf16 %v974_v47, %v8408_v62  ;;  %v2921_v47 = vld [vmem:[#allocation2 + $0xd0] sm:$0x11] }
 0x25b   : > { %v5324_v44 = vadd.f32 %v5138_v28, %v4755_v26  ;;  %v975_v18 = vmin.f32 %v867_v23, 6.0  ;;  %v976_v6 = vmin.f32 %v868_v27, 6.0  ;;  %v870_v31 = vmax.f32 %v10351_v36, 0.0 }
 0x25c   : > { %v5326_v55 = vadd.f32 %v5143_v15, %v4757_v20  ;;  %v977_v9 = vmin.f32 %v869_v12, 6.0  ;;  %1409 = vst.msk [vmem:[#allocation2 + $0x118] sm:$0xff] %vm7046_vm3, %v6538_v16  ;;  %v8458_v32 = vmul.bf16 %v7050_v17, %v8153_v38  ;;  %v8462_v40 = vmul.bf16 %v7050_v17, %v8155_v3  ;;  %v3479_v20 = vld [vmem:[#allocation2 + $0xc0] sm:$0xee] }
 0x25d   : > { %v5388_v8 = vmax.f32 %v5324_v44, 0.0  ;;  %v8466_v62 = vmul.bf16 %v7054_v21, %v8153_v38  ;;  %v6539_v35 = vpack.c.bf16 %v976_v6, %v975_v18  ;;  %v978_v39 = vmin.f32 %v870_v31, 6.0 }
 0x25e   : > { %v5390_v50 = vmax.f32 %v5326_v55, 0.0  ;;  %v8470_v11 = vmul.bf16 %v7054_v21, %v8155_v3  ;;  %v1548_v14 = vunpack.c.h.bf16 %v8458_v32  ;;  %v1550_v0 = vunpack.c.h.bf16 %v8462_v40 }
 0x25f   : > { %v5452_v1 = vmin.f32 %v5388_v8, 6.0  ;;  %v8475_v25 = vmul.bf16 %v7054_v21, %v1590_v60  ;;  %1410 = vst.msk [vmem:[#allocation2 + $0x120] sm:$0xff] %vm7046_vm3, %v6539_v35  ;;  %v6540_v38 = vpack.c.bf16 %v978_v39, %v977_v9  ;;  %v1710_v49 = vunpack.c.h.bf16 %v8466_v62  ;;  %v8531_v35 = vld [vmem:[#allocation2 + $0xd8] sm:$0xff] }
 0x260   : > { %v5454_v53 = vmin.f32 %v5390_v50, 6.0  ;;  %v1712_v29 = vunpack.c.h.bf16 %v8470_v11  ;;  %v8483_v24 = vmul.bf16 %v7056_v22, %v2155_v43  ;;  %v8487_v33 = vmul.bf16 %v7056_v22, %v8155_v3 }
 0x261   : > { %v1714_v41 = vunpack.c.h.bf16 %v8475_v25  ;;  %v8490_v13 = vmul.bf16 %v7056_v22, %v1590_v60  ;;  %1411 = vst.msk [vmem:[#allocation2 + $0x128] sm:$0xff] %vm7046_vm3, %v6540_v38  ;;  %v1933_v46 = vrot.slane %v1710_v49, 1  ;;  %v8496_v42 = vmul.bf16 %v7072_v56, %v8337_v7 }
 0x262   : > { %v5504_v2 = vpack.c.bf16 %v5454_v53, %v5452_v1  ;;  %v1934_v37 = vrot.slane %v1712_v29, 1  ;;  %v2269_v54 = vunpack.c.h.bf16 %v8483_v24  ;;  %v2271_v19 = vunpack.c.h.bf16 %v8487_v33 }
 0x263   : > { %v1938_v61 = vrot.slane %v1714_v41, 1  ;;  %v2273_v3 = vunpack.c.h.bf16 %v8490_v13  ;;  %v8504_v26 = vmul.bf16 %v7072_v56, %v8349_v59  ;;  %v2815_v30 = vunpack.c.h.bf16 %v8496_v42 }
 0x264   : > { %5750 = vmatmul.mubr.bf16.gmra.mrb[24].mxu1 %v5504_v2  ;;  %v1935_v45 = vsel %vm1859_vm4, %v1933_v46, %v1934_v37  ;;  %v8509_v23 = vmul.bf16 %v7074_v57, %v8337_v7  ;;  %v2492_v27 = vrot.slane %v2269_v54, 2  ;;  %v2493_v12 = vrot.slane %v2271_v19, 2 }
 0x265   : > { %v1939_v28 = vsel %vm1859_vm4, %v1934_v37, %v1938_v61  ;;  %v2113_v34 = vadd.f32 %v1935_v45, %v1548_v14  ;;  %v2497_v44 = vrot.slane %v2273_v3, 2  ;;  %v2817_v16 = vunpack.c.h.bf16 %v8504_v26  ;;  %v4244_v45 = vld [vmem:[#allocation2 + $0xe8] sm:$0x11] }
 0x266   : > { %v2115_v15 = vadd.f32 %v1939_v28, %v1550_v0  ;;  %v8515_v18 = vmul.bf16 %v7074_v57, %v8349_v59  ;;  %v2494_v55 = vsel %vm2418_vm5, %v2492_v27, %v2493_v12  ;;  %v8519_v6 = vmul.bf16 %v7074_v57, %v2921_v47  ;;  %v8537_v0 = vld [vmem:[#allocation2 + $0xe0] sm:$0xff] }
 0x267   : > { %v3035_v9 = vunpack.c.h.bf16 %v8509_v23  ;;  %v8523_v36 = vmul.bf16 %v7076_v51, %v3479_v20  ;;  %v2498_v31 = vsel %vm2418_vm5, %v2493_v12, %v2497_v44  ;;  %v2672_v60 = vadd.f32 %v2494_v55, %v2113_v34  ;;  %v4802_v34 = vld [vmem:[#allocation2 + $0xd8] sm:$0xee] }
 0x268   : > { %v3037_v8 = vunpack.c.h.bf16 %v8515_v18  ;;  %v8529_v50 = vmul.bf16 %v7076_v51, %v8349_v59  ;;  %v2674_v39 = vadd.f32 %v2498_v31, %v2115_v15  ;;  %v3039_v43 = vunpack.c.h.bf16 %v8519_v6 }
 0x269   : > { %v3257_v1 = vrot.slane %v3035_v9, 1  ;;  %v8535_v14 = vmul.bf16 %v7076_v51, %v2921_v47  ;;  %v2879_v53 = vadd.f32 %v2815_v30, %v2672_v60  ;;  %v3593_v49 = vunpack.c.h.bf16 %v8523_v36 }
 0x26a   : > { %v3258_v38 = vrot.slane %v3037_v8, 1  ;;  %v3595_v29 = vunpack.c.h.bf16 %v8529_v50  ;;  %v2881_v41 = vadd.f32 %v2817_v16, %v2674_v39  ;;  %v3262_v2 = vrot.slane %v3039_v43, 1 }
 0x26b   : > { %v3597_v46 = vunpack.c.h.bf16 %v8535_v14  ;;  %v8544_v37 = vmul.bf16 %v7086_v58, %v8531_v35  ;;  %v3815_v54 = vrot.slane %v3593_v49, 2  ;;  %v8549_v3 = vmul.bf16 %v7086_v58, %v8537_v0 }
 0x26c   : > { %v3259_v61 = vsel %vm1859_vm4, %v3257_v1, %v3258_v38  ;;  %v3816_v19 = vrot.slane %v3595_v29, 2  ;;  %v3263_v30 = vsel %vm1859_vm4, %v3258_v38, %v3262_v2  ;;  %v8557_v44 = vmul.bf16 %v7091_v63, %v8531_v35  ;;  %v8580_v29 = vpop.f32.mrb[88].mxu0 }
 0x26d   : > { %v3437_v47 = vadd.f32 %v3259_v61, %v2879_v53  ;;  %v3820_v20 = vrot.slane %v3597_v46, 2  ;;  %v4138_v28 = vunpack.c.h.bf16 %v8544_v37  ;;  %v3439_v27 = vadd.f32 %v3263_v30, %v2881_v41 }
 0x26e   : > { %v3817_v12 = vsel %vm2418_vm5, %v3815_v54, %v3816_v19  ;;  %v4140_v15 = vunpack.c.h.bf16 %v8549_v3  ;;  %v8562_v9 = vmul.bf16 %v7091_v63, %v8537_v0  ;;  %v8565_v31 = vmul.bf16 %v7091_v63, %v4244_v45  ;;  %v8584_v54 = vpop.f32.mrb[89].mxu0 }
 0x26f   : > { %v3821_v16 = vsel %vm2418_vm5, %v3816_v19, %v3820_v20  ;;  %v3995_v55 = vadd.f32 %v3817_v12, %v3437_v47  ;;  %v4358_v8 = vunpack.c.h.bf16 %v8557_v44  ;;  %v8569_v39 = vmul.bf16 %v10310_v52, %v4802_v34 }
 0x270   : > { %v3997_v60 = vadd.f32 %v3821_v16, %v3439_v27  ;;  %v8573_v43 = vmul.bf16 %v10310_v52, %v8537_v0  ;;  %v4360_v53 = vunpack.c.h.bf16 %v8562_v9  ;;  %v4362_v38 = vunpack.c.h.bf16 %v8565_v31 }
 0x271   : > { %v4202_v1 = vadd.f32 %v4138_v28, %v3995_v55  ;;  %v8578_v49 = vmul.bf16 %v10310_v52, %v4244_v45  ;;  %v4580_v2 = vrot.slane %v4358_v8, 1  ;;  %v4927_v46 = vunpack.c.h.bf16 %v8569_v39  ;;  %v8588_v28 = vpop.f32.mrb[90].mxu0 }
 0x272   : > { %v4204_v41 = vadd.f32 %v4140_v15, %v3997_v60  ;;  %v4929_v61 = vunpack.c.h.bf16 %v8573_v43  ;;  %v4581_v19 = vrot.slane %v4360_v53, 1  ;;  %v4585_v30 = vrot.slane %v4362_v38, 1  ;;  %10352 = vst [vmem:[#allocation12_spill] sm:$0xff] %v8588_v28  ;;  %v8592_v15 = vpop.f32.mrb[91].mxu0 }
 0x273   : > { %v4931_v47 = vunpack.c.h.bf16 %v8578_v49  ;;  %v1547_v20 = vunpack.c.l.bf16 %v8458_v32  ;;  %v5149_v45 = vrot.slane %v4927_v46, 2  ;;  %v1549_v27 = vunpack.c.l.bf16 %v8462_v40  ;;  %10353 = vst [vmem:[#allocation13_spill] sm:$0xff] %v8592_v15  ;;  %v8597_v53 = vpop.f32.mrb[92].mxu0 }
 0x274   : > { %v5150_v34 = vrot.slane %v4929_v61, 2  ;;  %v1709_v12 = vunpack.c.l.bf16 %v8466_v62  ;;  %v4582_v16 = vsel %vm1859_vm4, %v4580_v2, %v4581_v19  ;;  %v4586_v55 = vsel %vm1859_vm4, %v4581_v19, %v4585_v30  ;;  %10354 = vst [vmem:[#allocation14_spill] sm:$0xff] %v8597_v53  ;;  %v8601_v40 = vpop.f32.mrb[93].mxu0 }
 0x275   : > { %v5154_v60 = vrot.slane %v4931_v47, 2  ;;  %v1711_v8 = vunpack.c.l.bf16 %v8470_v11  ;;  %v4760_v32 = vadd.f32 %v4582_v16, %v4202_v1  ;;  %v4762_v38 = vadd.f32 %v4586_v55, %v4204_v41  ;;  %10355 = vst [vmem:[#allocation15_spill] sm:$0xff] %v8601_v40  ;;  %v10363_v40 = vld [vmem:[#allocation8_spill] sm:$0xff] }
 0x276   : > { %v5151_v46 = vsel %vm2418_vm5, %v5149_v45, %v5150_v34  ;;  %v1713_v61 = vunpack.c.l.bf16 %v8475_v25  ;;  %v1930_v15 = vrot.slane %v1709_v12, 1  ;;  %v2268_v2 = vunpack.c.l.bf16 %v8483_v24 }
 0x277   : > { %v5155_v62 = vsel %vm2418_vm5, %v5150_v34, %v5154_v60  ;;  %v1931_v28 = vrot.slane %v1711_v8, 1  ;;  %v5329_v19 = vadd.f32 %v5151_v46, %v4760_v32  ;;  %v2270_v11 = vunpack.c.l.bf16 %v8487_v33 }
 0x278   : > { %v5331_v30 = vadd.f32 %v5155_v62, %v4762_v38  ;;  %v1936_v47 = vrot.slane %v1713_v61, 1  ;;  %v2272_v41 = vunpack.c.l.bf16 %v8490_v13  ;;  %v2489_v45 = vrot.slane %v2268_v2, 2 }
 0x279   : > { %v1932_v1 = vsel %vm1859_vm4, %v1930_v15, %v1931_v28  ;;  %v2814_v25 = vunpack.c.l.bf16 %v8496_v42  ;;  %v5393_v16 = vmax.f32 %v5329_v19, 0.0  ;;  %v2490_v8 = vrot.slane %v2270_v11, 2 }
 0x27a   : > { %v5395_v55 = vmax.f32 %v5331_v30, 0.0  ;;  %v1937_v34 = vsel %vm1859_vm4, %v1931_v28, %v1936_v47  ;;  %v2112_v12 = vadd.f32 %v1932_v1, %v1547_v20  ;;  %v2495_v24 = vrot.slane %v2272_v41, 2 }
 0x27b   : > { %v2114_v60 = vadd.f32 %v1937_v34, %v1549_v27  ;;  %v2816_v32 = vunpack.c.l.bf16 %v8504_v26  ;;  %v5457_v38 = vmin.f32 %v5393_v16, 6.0  ;;  %v3034_v33 = vunpack.c.l.bf16 %v8509_v23 }
 0x27c   : > { %v5459_v46 = vmin.f32 %v5395_v55, 6.0  ;;  %v3036_v15 = vunpack.c.l.bf16 %v8515_v18  ;;  %v2491_v13 = vsel %vm2418_vm5, %v2489_v45, %v2490_v8  ;;  %v2496_v42 = vsel %vm2418_vm5, %v2490_v8, %v2495_v24 }
 0x27d   : > { %v3038_v61 = vunpack.c.l.bf16 %v8519_v6  ;;  %v3592_v28 = vunpack.c.l.bf16 %v8523_v36  ;;  %v2671_v27 = vadd.f32 %v2491_v13, %v2112_v12  ;;  %v2673_v62 = vadd.f32 %v2496_v42, %v2114_v60 }
 0x27e   : > { %v5507_v20 = vpack.c.bf16 %v5459_v46, %v5457_v38  ;;  %v3254_v2 = vrot.slane %v3034_v33, 1  ;;  %v3255_v19 = vrot.slane %v3036_v15, 1  ;;  %v3594_v30 = vunpack.c.l.bf16 %v8529_v50 }
 0x27f   : > { %v3260_v26 = vrot.slane %v3038_v61, 1  ;;  %v3596_v23 = vunpack.c.l.bf16 %v8535_v14  ;;  %v2878_v18 = vadd.f32 %v2814_v25, %v2671_v27  ;;  %v2880_v47 = vadd.f32 %v2816_v32, %v2673_v62  ;;  %v10356_v62 = vld [vmem:[#allocation16_spill] sm:$0xff] }
 0x280   : > { %6457 = vmatprep.mubr.msk.bf16.mxu1 %vm5620_vm6, %v5507_v20  ;;  %v3812_v11 = vrot.slane %v3592_v28, 2  ;;  %v4137_v1 = vunpack.c.l.bf16 %v8544_v37  ;;  %v3256_v6 = vsel %vm1859_vm4, %v3254_v2, %v3255_v19  ;;  %v3813_v41 = vrot.slane %v3594_v30, 2  ;;  %v10358_v30 = vld [vmem:[#allocation7_spill] sm:$0xff] }
 0x281   : > { %v3261_v36 = vsel %vm1859_vm4, %v3255_v19, %v3260_v26  ;;  %v3818_v45 = vrot.slane %v3596_v23, 2  ;;  %v3436_v16 = vadd.f32 %v3256_v6, %v2878_v18  ;;  %v4139_v34 = vunpack.c.l.bf16 %v8549_v3  ;;  %v10357_v19 = vld [vmem:[#allocation6_spill] sm:$0xff] }
 0x282   : > { %v3438_v55 = vadd.f32 %v3261_v36, %v2880_v47  ;;  %v4357_v50 = vunpack.c.l.bf16 %v8557_v44  ;;  %v3814_v14 = vsel %vm2418_vm5, %v3812_v11, %v3813_v41  ;;  %v4359_v12 = vunpack.c.l.bf16 %v8562_v9  ;;  %v10359_v11 = vld [vmem:[#allocation17_spill] sm:$0xff] }
 0x283   : > { %v3819_v25 = vsel %vm2418_vm5, %v3813_v41, %v3818_v45  ;;  %v4361_v37 = vunpack.c.l.bf16 %v8565_v31  ;;  %v3994_v60 = vadd.f32 %v3814_v14, %v3436_v16  ;;  %v4926_v32 = vunpack.c.l.bf16 %v8569_v39  ;;  %v10360_v41 = vld [vmem:[#allocation18_spill] sm:$0xff] }
 0x284   : > { %v3996_v8 = vadd.f32 %v3819_v25, %v3438_v55  ;;  %v4577_v24 = vrot.slane %v4357_v50, 1  ;;  %v4578_v38 = vrot.slane %v4359_v12, 1  ;;  %v4928_v33 = vunpack.c.l.bf16 %v8573_v43  ;;  %v2156_v55 = vld [vmem:[#allocation2 + $0xc0] sm:$0xee]  ;;  %v1591_v12 = vld [vmem:[#allocation2 + $0xd0] sm:$0x11] }
 0x285   : > { %v4583_v46 = vrot.slane %v4361_v37, 1  ;;  %v4930_v3 = vunpack.c.l.bf16 %v8578_v49  ;;  %v4201_v44 = vadd.f32 %v4137_v1, %v3994_v60  ;;  %v5146_v13 = vrot.slane %v4926_v32, 2 }
 0x286   : > { %v4203_v15 = vadd.f32 %v4139_v34, %v3996_v8  ;;  %v871_v42 = vmax.f32 %v8198_v48, 0.0  ;;  %v4579_v9 = vsel %vm1859_vm4, %v4577_v24, %v4578_v38  ;;  %v5147_v61 = vrot.slane %v4928_v33, 2 }
 0x287   : > { %v4584_v31 = vsel %vm1859_vm4, %v4578_v38, %v4583_v46  ;;  %v5152_v28 = vrot.slane %v4930_v3, 2  ;;  %v4759_v20 = vadd.f32 %v4579_v9, %v4201_v44  ;;  %v872_v2 = vmax.f32 %v10356_v62, 0.0  ;;  %v8661_v3 = vpop.f32.mrb[94].mxu0 }
 0x288   : > { %v4761_v27 = vadd.f32 %v4584_v31, %v4203_v15  ;;  %v979_v39 = vmin.f32 %v871_v42, 6.0  ;;  %v5148_v43 = vsel %vm2418_vm5, %v5146_v13, %v5147_v61  ;;  %v873_v26 = vmax.f32 %v10357_v19, 0.0  ;;  %10361 = vst [vmem:[#allocation16_spill] sm:$0xff] %v8661_v3 }
 0x289   : > { %v5153_v49 = vsel %vm2418_vm5, %v5147_v61, %v5152_v28  ;;  %v874_v23 = vmax.f32 %v10358_v30, 0.0  ;;  %v5328_v48 = vadd.f32 %v5148_v43, %v4759_v20  ;;  %v980_v47 = vmin.f32 %v872_v2, 6.0 }
 0x28a   : > { %v5330_v18 = vadd.f32 %v5153_v49, %v4761_v27  ;;  %v875_v1 = vmax.f32 %v10359_v11, 0.0  ;;  %v981_v6 = vmin.f32 %v873_v26, 6.0  ;;  %v876_v45 = vmax.f32 %v10360_v41, 0.0 }
 0x28b   : > { %v982_v36 = vmin.f32 %v874_v23, 6.0  ;;  %v8644_v16 = vmul.bf16 %v7050_v17, %v8337_v7  ;;  %v5392_v34 = vmax.f32 %v5328_v48, 0.0  ;;  %v6541_v14 = vpack.c.bf16 %v980_v47, %v979_v39  ;;  %v2922_v23 = vld [vmem:[#allocation2 + $0xe8] sm:$0x11] }
 0x28c   : > { %v5394_v50 = vmax.f32 %v5330_v18, 0.0  ;;  %v983_v25 = vmin.f32 %v875_v1, 6.0  ;;  %v984_v60 = vmin.f32 %v876_v45, 6.0  ;;  %v8648_v8 = vmul.bf16 %v7050_v17, %v8349_v59  ;;  %v3480_v1 = vld [vmem:[#allocation2 + $0xd8] sm:$0xee] }
 0x28d   : > { %v6542_v37 = vpack.c.bf16 %v982_v36, %v981_v6  ;;  %v1552_v24 = vunpack.c.h.bf16 %v8644_v16  ;;  %v5456_v32 = vmin.f32 %v5392_v34, 6.0  ;;  %1412 = vst.msk [vmem:[#allocation2 + $0x130] sm:$0xff] %vm7046_vm3, %v6541_v14  ;;  %v8655_v46 = vmul.bf16 %v7054_v21, %v8337_v7 }
 0x28e   : > { %v5458_v38 = vmin.f32 %v5394_v50, 6.0  ;;  %v8659_v33 = vmul.bf16 %v7054_v21, %v8349_v59  ;;  %v6543_v44 = vpack.c.bf16 %v984_v60, %v983_v25  ;;  %v1554_v15 = vunpack.c.h.bf16 %v8648_v8 }
 0x28f   : > { %1413 = vst.msk [vmem:[#allocation2 + $0x138] sm:$0xff] %vm7046_vm3, %v6542_v37  ;;  %v8667_v13 = vmul.bf16 %v7054_v21, %v1591_v12  ;;  %v8670_v42 = vmul.bf16 %v7056_v22, %v2156_v55  ;;  %v1716_v9 = vunpack.c.h.bf16 %v8655_v46  ;;  %v8676_v61 = vmul.bf16 %v7056_v22, %v8349_v59 }
 0x290   : > { %v5506_v7 = vpack.c.bf16 %v5458_v38, %v5456_v32  ;;  %v1718_v31 = vunpack.c.h.bf16 %v8659_v33  ;;  %1414 = vst.msk [vmem:[#allocation2 + $0x140] sm:$0xff] %vm7046_vm3, %v6543_v44  ;;  %v8682_v20 = vmul.bf16 %v7056_v22, %v1591_v12  ;;  %v8687_v39 = vmul.bf16 %v7072_v56, %v8531_v35 }
 0x291   : > { %v1720_v28 = vunpack.c.h.bf16 %v8667_v13  ;;  %v2275_v27 = vunpack.c.h.bf16 %v8670_v42  ;;  %v1943_v62 = vrot.slane %v1716_v9, 1  ;;  %v2277_v59 = vunpack.c.h.bf16 %v8676_v61 }
 0x292   : > { %5758 = vmatmul.mubr.bf16.gmra.mrb[28].mxu1 %v5506_v7  ;;  %v1944_v2 = vrot.slane %v1718_v31, 1  ;;  %v8692_v43 = vmul.bf16 %v7072_v56, %v8537_v0  ;;  %v2279_v19 = vunpack.c.h.bf16 %v8682_v20  ;;  %v2819_v30 = vunpack.c.h.bf16 %v8687_v39  ;;  %v8724_v7 = vld [vmem:[#allocation2 + $0xf8] sm:$0xff] }
 0x293   : > { %v1948_v49 = vrot.slane %v1720_v28, 1  ;;  %v2502_v26 = vrot.slane %v2275_v27, 2  ;;  %v2503_v18 = vrot.slane %v2277_v59, 2  ;;  %v8700_v11 = vmul.bf16 %v7074_v57, %v8531_v35 }
 0x294   : > { %v1945_v48 = vsel %vm1859_vm4, %v1943_v62, %v1944_v2  ;;  %v2821_v47 = vunpack.c.h.bf16 %v8692_v43  ;;  %v2507_v41 = vrot.slane %v2279_v19, 2  ;;  %v8705_v45 = vmul.bf16 %v7074_v57, %v8537_v0 }
 0x295   : > { %v1949_v6 = vsel %vm1859_vm4, %v1944_v2, %v1948_v49  ;;  %v2117_v36 = vadd.f32 %v1945_v48, %v1552_v24  ;;  %v2504_v34 = vsel %vm2418_vm5, %v2502_v26, %v2503_v18  ;;  %v8709_v50 = vmul.bf16 %v7074_v57, %v2922_v23  ;;  %v8717_v24 = vld [vmem:[#allocation2 + $0xf0] sm:$0xff] }
 0x296   : > { %v2119_v55 = vadd.f32 %v1949_v6, %v1554_v15  ;;  %v3041_v14 = vunpack.c.h.bf16 %v8700_v11  ;;  %v2508_v25 = vsel %vm2418_vm5, %v2503_v18, %v2507_v41  ;;  %v3043_v37 = vunpack.c.h.bf16 %v8705_v45  ;;  %v4803_v18 = vld [vmem:[#allocation2 + $0xf0] sm:$0xee] }
 0x297   : > { %v2676_v12 = vadd.f32 %v2504_v34, %v2117_v36  ;;  %v8715_v60 = vmul.bf16 %v7076_v51, %v3480_v1  ;;  %v3045_v38 = vunpack.c.h.bf16 %v8709_v50  ;;  %v8722_v15 = vmul.bf16 %v7076_v51, %v8537_v0 }
 0x298   : > { %v2678_v32 = vadd.f32 %v2508_v25, %v2119_v55  ;;  %v3267_v44 = vrot.slane %v3041_v14, 1  ;;  %v3268_v31 = vrot.slane %v3043_v37, 1  ;;  %v8727_v28 = vmul.bf16 %v7076_v51, %v2922_v23  ;;  %v4245_v23 = vld [vmem:[#allocation2 + $0x100] sm:$0x11] }
 0x299   : > { %v2883_v9 = vadd.f32 %v2819_v30, %v2676_v12  ;;  %v3599_v27 = vunpack.c.h.bf16 %v8715_v60  ;;  %v3272_v2 = vrot.slane %v3045_v38, 1  ;;  %v3601_v59 = vunpack.c.h.bf16 %v8722_v15 }
 0x29a   : > { %v2885_v62 = vadd.f32 %v2821_v47, %v2678_v32  ;;  %v8733_v49 = vmul.bf16 %v7086_v58, %v8717_v24  ;;  %v3269_v19 = vsel %vm1859_vm4, %v3267_v44, %v3268_v31  ;;  %v3603_v26 = vunpack.c.h.bf16 %v8727_v28 }
 0x29b   : > { %v3825_v48 = vrot.slane %v3599_v27, 2  ;;  %v8739_v30 = vmul.bf16 %v7086_v58, %v8724_v7  ;;  %v3273_v47 = vsel %vm1859_vm4, %v3268_v31, %v3272_v2  ;;  %v3441_v1 = vadd.f32 %v3269_v19, %v2883_v9 }
 0x29c   : > { %v3826_v6 = vrot.slane %v3601_v59, 2  ;;  %v4142_v36 = vunpack.c.h.bf16 %v8733_v49  ;;  %v3443_v41 = vadd.f32 %v3273_v47, %v2885_v62  ;;  %v3830_v55 = vrot.slane %v3603_v26, 2  ;;  %v8772_v47 = vpop.f32.mrb[95].mxu0 }
 0x29d   : > { %v4144_v34 = vunpack.c.h.bf16 %v8739_v30  ;;  %v8746_v14 = vmul.bf16 %v7091_v63, %v8717_v24  ;;  %v8751_v12 = vmul.bf16 %v7091_v63, %v8724_v7  ;;  %v8754_v37 = vmul.bf16 %v7091_v63, %v4245_v23  ;;  %10362 = vst [vmem:[#allocation6_spill] sm:$0xff] %v8772_v47 }
 0x29e   : > { %v3827_v25 = vsel %vm2418_vm5, %v3825_v48, %v3826_v6  ;;  %v8757_v32 = vmul.bf16 %v10310_v52, %v4803_v18  ;;  %v3831_v38 = vsel %vm2418_vm5, %v3826_v6, %v3830_v55  ;;  %v8763_v31 = vmul.bf16 %v10310_v52, %v8724_v7 }
 0x29f   : > { %v3999_v44 = vadd.f32 %v3827_v25, %v3441_v1  ;;  %v4364_v9 = vunpack.c.h.bf16 %v8746_v14  ;;  %v4001_v27 = vadd.f32 %v3831_v38, %v3443_v41  ;;  %v4366_v62 = vunpack.c.h.bf16 %v8751_v12  ;;  %v8775_v25 = vpop.f32.mrb[96].mxu0 }
 0x2a0   : > { %v4368_v2 = vunpack.c.h.bf16 %v8754_v37  ;;  %v8768_v59 = vmul.bf16 %v10310_v52, %v4245_v23  ;;  %v4933_v48 = vunpack.c.h.bf16 %v8757_v32  ;;  %v4935_v18 = vunpack.c.h.bf16 %v8763_v31 }
 0x2a1   : > { %v4206_v19 = vadd.f32 %v4142_v36, %v3999_v44  ;;  %v4590_v26 = vrot.slane %v4364_v9, 1  ;;  %v4208_v1 = vadd.f32 %v4144_v34, %v4001_v27  ;;  %v4591_v6 = vrot.slane %v4366_v62, 1  ;;  %v8779_v44 = vpop.f32.mrb[97].mxu0 }
 0x2a2   : > { %v4595_v55 = vrot.slane %v4368_v2, 1  ;;  %v4937_v41 = vunpack.c.h.bf16 %v8768_v59  ;;  %v5159_v38 = vrot.slane %v4933_v48, 2  ;;  %v5160_v3 = vrot.slane %v4935_v18, 2  ;;  %10364 = vst [vmem:[#allocation7_spill] sm:$0xff] %v8779_v44  ;;  %v8784_v27 = vpop.f32.mrb[98].mxu0 }
 0x2a3   : > { %v877_v23 = vmax.f32 %v10363_v40, 0.0  ;;  %v1551_v36 = vunpack.c.l.bf16 %v8644_v16  ;;  %v4592_v9 = vsel %vm1859_vm4, %v4590_v26, %v4591_v6  ;;  %v1553_v34 = vunpack.c.l.bf16 %v8648_v8  ;;  %v8789_v40 = vpop.f32.mrb[99].mxu0 }
 0x2a4   : > { %v4596_v53 = vsel %vm1859_vm4, %v4591_v6, %v4595_v55  ;;  %v5164_v47 = vrot.slane %v4937_v41, 2  ;;  %v4764_v62 = vadd.f32 %v4592_v9, %v4206_v19  ;;  %v5161_v48 = vsel %vm2418_vm5, %v5159_v38, %v5160_v3  ;;  %10365 = vst [vmem:[#allocation17_spill] sm:$0xff] %v8789_v40 }
 0x2a5   : > { %v4766_v2 = vadd.f32 %v4596_v53, %v4208_v1  ;;  %v8787_v18 = vmin.f32 %v877_v23, 6.0  ;;  %v1715_v44 = vunpack.c.l.bf16 %v8655_v46  ;;  %v1717_v26 = vunpack.c.l.bf16 %v8659_v33 }
 0x2a6   : > { %v5165_v16 = vsel %vm2418_vm5, %v5160_v3, %v5164_v47  ;;  %v1719_v6 = vunpack.c.l.bf16 %v8667_v13  ;;  %v5333_v55 = vadd.f32 %v5161_v48, %v4764_v62  ;;  %v2274_v41 = vunpack.c.l.bf16 %v8670_v42 }
 0x2a7   : > { %v5335_v8 = vadd.f32 %v5165_v16, %v4766_v2  ;;  %v2276_v53 = vunpack.c.l.bf16 %v8676_v61  ;;  %v1940_v19 = vrot.slane %v1715_v44, 1  ;;  %v1941_v1 = vrot.slane %v1717_v26, 1 }
 0x2a8   : > { %v1946_v38 = vrot.slane %v1719_v6, 1  ;;  %v2278_v23 = vunpack.c.l.bf16 %v8682_v20  ;;  %v5397_v9 = vmax.f32 %v5333_v55, 0.0  ;;  %v2499_v3 = vrot.slane %v2274_v41, 2 }
 0x2a9   : > { %v5399_v40 = vmax.f32 %v5335_v8, 0.0  ;;  %v2500_v47 = vrot.slane %v2276_v53, 2  ;;  %v1942_v46 = vsel %vm1859_vm4, %v1940_v19, %v1941_v1  ;;  %v2818_v62 = vunpack.c.l.bf16 %v8687_v39 }
 0x2aa   : > { %v1947_v33 = vsel %vm1859_vm4, %v1941_v1, %v1946_v38  ;;  %v2505_v13 = vrot.slane %v2278_v23, 2  ;;  %v5461_v2 = vmin.f32 %v5397_v9, 6.0  ;;  %v2116_v48 = vadd.f32 %v1942_v46, %v1551_v36 }
 0x2ab   : > { %v5463_v42 = vmin.f32 %v5399_v40, 6.0  ;;  %v2118_v61 = vadd.f32 %v1947_v33, %v1553_v34  ;;  %v2501_v44 = vsel %vm2418_vm5, %v2499_v3, %v2500_v47  ;;  %v2820_v20 = vunpack.c.l.bf16 %v8692_v43 }
 0x2ac   : > { %v2506_v16 = vsel %vm2418_vm5, %v2500_v47, %v2505_v13  ;;  %v3040_v26 = vunpack.c.l.bf16 %v8700_v11  ;;  %v2675_v55 = vadd.f32 %v2501_v44, %v2116_v48  ;;  %v3042_v41 = vunpack.c.l.bf16 %v8705_v45 }
 0x2ad   : > { %v5509_v6 = vpack.c.bf16 %v5463_v42, %v5461_v2  ;;  %v2677_v8 = vadd.f32 %v2506_v16, %v2118_v61  ;;  %v3044_v53 = vunpack.c.l.bf16 %v8709_v50  ;;  %v3598_v40 = vunpack.c.l.bf16 %v8715_v60 }
 0x2ae   : > { %v3264_v39 = vrot.slane %v3040_v26, 1  ;;  %v3600_v36 = vunpack.c.l.bf16 %v8722_v15  ;;  %v2882_v34 = vadd.f32 %v2818_v62, %v2675_v55  ;;  %v3265_v1 = vrot.slane %v3042_v41, 1 }
 0x2af   : > { %6458 = vmatprep.mubr.msk.bf16.mxu1 %vm5620_vm6, %v5509_v6  ;;  %v2884_v19 = vadd.f32 %v2820_v20, %v2677_v8  ;;  %v3602_v43 = vunpack.c.l.bf16 %v8727_v28  ;;  %v3270_v11 = vrot.slane %v3044_v53, 1  ;;  %v3822_v38 = vrot.slane %v3598_v40, 2 }
 0x2b0   : > { %v3823_v23 = vrot.slane %v3600_v36, 2  ;;  %v4141_v9 = vunpack.c.l.bf16 %v8733_v49  ;;  %v3266_v45 = vsel %vm1859_vm4, %v3264_v39, %v3265_v1  ;;  %v4143_v3 = vunpack.c.l.bf16 %v8739_v30  ;;  %v10366_v39 = vld [vmem:[#allocation9_spill] sm:$0xff] }
 0x2b1   : > { %v3828_v50 = vrot.slane %v3602_v43, 2  ;;  %v4363_v60 = vunpack.c.l.bf16 %v8746_v14  ;;  %v3271_v15 = vsel %vm1859_vm4, %v3265_v1, %v3270_v11  ;;  %v3440_v47 = vadd.f32 %v3266_v45, %v2882_v34  ;;  %v10367_v34 = vld [vmem:[#allocation10_spill] sm:$0xff] }
 0x2b2   : > { %v3824_v46 = vsel %vm2418_vm5, %v3822_v38, %v3823_v23  ;;  %v4365_v33 = vunpack.c.l.bf16 %v8751_v12  ;;  %v3442_v28 = vadd.f32 %v3271_v15, %v2884_v19  ;;  %v4367_v62 = vunpack.c.l.bf16 %v8754_v37  ;;  %v10368_v38 = vld [vmem:[#allocation11_spill] sm:$0xff] }
 0x2b3   : > { %v3829_v13 = vsel %vm2418_vm5, %v3823_v23, %v3828_v50  ;;  %v4587_v49 = vrot.slane %v4363_v60, 1  ;;  %v3998_v2 = vadd.f32 %v3824_v46, %v3440_v47  ;;  %v4932_v48 = vunpack.c.l.bf16 %v8757_v32  ;;  %v2157_v46 = vld [vmem:[#allocation2 + $0xd8] sm:$0xee] }
 0x2b4   : > { %v4588_v42 = vrot.slane %v4365_v33, 1  ;;  %v4934_v30 = vunpack.c.l.bf16 %v8763_v31  ;;  %v4000_v14 = vadd.f32 %v3829_v13, %v3442_v28  ;;  %v4593_v61 = vrot.slane %v4367_v62, 1 }
 0x2b5   : > { %v4936_v44 = vunpack.c.l.bf16 %v8768_v59  ;;  %v878_v16 = vmax.f32 %v8393_v5, 0.0  ;;  %v4205_v20 = vadd.f32 %v4141_v9, %v3998_v2  ;;  %v5156_v26 = vrot.slane %v4932_v48, 2 }
 0x2b6   : > { %v4589_v12 = vsel %vm1859_vm4, %v4587_v49, %v4588_v42  ;;  %v5157_v6 = vrot.slane %v4934_v30, 2  ;;  %v4207_v55 = vadd.f32 %v4143_v3, %v4000_v14  ;;  %v4594_v37 = vsel %vm1859_vm4, %v4588_v42, %v4593_v61 }
 0x2b7   : > { %v5162_v8 = vrot.slane %v4936_v44, 2  ;;  %v986_v41 = vmin.f32 %v878_v16, 6.0  ;;  %v4763_v53 = vadd.f32 %v4589_v12, %v4205_v20  ;;  %v879_v31 = vmax.f32 %v8396_v4, 0.0 }
 0x2b8   : > { %v5158_v32 = vsel %vm2418_vm5, %v5156_v26, %v5157_v6  ;;  %v880_v40 = vmax.f32 %v10366_v39, 0.0  ;;  %v4765_v59 = vadd.f32 %v4594_v37, %v4207_v55  ;;  %v881_v19 = vmax.f32 %v10367_v34, 0.0 }
 0x2b9   : > { %v5163_v5 = vsel %vm2418_vm5, %v5157_v6, %v5162_v8  ;;  %v6544_v36 = vpack.c.bf16 %v986_v41, %v8787_v18  ;;  %v5332_v1 = vadd.f32 %v5158_v32, %v4763_v53  ;;  %v987_v43 = vmin.f32 %v879_v31, 6.0  ;;  %v1592_v18 = vld [vmem:[#allocation2 + $0xe8] sm:$0x11]  ;;  %v2923_v32 = vld [vmem:[#allocation2 + $0x100] sm:$0x11] }
 0x2ba   : > { %v988_v11 = vmin.f32 %v880_v40, 6.0  ;;  %v882_v23 = vmax.f32 %v10368_v38, 0.0  ;;  %v5334_v9 = vadd.f32 %v5163_v5, %v4765_v59  ;;  %v989_v45 = vmin.f32 %v881_v19, 6.0  ;;  %v3481_v5 = vld [vmem:[#allocation2 + $0xf0] sm:$0xee] }
 0x2bb   : > { %1415 = vst.msk [vmem:[#allocation2 + $0x148] sm:$0xff] %vm7046_vm3, %v6544_v36  ;;  %v8837_v4 = vmul.bf16 %v7050_v17, %v8531_v35  ;;  %v8841_v50 = vmul.bf16 %v7050_v17, %v8537_v0  ;;  %v5396_v3 = vmax.f32 %v5332_v1, 0.0  ;;  %v8845_v47 = vmul.bf16 %v7054_v21, %v8531_v35 }
 0x2bc   : > { %v6545_v60 = vpack.c.bf16 %v988_v11, %v987_v43  ;;  %v990_v15 = vmin.f32 %v882_v23, 6.0  ;;  %v5398_v33 = vmax.f32 %v5334_v9, 0.0  ;;  %v8851_v62 = vmul.bf16 %v7054_v21, %v8537_v0 }
 0x2bd   : > { %v1556_v28 = vunpack.c.h.bf16 %v8837_v4  ;;  %v1558_v13 = vunpack.c.h.bf16 %v8841_v50  ;;  %v5460_v49 = vmin.f32 %v5396_v3, 6.0  ;;  %v8856_v42 = vmul.bf16 %v7054_v21, %v1592_v18 }
 0x2be   : > { %1416 = vst.msk [vmem:[#allocation2 + $0x150] sm:$0xff] %vm7046_vm3, %v6545_v60  ;;  %v6546_v2 = vpack.c.bf16 %v990_v15, %v989_v45  ;;  %v1722_v35 = vunpack.c.h.bf16 %v8845_v47  ;;  %v5462_v48 = vmin.f32 %v5398_v33, 6.0  ;;  %v1724_v30 = vunpack.c.h.bf16 %v8851_v62 }
 0x2bf   : > { %v8861_v14 = vmul.bf16 %v7056_v22, %v2157_v46  ;;  %v8865_v61 = vmul.bf16 %v7056_v22, %v8537_v0  ;;  %v1726_v44 = vunpack.c.h.bf16 %v8856_v42  ;;  %v8871_v20 = vmul.bf16 %v7056_v22, %v1592_v18 }
 0x2c0   : > { %1417 = vst.msk [vmem:[#allocation2 + $0x158] sm:$0xff] %vm7046_vm3, %v6546_v2  ;;  %v1953_v16 = vrot.slane %v1722_v35, 1  ;;  %v8875_v12 = vmul.bf16 %v7072_v56, %v8717_v24  ;;  %v5508_v26 = vpack.c.bf16 %v5462_v48, %v5460_v49  ;;  %v1954_v6 = vrot.slane %v1724_v30, 1 }
 0x2c1   : > { %v2281_v55 = vunpack.c.h.bf16 %v8861_v14  ;;  %v2283_v0 = vunpack.c.h.bf16 %v8865_v61  ;;  %v1958_v37 = vrot.slane %v1726_v44, 1  ;;  %v2285_v8 = vunpack.c.h.bf16 %v8871_v20 }
 0x2c2   : > { %v8882_v41 = vmul.bf16 %v7072_v56, %v8724_v7  ;;  %v2823_v53 = vunpack.c.h.bf16 %v8875_v12  ;;  %5766 = vmatmul.mubr.bf16.gmra.mrb[32].mxu1 %v5508_v26  ;;  %v1955_v31 = vsel %vm1859_vm4, %v1953_v16, %v1954_v6  ;;  %v8888_v59 = vmul.bf16 %v7074_v57, %v8717_v24 }
 0x2c3   : > { %v2512_v39 = vrot.slane %v2281_v55, 2  ;;  %v2513_v40 = vrot.slane %v2283_v0, 2  ;;  %v1959_v36 = vsel %vm1859_vm4, %v1954_v6, %v1958_v37  ;;  %v2121_v34 = vadd.f32 %v1955_v31, %v1556_v28  ;;  %v8911_v28 = vld [vmem:[#allocation2 + $0x108] sm:$0xff] }
 0x2c4   : > { %v2517_v19 = vrot.slane %v2285_v8, 2  ;;  %v2825_v1 = vunpack.c.h.bf16 %v8882_v41  ;;  %v2123_v43 = vadd.f32 %v1959_v36, %v1558_v13  ;;  %v8895_v38 = vmul.bf16 %v7074_v57, %v8724_v7  ;;  %v8913_v13 = vld [vmem:[#allocation2 + $0x110] sm:$0xff]  ;;  %v4246_v8 = vld [vmem:[#allocation2 + $0x118] sm:$0x11] }
 0x2c5   : > { %v2514_v11 = vsel %vm2418_vm5, %v2512_v39, %v2513_v40  ;;  %v8898_v23 = vmul.bf16 %v7074_v57, %v2923_v32  ;;  %v3047_v18 = vunpack.c.h.bf16 %v8888_v59  ;;  %v8903_v3 = vmul.bf16 %v7076_v51, %v3481_v5 }
 0x2c6   : > { %v2518_v9 = vsel %vm2418_vm5, %v2513_v40, %v2517_v19  ;;  %v2680_v45 = vadd.f32 %v2514_v11, %v2121_v34  ;;  %v3049_v15 = vunpack.c.h.bf16 %v8895_v38  ;;  %v8909_v33 = vmul.bf16 %v7076_v51, %v8724_v7  ;;  %v4804_v40 = vld [vmem:[#allocation2 + $0x108] sm:$0xee] }
 0x2c7   : > { %v2682_v60 = vadd.f32 %v2518_v9, %v2123_v43  ;;  %v3051_v46 = vunpack.c.h.bf16 %v8898_v23  ;;  %v3277_v2 = vrot.slane %v3047_v18, 1  ;;  %v8916_v35 = vmul.bf16 %v7076_v51, %v2923_v32 }
 0x2c8   : > { %v2887_v49 = vadd.f32 %v2823_v53, %v2680_v45  ;;  %v3605_v48 = vunpack.c.h.bf16 %v8903_v3  ;;  %v3278_v44 = vrot.slane %v3049_v15, 1  ;;  %v3607_v26 = vunpack.c.h.bf16 %v8909_v33 }
 0x2c9   : > { %v2889_v30 = vadd.f32 %v2825_v1, %v2682_v60  ;;  %v3282_v16 = vrot.slane %v3051_v46, 1  ;;  %v3609_v6 = vunpack.c.h.bf16 %v8916_v35  ;;  %v8923_v0 = vmul.bf16 %v7086_v58, %v8911_v28 }
 0x2ca   : > { %v3835_v55 = vrot.slane %v3605_v48, 2  ;;  %v8927_v37 = vmul.bf16 %v7086_v58, %v8913_v13  ;;  %v3279_v53 = vsel %vm1859_vm4, %v3277_v2, %v3278_v44  ;;  %v3836_v31 = vrot.slane %v3607_v26, 2 }
 0x2cb   : > { %v3283_v32 = vsel %vm1859_vm4, %v3278_v44, %v3282_v16  ;;  %v8933_v39 = vmul.bf16 %v7091_v63, %v8911_v28  ;;  %v3445_v5 = vadd.f32 %v3279_v53, %v2887_v49  ;;  %v3840_v34 = vrot.slane %v3609_v6, 2 }
 0x2cc   : > { %v3447_v36 = vadd.f32 %v3283_v32, %v2889_v30  ;;  %v4146_v19 = vunpack.c.h.bf16 %v8923_v0  ;;  %v3837_v1 = vsel %vm2418_vm5, %v3835_v55, %v3836_v31  ;;  %v4148_v43 = vunpack.c.h.bf16 %v8927_v37  ;;  %v8956_v30 = vpop.f32.mrb[100].mxu0 }
 0x2cd   : > { %v8940_v11 = vmul.bf16 %v7091_v63, %v8913_v13  ;;  %v8943_v9 = vmul.bf16 %v7091_v63, %v4246_v8  ;;  %v3841_v45 = vsel %vm2418_vm5, %v3836_v31, %v3840_v34  ;;  %v4003_v18 = vadd.f32 %v3837_v1, %v3445_v5  ;;  %v8962_v55 = vpop.f32.mrb[101].mxu0 }
 0x2ce   : > { %v4370_v60 = vunpack.c.h.bf16 %v8933_v39  ;;  %v8948_v15 = vmul.bf16 %v10310_v52, %v4804_v40  ;;  %v4005_v46 = vadd.f32 %v3841_v45, %v3447_v36  ;;  %v8954_v48 = vmul.bf16 %v10310_v52, %v8913_v13  ;;  %10369 = vst [vmem:[#allocation18_spill] sm:$0xff] %v8962_v55  ;;  %v8965_v5 = vpop.f32.mrb[102].mxu0 }
 0x2cf   : > { %v4372_v49 = vunpack.c.h.bf16 %v8940_v11  ;;  %v4374_v2 = vunpack.c.h.bf16 %v8943_v9  ;;  %v4210_v44 = vadd.f32 %v4146_v19, %v4003_v18  ;;  %v8959_v26 = vmul.bf16 %v10310_v52, %v4246_v8  ;;  %10370 = vst [vmem:[#allocation8_spill] sm:$0xff] %v8965_v5  ;;  %v8970_v8 = vpop.f32.mrb[103].mxu0 }
 0x2d0   : > { %v4600_v16 = vrot.slane %v4370_v60, 1  ;;  %v4939_v6 = vunpack.c.h.bf16 %v8948_v15  ;;  %v4212_v53 = vadd.f32 %v4148_v43, %v4005_v46  ;;  %v4941_v40 = vunpack.c.h.bf16 %v8954_v48  ;;  %10371 = vst [vmem:[#allocation9_spill] sm:$0xff] %v8970_v8  ;;  %v8975_v46 = vpop.f32.mrb[104].mxu0 }
 0x2d1   : > { %v4601_v32 = vrot.slane %v4372_v49, 1  ;;  %v4605_v31 = vrot.slane %v4374_v2, 1  ;;  %v4943_v36 = vunpack.c.h.bf16 %v8959_v26  ;;  %v1555_v19 = vunpack.c.l.bf16 %v8837_v4  ;;  %10372 = vst [vmem:[#allocation10_spill] sm:$0xff] %v8975_v46  ;;  %v8978_v55 = vpop.f32.mrb[105].mxu0 }
 0x2d2   : > { %v5169_v34 = vrot.slane %v4939_v6, 2  ;;  %v1557_v1 = vunpack.c.l.bf16 %v8841_v50  ;;  %v5170_v43 = vrot.slane %v4941_v40, 2  ;;  %v1721_v60 = vunpack.c.l.bf16 %v8845_v47  ;;  %10373 = vst [vmem:[#allocation11_spill] sm:$0xff] %v8978_v55 }
 0x2d3   : > { %v4602_v45 = vsel %vm1859_vm4, %v4600_v16, %v4601_v32  ;;  %v4606_v18 = vsel %vm1859_vm4, %v4601_v32, %v4605_v31  ;;  %v5174_v5 = vrot.slane %v4943_v36, 2  ;;  %v1723_v6 = vunpack.c.l.bf16 %v8851_v62 }
 0x2d4   : > { %v4768_v49 = vadd.f32 %v4602_v45, %v4210_v44  ;;  %v4770_v2 = vadd.f32 %v4606_v18, %v4212_v53  ;;  %v5171_v4 = vsel %vm2418_vm5, %v5169_v34, %v5170_v43  ;;  %v1725_v50 = vunpack.c.l.bf16 %v8856_v42 }
 0x2d5   : > { %v1950_v8 = vrot.slane %v1721_v60, 1  ;;  %v2280_v16 = vunpack.c.l.bf16 %v8861_v14  ;;  %v5175_v32 = vsel %vm2418_vm5, %v5170_v43, %v5174_v5  ;;  %v1951_v47 = vrot.slane %v1723_v6, 1 }
 0x2d6   : > { %v5337_v31 = vadd.f32 %v5171_v4, %v4768_v49  ;;  %v2282_v40 = vunpack.c.l.bf16 %v8865_v61  ;;  %v5339_v44 = vadd.f32 %v5175_v32, %v4770_v2  ;;  %v1956_v53 = vrot.slane %v1725_v50, 1 }
 0x2d7   : > { %v2284_v36 = vunpack.c.l.bf16 %v8871_v20  ;;  %v2509_v62 = vrot.slane %v2280_v16, 2  ;;  %v1952_v18 = vsel %vm1859_vm4, %v1950_v8, %v1951_v47  ;;  %v2822_v42 = vunpack.c.l.bf16 %v8875_v12 }
 0x2d8   : > { %v5401_v45 = vmax.f32 %v5337_v31, 0.0  ;;  %v2510_v34 = vrot.slane %v2282_v40, 2  ;;  %v5403_v60 = vmax.f32 %v5339_v44, 0.0  ;;  %v1957_v14 = vsel %vm1859_vm4, %v1951_v47, %v1956_v53 }
 0x2d9   : > { %v2120_v55 = vadd.f32 %v1952_v18, %v1555_v19  ;;  %v2515_v5 = vrot.slane %v2284_v36, 2  ;;  %v2122_v49 = vadd.f32 %v1957_v14, %v1557_v1  ;;  %v2824_v2 = vunpack.c.l.bf16 %v8882_v41 }
 0x2da   : > { %v5465_v43 = vmin.f32 %v5401_v45, 6.0  ;;  %v2511_v61 = vsel %vm2418_vm5, %v2509_v62, %v2510_v34  ;;  %v5467_v6 = vmin.f32 %v5403_v60, 6.0  ;;  %v3046_v8 = vunpack.c.l.bf16 %v8888_v59 }
 0x2db   : > { %v2516_v20 = vsel %vm2418_vm5, %v2510_v34, %v2515_v5  ;;  %v2679_v4 = vadd.f32 %v2511_v61, %v2120_v55  ;;  %v3048_v12 = vunpack.c.l.bf16 %v8895_v38  ;;  %v3050_v16 = vunpack.c.l.bf16 %v8898_v23 }
 0x2dc   : > { %v2681_v50 = vadd.f32 %v2516_v20, %v2122_v49  ;;  %v3604_v19 = vunpack.c.l.bf16 %v8903_v3  ;;  %v5511_v32 = vpack.c.bf16 %v5467_v6, %v5465_v43  ;;  %v3274_v1 = vrot.slane %v3046_v8, 1 }
 0x2dd   : > { %v2886_v31 = vadd.f32 %v2822_v42, %v2679_v4  ;;  %v3606_v47 = vunpack.c.l.bf16 %v8909_v33  ;;  %v3275_v41 = vrot.slane %v3048_v12, 1  ;;  %v3280_v44 = vrot.slane %v3050_v16, 1 }
 0x2de   : > { %v2888_v40 = vadd.f32 %v2824_v2, %v2681_v50  ;;  %v3608_v53 = vunpack.c.l.bf16 %v8916_v35  ;;  %6459 = vmatprep.mubr.msk.bf16.mxu1 %vm5620_vm6, %v5511_v32  ;;  %v3832_v59 = vrot.slane %v3604_v19, 2  ;;  %v4145_v38 = vunpack.c.l.bf16 %v8923_v0  ;;  %v10374_v32 = vld [vmem:[#allocation12_spill] sm:$0xff] }
 0x2df   : > { %v3833_v55 = vrot.slane %v3606_v47, 2  ;;  %v4147_v23 = vunpack.c.l.bf16 %v8927_v37  ;;  %v3276_v3 = vsel %vm1859_vm4, %v3274_v1, %v3275_v41  ;;  %v3281_v36 = vsel %vm1859_vm4, %v3275_v41, %v3280_v44  ;;  %v10375_v1 = vld [vmem:[#allocation13_spill] sm:$0xff] }
 0x2e0   : > { %v3838_v62 = vrot.slane %v3608_v53, 2  ;;  %v4369_v33 = vunpack.c.l.bf16 %v8933_v39  ;;  %v3444_v45 = vadd.f32 %v3276_v3, %v2886_v31  ;;  %v3446_v18 = vadd.f32 %v3281_v36, %v2888_v40  ;;  %v10376_v40 = vld [vmem:[#allocation14_spill] sm:$0xff] }
 0x2e1   : > { %v3834_v34 = vsel %vm2418_vm5, %v3832_v59, %v3833_v55  ;;  %v4371_v35 = vunpack.c.l.bf16 %v8940_v11  ;;  %v4373_v60 = vunpack.c.l.bf16 %v8943_v9  ;;  %v4938_v37 = vunpack.c.l.bf16 %v8948_v15 }
 0x2e2   : > { %v3839_v42 = vsel %vm2418_vm5, %v3833_v55, %v3838_v62  ;;  %v4597_v0 = vrot.slane %v4369_v33, 1  ;;  %v4002_v14 = vadd.f32 %v3834_v34, %v3444_v45  ;;  %v4940_v49 = vunpack.c.l.bf16 %v8954_v48  ;;  %v10377_v55 = vld [vmem:[#allocation15_spill] sm:$0xff]  ;;  %v2158_v62 = vld [vmem:[#allocation2 + $0xf0] sm:$0xee] }
 0x2e3   : > { %v4004_v5 = vadd.f32 %v3839_v42, %v3446_v18  ;;  %v4598_v43 = vrot.slane %v4371_v35, 1  ;;  %v4603_v61 = vrot.slane %v4373_v60, 1  ;;  %v4942_v39 = vunpack.c.l.bf16 %v8959_v26  ;;  %v1593_v35 = vld [vmem:[#allocation2 + $0x100] sm:$0x11] }
 0x2e4   : > { %v5166_v2 = vrot.slane %v4938_v37, 2  ;;  %v883_v6 = vmax.f32 %v8580_v29, 0.0  ;;  %v4209_v20 = vadd.f32 %v4145_v38, %v4002_v14  ;;  %v5167_v8 = vrot.slane %v4940_v49, 2  ;;  %v9040_v14 = vpop.f32.mrb[106].mxu0 }
 0x2e5   : > { %v4211_v11 = vadd.f32 %v4147_v23, %v4004_v5  ;;  %v4599_v4 = vsel %vm1859_vm4, %v4597_v0, %v4598_v43  ;;  %v4604_v9 = vsel %vm1859_vm4, %v4598_v43, %v4603_v61  ;;  %v5172_v50 = vrot.slane %v4942_v39, 2  ;;  %10378 = vst [vmem:[#allocation12_spill] sm:$0xff] %v9040_v14 }
 0x2e6   : > { %v991_v15 = vmin.f32 %v883_v6, 6.0  ;;  %v884_v12 = vmax.f32 %v8584_v54, 0.0  ;;  %v4767_v16 = vadd.f32 %v4599_v4, %v4209_v20  ;;  %v5168_v48 = vsel %vm2418_vm5, %v5166_v2, %v5167_v8 }
 0x2e7   : > { %v4769_v19 = vadd.f32 %v4604_v9, %v4211_v11  ;;  %v885_v26 = vmax.f32 %v10374_v32, 0.0  ;;  %v5173_v31 = vsel %vm2418_vm5, %v5167_v8, %v5172_v50  ;;  %v886_v47 = vmax.f32 %v10375_v1, 0.0  ;;  %v2924_v32 = vld [vmem:[#allocation2 + $0x118] sm:$0x11] }
 0x2e8   : > { %v992_v29 = vmin.f32 %v884_v12, 6.0  ;;  %v887_v41 = vmax.f32 %v10376_v40, 0.0  ;;  %v5336_v44 = vadd.f32 %v5168_v48, %v4767_v16  ;;  %v888_v38 = vmax.f32 %v10377_v55, 0.0 }
 0x2e9   : > { %v5338_v53 = vadd.f32 %v5173_v31, %v4769_v19  ;;  %v993_v59 = vmin.f32 %v885_v26, 6.0  ;;  %v994_v54 = vmin.f32 %v886_v47, 6.0  ;;  %v9023_v36 = vmul.bf16 %v7050_v17, %v8717_v24  ;;  %v3482_v47 = vld [vmem:[#allocation2 + $0x108] sm:$0xee] }
 0x2ea   : > { %v6547_v23 = vpack.c.bf16 %v992_v29, %v991_v15  ;;  %v995_v3 = vmin.f32 %v887_v41, 6.0  ;;  %v5400_v33 = vmax.f32 %v5336_v44, 0.0  ;;  %v996_v18 = vmin.f32 %v888_v38, 6.0 }
 0x2eb   : > { %v5402_v45 = vmax.f32 %v5338_v53, 0.0  ;;  %v9027_v34 = vmul.bf16 %v7050_v17, %v8724_v7  ;;  %v6548_v42 = vpack.c.bf16 %v994_v54, %v993_v59  ;;  %v1560_v60 = vunpack.c.h.bf16 %v9023_v36 }
 0x2ec   : > { %1418 = vst.msk [vmem:[#allocation2 + $0x160] sm:$0xff] %vm7046_vm3, %v6547_v23  ;;  %v9034_v0 = vmul.bf16 %v7054_v21, %v8717_v24  ;;  %v9038_v37 = vmul.bf16 %v7054_v21, %v8724_v7  ;;  %v5464_v5 = vmin.f32 %v5400_v33, 6.0  ;;  %v6549_v49 = vpack.c.bf16 %v996_v18, %v995_v3 }
 0x2ed   : > { %v5466_v43 = vmin.f32 %v5402_v45, 6.0  ;;  %v1562_v61 = vunpack.c.h.bf16 %v9027_v34  ;;  %1419 = vst.msk [vmem:[#allocation2 + $0x168] sm:$0xff] %vm7046_vm3, %v6548_v42  ;;  %v9046_v39 = vmul.bf16 %v7054_v21, %v1593_v35  ;;  %v9051_v6 = vmul.bf16 %v7056_v22, %v2158_v62  ;;  %v9095_v45 = vld [vmem:[#allocation2 + $0x120] sm:$0xff] }
 0x2ee   : > { %v1728_v24 = vunpack.c.h.bf16 %v9034_v0  ;;  %v1730_v2 = vunpack.c.h.bf16 %v9038_v37  ;;  %1420 = vst.msk [vmem:[#allocation2 + $0x170] sm:$0xff] %vm7046_vm3, %v6549_v49  ;;  %v9057_v11 = vmul.bf16 %v7056_v22, %v8724_v7  ;;  %v9060_v4 = vmul.bf16 %v7056_v22, %v1593_v35 }
 0x2ef   : > { %v5510_v20 = vpack.c.bf16 %v5466_v43, %v5464_v5  ;;  %v9064_v8 = vmul.bf16 %v7072_v56, %v8911_v28  ;;  %v1732_v9 = vunpack.c.h.bf16 %v9046_v39  ;;  %v2287_v12 = vunpack.c.h.bf16 %v9051_v6 }
 0x2f0   : > { %v1963_v50 = vrot.slane %v1728_v24, 1  ;;  %v1964_v15 = vrot.slane %v1730_v2, 1  ;;  %v2289_v16 = vunpack.c.h.bf16 %v9057_v11  ;;  %v2291_v19 = vunpack.c.h.bf16 %v9060_v4  ;;  %v9107_v24 = vld [vmem:[#allocation2 + $0x128] sm:$0xff] }
 0x2f1   : > { %5774 = vmatmul.mubr.bf16.gmra.mrb[36].mxu1 %v5510_v20  ;;  %v9072_v7 = vmul.bf16 %v7072_v56, %v8913_v13  ;;  %v2827_v48 = vunpack.c.h.bf16 %v9064_v8  ;;  %v1968_v31 = vrot.slane %v1732_v9, 1  ;;  %v2522_v29 = vrot.slane %v2287_v12, 2 }
 0x2f2   : > { %v1965_v26 = vsel %vm1859_vm4, %v1963_v50, %v1964_v15  ;;  %v9078_v1 = vmul.bf16 %v7074_v57, %v8911_v28  ;;  %v2523_v41 = vrot.slane %v2289_v16, 2  ;;  %v2527_v44 = vrot.slane %v2291_v19, 2 }
 0x2f3   : > { %v2125_v40 = vadd.f32 %v1965_v26, %v1560_v60  ;;  %v2829_v53 = vunpack.c.h.bf16 %v9072_v7  ;;  %v1969_v59 = vsel %vm1859_vm4, %v1964_v15, %v1968_v31  ;;  %v9084_v55 = vmul.bf16 %v7074_v57, %v8913_v13  ;;  %v4247_v26 = vld [vmem:[#allocation2 + $0x130] sm:$0x11] }
 0x2f4   : > { %v9087_v38 = vmul.bf16 %v7074_v57, %v2924_v32  ;;  %v3053_v23 = vunpack.c.h.bf16 %v9078_v1  ;;  %v2127_v54 = vadd.f32 %v1969_v59, %v1562_v61  ;;  %v2524_v3 = vsel %vm2418_vm5, %v2522_v29, %v2523_v41 }
 0x2f5   : > { %v2528_v62 = vsel %vm2418_vm5, %v2523_v41, %v2527_v44  ;;  %v9093_v33 = vmul.bf16 %v7076_v51, %v3482_v47  ;;  %v2684_v18 = vadd.f32 %v2524_v3, %v2125_v40  ;;  %v3055_v35 = vunpack.c.h.bf16 %v9084_v55  ;;  %v4805_v47 = vld [vmem:[#allocation2 + $0x120] sm:$0xee] }
 0x2f6   : > { %v3057_v42 = vunpack.c.h.bf16 %v9087_v38  ;;  %v3287_v60 = vrot.slane %v3053_v23, 1  ;;  %v2686_v5 = vadd.f32 %v2528_v62, %v2127_v54  ;;  %v9101_v43 = vmul.bf16 %v7076_v51, %v8913_v13 }
 0x2f7   : > { %v9104_v49 = vmul.bf16 %v7076_v51, %v2924_v32  ;;  %v3611_v61 = vunpack.c.h.bf16 %v9093_v33  ;;  %v2891_v2 = vadd.f32 %v2827_v48, %v2684_v18  ;;  %v3288_v20 = vrot.slane %v3055_v35, 1 }
 0x2f8   : > { %v3292_v9 = vrot.slane %v3057_v42, 1  ;;  %v9111_v50 = vmul.bf16 %v7086_v58, %v9095_v45  ;;  %v2893_v15 = vadd.f32 %v2829_v53, %v2686_v5  ;;  %v3613_v12 = vunpack.c.h.bf16 %v9101_v43 }
 0x2f9   : > { %v3615_v16 = vunpack.c.h.bf16 %v9104_v49  ;;  %v3845_v19 = vrot.slane %v3611_v61, 2  ;;  %v3289_v32 = vsel %vm1859_vm4, %v3287_v60, %v3288_v20  ;;  %v9119_v48 = vmul.bf16 %v7086_v58, %v9107_v24 }
 0x2fa   : > { %v3293_v31 = vsel %vm1859_vm4, %v3288_v20, %v3292_v9  ;;  %v4150_v29 = vunpack.c.h.bf16 %v9111_v50  ;;  %v3449_v40 = vadd.f32 %v3289_v32, %v2891_v2  ;;  %v3846_v44 = vrot.slane %v3613_v12, 2 }
 0x2fb   : > { %v3451_v41 = vadd.f32 %v3293_v31, %v2893_v15  ;;  %v3850_v53 = vrot.slane %v3615_v16, 2  ;;  %v4152_v59 = vunpack.c.h.bf16 %v9119_v48  ;;  %v9125_v23 = vmul.bf16 %v7091_v63, %v9095_v45 }
 0x2fc   : > { %v9129_v54 = vmul.bf16 %v7091_v63, %v9107_v24  ;;  %v9132_v3 = vmul.bf16 %v7091_v63, %v4247_v26  ;;  %v3847_v62 = vsel %vm2418_vm5, %v3845_v19, %v3846_v44  ;;  %v9137_v35 = vmul.bf16 %v10310_v52, %v4805_v47  ;;  %v9151_v47 = vpop.f32.mrb[107].mxu0 }
 0x2fd   : > { %v3851_v18 = vsel %vm2418_vm5, %v3846_v44, %v3850_v53  ;;  %v9141_v42 = vmul.bf16 %v10310_v52, %v9107_v24  ;;  %v4007_v60 = vadd.f32 %v3847_v62, %v3449_v40  ;;  %v4376_v61 = vunpack.c.h.bf16 %v9125_v23 }
 0x2fe   : > { %v4009_v5 = vadd.f32 %v3851_v18, %v3451_v41  ;;  %v4378_v2 = vunpack.c.h.bf16 %v9129_v54  ;;  %v4380_v20 = vunpack.c.h.bf16 %v9132_v3  ;;  %v9147_v9 = vmul.bf16 %v10310_v52, %v4247_v26  ;;  %v10379_v18 = vld [vmem:[#allocation16_spill] sm:$0xff] }
 0x2ff   : > { %v4945_v15 = vunpack.c.h.bf16 %v9137_v35  ;;  %v4947_v12 = vunpack.c.h.bf16 %v9141_v42  ;;  %v4214_v16 = vadd.f32 %v4150_v29, %v4007_v60  ;;  %v4610_v32 = vrot.slane %v4376_v61, 1 }
 0x300   : > { %v4216_v19 = vadd.f32 %v4152_v59, %v4009_v5  ;;  %v4611_v31 = vrot.slane %v4378_v2, 1  ;;  %v4615_v40 = vrot.slane %v4380_v20, 1  ;;  %v4949_v41 = vunpack.c.h.bf16 %v9147_v9 }
 0x301   : > { %v5179_v44 = vrot.slane %v4945_v15, 2  ;;  %v5180_v53 = vrot.slane %v4947_v12, 2  ;;  %v889_v26 = vmax.f32 %v10379_v18, 0.0  ;;  %v1559_v14 = vunpack.c.l.bf16 %v9023_v36 }
 0x302   : > { %v4612_v62 = vsel %vm1859_vm4, %v4610_v32, %v4611_v31  ;;  %v1561_v46 = vunpack.c.l.bf16 %v9027_v34  ;;  %v4616_v29 = vsel %vm1859_vm4, %v4611_v31, %v4615_v40  ;;  %v5184_v5 = vrot.slane %v4949_v41, 2 }
 0x303   : > { %v4772_v59 = vadd.f32 %v4612_v62, %v4214_v16  ;;  %v5181_v60 = vsel %vm2418_vm5, %v5179_v44, %v5180_v53  ;;  %v4774_v61 = vadd.f32 %v4616_v29, %v4216_v19  ;;  %v9160_v2 = vmin.f32 %v889_v26, 6.0 }
 0x304   : > { %v1727_v20 = vunpack.c.l.bf16 %v9034_v0  ;;  %v1729_v15 = vunpack.c.l.bf16 %v9038_v37  ;;  %v5185_v12 = vsel %vm2418_vm5, %v5180_v53, %v5184_v5  ;;  %v1731_v36 = vunpack.c.l.bf16 %v9046_v39 }
 0x305   : > { %v5341_v32 = vadd.f32 %v5181_v60, %v4772_v59  ;;  %v2286_v34 = vunpack.c.l.bf16 %v9051_v6  ;;  %v5343_v18 = vadd.f32 %v5185_v12, %v4774_v61  ;;  %v2288_v40 = vunpack.c.l.bf16 %v9057_v11 }
 0x306   : > { %v1960_v31 = vrot.slane %v1727_v20, 1  ;;  %v1961_v16 = vrot.slane %v1729_v15, 1  ;;  %v1966_v19 = vrot.slane %v1731_v36, 1  ;;  %v2290_v44 = vunpack.c.l.bf16 %v9060_v4 }
 0x307   : > { %v5405_v41 = vmax.f32 %v5341_v32, 0.0  ;;  %v2519_v62 = vrot.slane %v2286_v34, 2  ;;  %v5407_v0 = vmax.f32 %v5343_v18, 0.0  ;;  %v2520_v26 = vrot.slane %v2288_v40, 2 }
 0x308   : > { %v1962_v37 = vsel %vm1859_vm4, %v1960_v31, %v1961_v16  ;;  %v2826_v53 = vunpack.c.l.bf16 %v9064_v8  ;;  %v1967_v39 = vsel %vm1859_vm4, %v1961_v16, %v1966_v19  ;;  %v2525_v59 = vrot.slane %v2290_v44, 2 }
 0x309   : > { %v5469_v29 = vmin.f32 %v5405_v41, 6.0  ;;  %v2124_v6 = vadd.f32 %v1962_v37, %v1559_v14  ;;  %v5471_v60 = vmin.f32 %v5407_v0, 6.0  ;;  %v2126_v5 = vadd.f32 %v1967_v39, %v1561_v46 }
 0x30a   : > { %v2521_v11 = vsel %vm2418_vm5, %v2519_v62, %v2520_v26  ;;  %v2828_v61 = vunpack.c.l.bf16 %v9072_v7  ;;  %v2526_v4 = vsel %vm2418_vm5, %v2520_v26, %v2525_v59  ;;  %v3052_v15 = vunpack.c.l.bf16 %v9078_v1 }
 0x30b   : > { %v2683_v20 = vadd.f32 %v2521_v11, %v2124_v6  ;;  %v3054_v12 = vunpack.c.l.bf16 %v9084_v55  ;;  %v5513_v32 = vpack.c.bf16 %v5471_v60, %v5469_v29  ;;  %v2685_v8 = vadd.f32 %v2526_v4, %v2126_v5 }
 0x30c   : > { %v3056_v36 = vunpack.c.l.bf16 %v9087_v38  ;;  %v3610_v14 = vunpack.c.l.bf16 %v9093_v33  ;;  %v3284_v18 = vrot.slane %v3052_v15, 1  ;;  %v3612_v31 = vunpack.c.l.bf16 %v9101_v43 }
 0x30d   : > { %v2890_v34 = vadd.f32 %v2826_v53, %v2683_v20  ;;  %v3285_v46 = vrot.slane %v3054_v12, 1  ;;  %6460 = vmatprep.mubr.msk.bf16.mxu1 %vm5620_vm6, %v5513_v32  ;;  %v2892_v7 = vadd.f32 %v2828_v61, %v2685_v8  ;;  %v3614_v40 = vunpack.c.l.bf16 %v9104_v49  ;;  %v10380_v61 = vld [vmem:[#allocation6_spill] sm:$0xff] }
 0x30e   : > { %v3290_v16 = vrot.slane %v3056_v36, 1  ;;  %v3842_v1 = vrot.slane %v3610_v14, 2  ;;  %v3843_v41 = vrot.slane %v3612_v31, 2  ;;  %v4149_v19 = vunpack.c.l.bf16 %v9111_v50  ;;  %v10381_v14 = vld [vmem:[#allocation7_spill] sm:$0xff] }
 0x30f   : > { %v3286_v55 = vsel %vm1859_vm4, %v3284_v18, %v3285_v46  ;;  %v4151_v38 = vunpack.c.l.bf16 %v9119_v48  ;;  %v3848_v62 = vrot.slane %v3614_v40, 2  ;;  %v4375_v43 = vunpack.c.l.bf16 %v9125_v23 }
 0x310   : > { %v3291_v33 = vsel %vm1859_vm4, %v3285_v46, %v3290_v16  ;;  %v3448_v44 = vadd.f32 %v3286_v55, %v2890_v34  ;;  %v3844_v37 = vsel %vm2418_vm5, %v3842_v1, %v3843_v41  ;;  %v4377_v26 = vunpack.c.l.bf16 %v9129_v54  ;;  %v10382_v55 = vld [vmem:[#allocation17_spill] sm:$0xff] }
 0x311   : > { %v3450_v0 = vadd.f32 %v3291_v33, %v2892_v7  ;;  %v4379_v49 = vunpack.c.l.bf16 %v9132_v3  ;;  %v3849_v53 = vsel %vm2418_vm5, %v3843_v41, %v3848_v62  ;;  %v4607_v39 = vrot.slane %v4375_v43, 1 }
 0x312   : > { %v4006_v29 = vadd.f32 %v3844_v37, %v3448_v44  ;;  %v4944_v50 = vunpack.c.l.bf16 %v9137_v35  ;;  %v4608_v6 = vrot.slane %v4377_v26, 1  ;;  %v4946_v60 = vunpack.c.l.bf16 %v9141_v42 }
 0x313   : > { %v4008_v48 = vadd.f32 %v3849_v53, %v3450_v0  ;;  %v4613_v59 = vrot.slane %v4379_v49, 1  ;;  %v4948_v23 = vunpack.c.l.bf16 %v9147_v9  ;;  %v890_v4 = vmax.f32 %v10380_v61, 0.0  ;;  %v2159_v0 = vld [vmem:[#allocation2 + $0x108] sm:$0xee] }
 0x314   : > { %v4213_v5 = vadd.f32 %v4149_v19, %v4006_v29  ;;  %v5176_v11 = vrot.slane %v4944_v50, 2  ;;  %v4609_v3 = vsel %vm1859_vm4, %v4607_v39, %v4608_v6  ;;  %v5177_v15 = vrot.slane %v4946_v60, 2  ;;  %v1594_v19 = vld [vmem:[#allocation2 + $0x118] sm:$0x11] }
 0x315   : > { %v4215_v54 = vadd.f32 %v4151_v38, %v4008_v48  ;;  %v4614_v20 = vsel %vm1859_vm4, %v4608_v6, %v4613_v59  ;;  %v5182_v32 = vrot.slane %v4948_v23, 2  ;;  %v998_v35 = vmin.f32 %v890_v4, 6.0 }
 0x316   : > { %v4771_v12 = vadd.f32 %v4609_v3, %v4213_v5  ;;  %v891_v8 = vmax.f32 %v8775_v25, 0.0  ;;  %v5178_v42 = vsel %vm2418_vm5, %v5176_v11, %v5177_v15  ;;  %v892_v34 = vmax.f32 %v10381_v14, 0.0 }
 0x317   : > { %v4773_v36 = vadd.f32 %v4614_v20, %v4215_v54  ;;  %v893_v9 = vmax.f32 %v8784_v27, 0.0  ;;  %v5183_v18 = vsel %vm2418_vm5, %v5177_v15, %v5182_v32  ;;  %v6550_v31 = vpack.c.bf16 %v998_v35, %v9160_v2  ;;  %v2925_v32 = vld [vmem:[#allocation2 + $0x130] sm:$0x11] }
 0x318   : > { %v5340_v46 = vadd.f32 %v5178_v42, %v4771_v12  ;;  %v999_v7 = vmin.f32 %v891_v8, 6.0  ;;  %v1000_v40 = vmin.f32 %v892_v34, 6.0  ;;  %v894_v41 = vmax.f32 %v10382_v55, 0.0  ;;  %v3483_v8 = vld [vmem:[#allocation2 + $0x120] sm:$0xee] }
 0x319   : > { %v5342_v16 = vadd.f32 %v5183_v18, %v4773_v36  ;;  %v1001_v1 = vmin.f32 %v893_v9, 6.0  ;;  %1421 = vst.msk [vmem:[#allocation2 + $0x178] sm:$0xff] %vm7046_vm3, %v6550_v31  ;;  %v9208_v38 = vmul.bf16 %v7050_v17, %v8911_v28  ;;  %v9212_v27 = vmul.bf16 %v7050_v17, %v8913_v13 }
 0x31a   : > { %v5404_v25 = vmax.f32 %v5340_v46, 0.0  ;;  %v9216_v2 = vmul.bf16 %v7054_v21, %v8911_v28  ;;  %v6551_v44 = vpack.c.bf16 %v1000_v40, %v999_v7  ;;  %v1002_v62 = vmin.f32 %v894_v41, 6.0 }
 0x31b   : > { %v5406_v33 = vmax.f32 %v5342_v16, 0.0  ;;  %v9220_v43 = vmul.bf16 %v7054_v21, %v8913_v13  ;;  %v1564_v26 = vunpack.c.h.bf16 %v9208_v38  ;;  %v1566_v49 = vunpack.c.h.bf16 %v9212_v27 }
 0x31c   : > { %v5468_v37 = vmin.f32 %v5404_v25, 6.0  ;;  %v9225_v53 = vmul.bf16 %v7054_v21, %v1594_v19  ;;  %1422 = vst.msk [vmem:[#allocation2 + $0x180] sm:$0xff] %vm7046_vm3, %v6551_v44  ;;  %v6552_v28 = vpack.c.bf16 %v1002_v62, %v1001_v1  ;;  %v1734_v39 = vunpack.c.h.bf16 %v9216_v2 }
 0x31d   : > { %v5470_v29 = vmin.f32 %v5406_v33, 6.0  ;;  %v1736_v50 = vunpack.c.h.bf16 %v9220_v43  ;;  %v9233_v6 = vmul.bf16 %v7056_v22, %v2159_v0  ;;  %v9237_v59 = vmul.bf16 %v7056_v22, %v8913_v13  ;;  %v9281_v33 = vld [vmem:[#allocation2 + $0x138] sm:$0xff] }
 0x31e   : > { %v1738_v48 = vunpack.c.h.bf16 %v9225_v53  ;;  %v9240_v60 = vmul.bf16 %v7056_v22, %v1594_v19  ;;  %1423 = vst.msk [vmem:[#allocation2 + $0x188] sm:$0xff] %vm7046_vm3, %v6552_v28  ;;  %v1973_v23 = vrot.slane %v1734_v39, 1  ;;  %v9246_v61 = vmul.bf16 %v7072_v56, %v9095_v45 }
 0x31f   : > { %v5512_v5 = vpack.c.bf16 %v5470_v29, %v5468_v37  ;;  %v1974_v11 = vrot.slane %v1736_v50, 1  ;;  %v2293_v54 = vunpack.c.h.bf16 %v9233_v6  ;;  %v2295_v3 = vunpack.c.h.bf16 %v9237_v59 }
 0x320   : > { %v1978_v4 = vrot.slane %v1738_v48, 1  ;;  %v2297_v13 = vunpack.c.h.bf16 %v9240_v60  ;;  %v9254_v15 = vmul.bf16 %v7072_v56, %v9107_v24  ;;  %v2831_v12 = vunpack.c.h.bf16 %v9246_v61 }
 0x321   : > { %5782 = vmatmul.mubr.bf16.gmra.mrb[40].mxu1 %v5512_v5  ;;  %v1975_v20 = vsel %vm1859_vm4, %v1973_v23, %v1974_v11  ;;  %v9259_v35 = vmul.bf16 %v7074_v57, %v9095_v45  ;;  %v2532_v14 = vrot.slane %v2293_v54, 2  ;;  %v2533_v34 = vrot.slane %v2295_v3, 2 }
 0x322   : > { %v1979_v36 = vsel %vm1859_vm4, %v1974_v11, %v1978_v4  ;;  %v2129_v42 = vadd.f32 %v1975_v20, %v1564_v26  ;;  %v2537_v18 = vrot.slane %v2297_v13, 2  ;;  %v2833_v46 = vunpack.c.h.bf16 %v9254_v15  ;;  %v9287_v26 = vld [vmem:[#allocation2 + $0x140] sm:$0xff]  ;;  %v4248_v13 = vld [vmem:[#allocation2 + $0x148] sm:$0x11] }
 0x323   : > { %v2131_v9 = vadd.f32 %v1979_v36, %v1566_v49  ;;  %v9265_v31 = vmul.bf16 %v7074_v57, %v9107_v24  ;;  %v2534_v7 = vsel %vm2418_vm5, %v2532_v14, %v2533_v34  ;;  %v9269_v16 = vmul.bf16 %v7074_v57, %v2925_v32  ;;  %v4806_v36 = vld [vmem:[#allocation2 + $0x138] sm:$0xee] }
 0x324   : > { %v3059_v40 = vunpack.c.h.bf16 %v9259_v35  ;;  %v9273_v1 = vmul.bf16 %v7076_v51, %v3483_v8  ;;  %v2538_v55 = vsel %vm2418_vm5, %v2533_v34, %v2537_v18  ;;  %v2688_v41 = vadd.f32 %v2534_v7, %v2129_v42 }
 0x325   : > { %v3061_v19 = vunpack.c.h.bf16 %v9265_v31  ;;  %v9279_v25 = vmul.bf16 %v7076_v51, %v9107_v24  ;;  %v2690_v44 = vadd.f32 %v2538_v55, %v2131_v9  ;;  %v3063_v62 = vunpack.c.h.bf16 %v9269_v16 }
 0x326   : > { %v3297_v0 = vrot.slane %v3059_v40, 1  ;;  %v9285_v37 = vmul.bf16 %v7076_v51, %v2925_v32  ;;  %v2895_v49 = vadd.f32 %v2831_v12, %v2688_v41  ;;  %v3617_v28 = vunpack.c.h.bf16 %v9273_v1 }
 0x327   : > { %v3298_v29 = vrot.slane %v3061_v19, 1  ;;  %v3619_v39 = vunpack.c.h.bf16 %v9279_v25  ;;  %v2897_v50 = vadd.f32 %v2833_v46, %v2690_v44  ;;  %v3302_v48 = vrot.slane %v3063_v62, 1 }
 0x328   : > { %v3621_v5 = vunpack.c.h.bf16 %v9285_v37  ;;  %v9294_v23 = vmul.bf16 %v7086_v58, %v9281_v33  ;;  %v3855_v4 = vrot.slane %v3617_v28, 2  ;;  %v9299_v3 = vmul.bf16 %v7086_v58, %v9287_v26 }
 0x329   : > { %v3299_v11 = vsel %vm1859_vm4, %v3297_v0, %v3298_v29  ;;  %v3856_v54 = vrot.slane %v3619_v39, 2  ;;  %v3303_v20 = vsel %vm1859_vm4, %v3298_v29, %v3302_v48  ;;  %v9307_v9 = vmul.bf16 %v7091_v63, %v9281_v33 }
 0x32a   : > { %v3453_v12 = vadd.f32 %v3299_v11, %v2895_v49  ;;  %v3860_v32 = vrot.slane %v3621_v5, 2  ;;  %v4154_v8 = vunpack.c.h.bf16 %v9294_v23  ;;  %v3455_v42 = vadd.f32 %v3303_v20, %v2897_v50 }
 0x32b   : > { %v3857_v14 = vsel %vm2418_vm5, %v3855_v4, %v3856_v54  ;;  %v4156_v34 = vunpack.c.h.bf16 %v9299_v3  ;;  %v9312_v7 = vmul.bf16 %v7091_v63, %v9287_v26  ;;  %v9315_v40 = vmul.bf16 %v7091_v63, %v4248_v13 }
 0x32c   : > { %v3861_v18 = vsel %vm2418_vm5, %v3856_v54, %v3860_v32  ;;  %v4011_v46 = vadd.f32 %v3857_v14, %v3453_v12  ;;  %v4382_v41 = vunpack.c.h.bf16 %v9307_v9  ;;  %v9319_v19 = vmul.bf16 %v10310_v52, %v4806_v36 }
 0x32d   : > { %v4013_v55 = vadd.f32 %v3861_v18, %v3455_v42  ;;  %v9323_v44 = vmul.bf16 %v10310_v52, %v9287_v26  ;;  %v4384_v0 = vunpack.c.h.bf16 %v9312_v7  ;;  %v4386_v49 = vunpack.c.h.bf16 %v9315_v40 }
 0x32e   : > { %v4218_v62 = vadd.f32 %v4154_v8, %v4011_v46  ;;  %v9328_v29 = vmul.bf16 %v10310_v52, %v4248_v13  ;;  %v4620_v39 = vrot.slane %v4382_v41, 1  ;;  %v4951_v50 = vunpack.c.h.bf16 %v9319_v19 }
 0x32f   : > { %v4220_v28 = vadd.f32 %v4156_v34, %v4013_v55  ;;  %v4953_v48 = vunpack.c.h.bf16 %v9323_v44  ;;  %v4621_v5 = vrot.slane %v4384_v0, 1  ;;  %v4625_v11 = vrot.slane %v4386_v49, 1 }
 0x330   : > { %v4955_v4 = vunpack.c.h.bf16 %v9328_v29  ;;  %v1563_v54 = vunpack.c.l.bf16 %v9208_v38  ;;  %v5189_v20 = vrot.slane %v4951_v50, 2  ;;  %v1565_v32 = vunpack.c.l.bf16 %v9212_v27 }
 0x331   : > { %v5190_v12 = vrot.slane %v4953_v48, 2  ;;  %v1733_v8 = vunpack.c.l.bf16 %v9216_v2  ;;  %v4622_v13 = vsel %vm1859_vm4, %v4620_v39, %v4621_v5  ;;  %v4626_v36 = vsel %vm1859_vm4, %v4621_v5, %v4625_v11 }
 0x332   : > { %v5194_v42 = vrot.slane %v4955_v4, 2  ;;  %v1735_v14 = vunpack.c.l.bf16 %v9220_v43  ;;  %v4776_v34 = vadd.f32 %v4622_v13, %v4218_v62  ;;  %v4778_v18 = vadd.f32 %v4626_v36, %v4220_v28 }
 0x333   : > { %v5191_v46 = vsel %vm2418_vm5, %v5189_v20, %v5190_v12  ;;  %v1737_v55 = vunpack.c.l.bf16 %v9225_v53  ;;  %v1970_v41 = vrot.slane %v1733_v8, 1  ;;  %v2292_v27 = vunpack.c.l.bf16 %v9233_v6 }
 0x334   : > { %v5195_v38 = vsel %vm2418_vm5, %v5190_v12, %v5194_v42  ;;  %v1971_v0 = vrot.slane %v1735_v14, 1  ;;  %v5345_v2 = vadd.f32 %v5191_v46, %v4776_v34  ;;  %v2294_v50 = vunpack.c.l.bf16 %v9237_v59 }
 0x335   : > { %v5347_v49 = vadd.f32 %v5195_v38, %v4778_v18  ;;  %v1976_v39 = vrot.slane %v1737_v55, 1  ;;  %v2296_v43 = vunpack.c.l.bf16 %v9240_v60  ;;  %v2529_v62 = vrot.slane %v2292_v27, 2 }
 0x336   : > { %v1972_v48 = vsel %vm1859_vm4, %v1970_v41, %v1971_v0  ;;  %v2830_v28 = vunpack.c.l.bf16 %v9246_v61  ;;  %v5409_v5 = vmax.f32 %v5345_v2, 0.0  ;;  %v2530_v12 = vrot.slane %v2294_v50, 2 }
 0x337   : > { %v5411_v53 = vmax.f32 %v5347_v49, 0.0  ;;  %v1977_v11 = vsel %vm1859_vm4, %v1971_v0, %v1976_v39  ;;  %v2128_v4 = vadd.f32 %v1972_v48, %v1563_v54  ;;  %v2535_v6 = vrot.slane %v2296_v43, 2 }
 0x338   : > { %v2130_v20 = vadd.f32 %v1977_v11, %v1565_v32  ;;  %v2832_v8 = vunpack.c.l.bf16 %v9254_v15  ;;  %v5473_v13 = vmin.f32 %v5409_v5, 6.0  ;;  %v3058_v59 = vunpack.c.l.bf16 %v9259_v35 }
 0x339   : > { %v5475_v36 = vmin.f32 %v5411_v53, 6.0  ;;  %v3060_v42 = vunpack.c.l.bf16 %v9265_v31  ;;  %v2531_v60 = vsel %vm2418_vm5, %v2529_v62, %v2530_v12  ;;  %v2536_v61 = vsel %vm2418_vm5, %v2530_v12, %v2535_v6 }
 0x33a   : > { %v3062_v14 = vunpack.c.l.bf16 %v9269_v16  ;;  %v3616_v34 = vunpack.c.l.bf16 %v9273_v1  ;;  %v2687_v32 = vadd.f32 %v2531_v60, %v2128_v4  ;;  %v2689_v18 = vadd.f32 %v2536_v61, %v2130_v20  ;;  %v10383_v61 = vld [vmem:[#allocation18_spill] sm:$0xff] }
 0x33b   : > { %v5515_v54 = vpack.c.bf16 %v5475_v36, %v5473_v13  ;;  %v3294_v46 = vrot.slane %v3058_v59, 1  ;;  %v3295_v55 = vrot.slane %v3060_v42, 1  ;;  %v3618_v38 = vunpack.c.l.bf16 %v9279_v25 }
 0x33c   : > { %v3300_v15 = vrot.slane %v3062_v14, 1  ;;  %v3620_v35 = vunpack.c.l.bf16 %v9285_v37  ;;  %v2894_v31 = vadd.f32 %v2830_v28, %v2687_v32  ;;  %v2896_v41 = vadd.f32 %v2832_v8, %v2689_v18  ;;  %v10385_v32 = vld [vmem:[#allocation9_spill] sm:$0xff] }
 0x33d   : > { %6461 = vmatprep.mubr.msk.bf16.mxu1 %vm5620_vm6, %v5515_v54  ;;  %v3852_v0 = vrot.slane %v3616_v34, 2  ;;  %v4153_v27 = vunpack.c.l.bf16 %v9294_v23  ;;  %v3296_v16 = vsel %vm1859_vm4, %v3294_v46, %v3295_v55  ;;  %v3853_v2 = vrot.slane %v3618_v38, 2  ;;  %v10384_v34 = vld [vmem:[#allocation8_spill] sm:$0xff] }
 0x33e   : > { %v3301_v1 = vsel %vm1859_vm4, %v3295_v55, %v3300_v15  ;;  %v3858_v49 = vrot.slane %v3620_v35, 2  ;;  %v3452_v39 = vadd.f32 %v3296_v16, %v2894_v31  ;;  %v4155_v48 = vunpack.c.l.bf16 %v9299_v3  ;;  %v10386_v15 = vld [vmem:[#allocation10_spill] sm:$0xff]  ;;  %v2160_v16 = vld [vmem:[#allocation2 + $0x120] sm:$0xee] }
 0x33f   : > { %v3454_v50 = vadd.f32 %v3301_v1, %v2896_v41  ;;  %v4381_v25 = vunpack.c.l.bf16 %v9307_v9  ;;  %v3854_v37 = vsel %vm2418_vm5, %v3852_v0, %v3853_v2  ;;  %v4383_v62 = vunpack.c.l.bf16 %v9312_v7  ;;  %v10387_v41 = vld [vmem:[#allocation11_spill] sm:$0xff] }
 0x340   : > { %v3859_v43 = vsel %vm2418_vm5, %v3853_v2, %v3858_v49  ;;  %v4385_v23 = vunpack.c.l.bf16 %v9315_v40  ;;  %v4010_v28 = vadd.f32 %v3854_v37, %v3452_v39  ;;  %v4950_v11 = vunpack.c.l.bf16 %v9319_v19 }
 0x341   : > { %v4012_v5 = vadd.f32 %v3859_v43, %v3454_v50  ;;  %v4617_v53 = vrot.slane %v4381_v25, 1  ;;  %v4618_v4 = vrot.slane %v4383_v62, 1  ;;  %v4952_v12 = vunpack.c.l.bf16 %v9323_v44  ;;  %v1595_v50 = vld [vmem:[#allocation2 + $0x130] sm:$0x11] }
 0x342   : > { %v4623_v20 = vrot.slane %v4385_v23, 1  ;;  %v4954_v3 = vunpack.c.l.bf16 %v9328_v29  ;;  %v4217_v9 = vadd.f32 %v4153_v27, %v4010_v28  ;;  %v5186_v8 = vrot.slane %v4950_v11, 2 }
 0x343   : > { %v4219_v6 = vadd.f32 %v4155_v48, %v4012_v5  ;;  %v895_v13 = vmax.f32 %v8956_v30, 0.0  ;;  %v4619_v7 = vsel %vm1859_vm4, %v4617_v53, %v4618_v4  ;;  %v5187_v36 = vrot.slane %v4952_v12, 2 }
 0x344   : > { %v4624_v40 = vsel %vm1859_vm4, %v4618_v4, %v4623_v20  ;;  %v5192_v59 = vrot.slane %v4954_v3, 2  ;;  %v4775_v42 = vadd.f32 %v4619_v7, %v4217_v9  ;;  %v896_v14 = vmax.f32 %v10383_v61, 0.0 }
 0x345   : > { %v4777_v60 = vadd.f32 %v4624_v40, %v4219_v6  ;;  %v1003_v19 = vmin.f32 %v895_v13, 6.0  ;;  %v5188_v44 = vsel %vm2418_vm5, %v5186_v8, %v5187_v36  ;;  %v897_v54 = vmax.f32 %v10384_v34, 0.0 }
 0x346   : > { %v5193_v29 = vsel %vm2418_vm5, %v5187_v36, %v5192_v59  ;;  %v898_v18 = vmax.f32 %v10385_v32, 0.0  ;;  %v5344_v30 = vadd.f32 %v5188_v44, %v4775_v42  ;;  %v1004_v55 = vmin.f32 %v896_v14, 6.0  ;;  %v2926_v14 = vld [vmem:[#allocation2 + $0x148] sm:$0x11]  ;;  %v3484_v32 = vld [vmem:[#allocation2 + $0x138] sm:$0xee] }
 0x347   : > { %v5346_v46 = vadd.f32 %v5193_v29, %v4777_v60  ;;  %v899_v38 = vmax.f32 %v10386_v15, 0.0  ;;  %v1005_v35 = vmin.f32 %v897_v54, 6.0  ;;  %v900_v0 = vmax.f32 %v10387_v41, 0.0 }
 0x348   : > { %v1006_v31 = vmin.f32 %v898_v18, 6.0  ;;  %v9382_v27 = vmul.bf16 %v7050_v17, %v9095_v45  ;;  %v5408_v1 = vmax.f32 %v5344_v30, 0.0  ;;  %v6553_v49 = vpack.c.bf16 %v1004_v55, %v1003_v19 }
 0x349   : > { %v5410_v2 = vmax.f32 %v5346_v46, 0.0  ;;  %v1007_v39 = vmin.f32 %v899_v38, 6.0  ;;  %v1008_v25 = vmin.f32 %v900_v0, 6.0  ;;  %v9386_v37 = vmul.bf16 %v7050_v17, %v9107_v24 }
 0x34a   : > { %v6554_v48 = vpack.c.bf16 %v1006_v31, %v1005_v35  ;;  %v1568_v43 = vunpack.c.h.bf16 %v9382_v27  ;;  %v5472_v62 = vmin.f32 %v5408_v1, 6.0  ;;  %1424 = vst.msk [vmem:[#allocation2 + $0x190] sm:$0xff] %vm7046_vm3, %v6553_v49  ;;  %v9393_v28 = vmul.bf16 %v7054_v21, %v9095_v45 }
 0x34b   : > { %v5474_v23 = vmin.f32 %v5410_v2, 6.0  ;;  %v9397_v5 = vmul.bf16 %v7054_v21, %v9107_v24  ;;  %v6555_v53 = vpack.c.bf16 %v1008_v25, %v1007_v39  ;;  %v1570_v11 = vunpack.c.h.bf16 %v9386_v37  ;;  %v9453_v2 = vld [vmem:[#allocation2 + $0x150] sm:$0xff]  ;;  %v9460_v25 = vld [vmem:[#allocation2 + $0x158] sm:$0xff] }
 0x34c   : > { %1425 = vst.msk [vmem:[#allocation2 + $0x198] sm:$0xff] %vm7046_vm3, %v6554_v48  ;;  %v9403_v4 = vmul.bf16 %v7054_v21, %v1595_v50  ;;  %v9406_v20 = vmul.bf16 %v7056_v22, %v2160_v16  ;;  %v1740_v45 = vunpack.c.h.bf16 %v9393_v28  ;;  %v9412_v9 = vmul.bf16 %v7056_v22, %v9107_v24 }
 0x34d   : > { %v5514_v12 = vpack.c.bf16 %v5474_v23, %v5472_v62  ;;  %v1742_v3 = vunpack.c.h.bf16 %v9397_v5  ;;  %1426 = vst.msk [vmem:[#allocation2 + $0x1a0] sm:$0xff] %vm7046_vm3, %v6555_v53  ;;  %v9418_v8 = vmul.bf16 %v7056_v22, %v1595_v50  ;;  %v9423_v7 = vmul.bf16 %v7072_v56, %v9281_v33 }
 0x34e   : > { %v1744_v6 = vunpack.c.h.bf16 %v9403_v4  ;;  %v2299_v13 = vunpack.c.h.bf16 %v9406_v20  ;;  %v1983_v40 = vrot.slane %v1740_v45, 1  ;;  %v2301_v24 = vunpack.c.h.bf16 %v9412_v9 }
 0x34f   : > { %5790 = vmatmul.mubr.bf16.gmra.mrb[44].mxu1 %v5514_v12  ;;  %v1984_v36 = vrot.slane %v1742_v3, 1  ;;  %v9428_v59 = vmul.bf16 %v7072_v56, %v9287_v26  ;;  %v2303_v60 = vunpack.c.h.bf16 %v9418_v8  ;;  %v2835_v61 = vunpack.c.h.bf16 %v9423_v7 }
 0x350   : > { %v1988_v42 = vrot.slane %v1744_v6, 1  ;;  %v2542_v19 = vrot.slane %v2299_v13, 2  ;;  %v2543_v29 = vrot.slane %v2301_v24, 2  ;;  %v9436_v54 = vmul.bf16 %v7074_v57, %v9281_v33  ;;  %v4249_v24 = vld [vmem:[#allocation2 + $0x160] sm:$0x11] }
 0x351   : > { %v1985_v44 = vsel %vm1859_vm4, %v1983_v40, %v1984_v36  ;;  %v2837_v34 = vunpack.c.h.bf16 %v9428_v59  ;;  %v2547_v46 = vrot.slane %v2303_v60, 2  ;;  %v9441_v55 = vmul.bf16 %v7074_v57, %v9287_v26 }
 0x352   : > { %v1989_v18 = vsel %vm1859_vm4, %v1984_v36, %v1988_v42  ;;  %v2133_v30 = vadd.f32 %v1985_v44, %v1568_v43  ;;  %v2544_v38 = vsel %vm2418_vm5, %v2542_v19, %v2543_v29  ;;  %v9445_v35 = vmul.bf16 %v7074_v57, %v2926_v14  ;;  %v4807_v42 = vld [vmem:[#allocation2 + $0x150] sm:$0xee] }
 0x353   : > { %v2135_v15 = vadd.f32 %v1989_v18, %v1570_v11  ;;  %v3065_v31 = vunpack.c.h.bf16 %v9436_v54  ;;  %v2548_v41 = vsel %vm2418_vm5, %v2543_v29, %v2547_v46  ;;  %v3067_v16 = vunpack.c.h.bf16 %v9441_v55 }
 0x354   : > { %v2692_v0 = vadd.f32 %v2544_v38, %v2133_v30  ;;  %v9451_v1 = vmul.bf16 %v7076_v51, %v3484_v32  ;;  %v3069_v39 = vunpack.c.h.bf16 %v9445_v35  ;;  %v9458_v48 = vmul.bf16 %v7076_v51, %v9287_v26 }
 0x355   : > { %v2694_v49 = vadd.f32 %v2548_v41, %v2135_v15  ;;  %v3307_v50 = vrot.slane %v3065_v31, 1  ;;  %v3308_v62 = vrot.slane %v3067_v16, 1  ;;  %v9463_v23 = vmul.bf16 %v7076_v51, %v2926_v14 }
 0x356   : > { %v2899_v43 = vadd.f32 %v2835_v61, %v2692_v0  ;;  %v3623_v53 = vunpack.c.h.bf16 %v9451_v1  ;;  %v3312_v12 = vrot.slane %v3069_v39, 1  ;;  %v3625_v45 = vunpack.c.h.bf16 %v9458_v48 }
 0x357   : > { %v2901_v11 = vadd.f32 %v2837_v34, %v2694_v49  ;;  %v9469_v3 = vmul.bf16 %v7086_v58, %v9453_v2  ;;  %v3309_v6 = vsel %vm1859_vm4, %v3307_v50, %v3308_v62  ;;  %v3627_v13 = vunpack.c.h.bf16 %v9463_v23 }
 0x358   : > { %v3865_v40 = vrot.slane %v3623_v53, 2  ;;  %v9475_v36 = vmul.bf16 %v7086_v58, %v9460_v25  ;;  %v3313_v60 = vsel %vm1859_vm4, %v3308_v62, %v3312_v12  ;;  %v3457_v19 = vadd.f32 %v3309_v6, %v2899_v43 }
 0x359   : > { %v3866_v61 = vrot.slane %v3625_v45, 2  ;;  %v4158_v14 = vunpack.c.h.bf16 %v9469_v3  ;;  %v3459_v44 = vadd.f32 %v3313_v60, %v2901_v11  ;;  %v3870_v29 = vrot.slane %v3627_v13, 2  ;;  %v10388_v60 = vld [vmem:[#allocation12_spill] sm:$0xff] }
 0x35a   : > { %v4160_v34 = vunpack.c.h.bf16 %v9475_v36  ;;  %v9482_v32 = vmul.bf16 %v7091_v63, %v9453_v2  ;;  %v9487_v30 = vmul.bf16 %v7091_v63, %v9460_v25  ;;  %v9490_v46 = vmul.bf16 %v7091_v63, %v4249_v24 }
 0x35b   : > { %v3867_v18 = vsel %vm2418_vm5, %v3865_v40, %v3866_v61  ;;  %v9493_v15 = vmul.bf16 %v10310_v52, %v4807_v42  ;;  %v3871_v38 = vsel %vm2418_vm5, %v3866_v61, %v3870_v29  ;;  %v9499_v0 = vmul.bf16 %v10310_v52, %v9460_v25 }
 0x35c   : > { %v4015_v31 = vadd.f32 %v3867_v18, %v3457_v19  ;;  %v4388_v41 = vunpack.c.h.bf16 %v9482_v32  ;;  %v4017_v16 = vadd.f32 %v3871_v38, %v3459_v44  ;;  %v4390_v49 = vunpack.c.h.bf16 %v9487_v30 }
 0x35d   : > { %v4392_v39 = vunpack.c.h.bf16 %v9490_v46  ;;  %v9504_v50 = vmul.bf16 %v10310_v52, %v4249_v24  ;;  %v4957_v53 = vunpack.c.h.bf16 %v9493_v15  ;;  %v4959_v11 = vunpack.c.h.bf16 %v9499_v0 }
 0x35e   : > { %v4222_v43 = vadd.f32 %v4158_v14, %v4015_v31  ;;  %v4630_v62 = vrot.slane %v4388_v41, 1  ;;  %v4224_v12 = vadd.f32 %v4160_v34, %v4017_v16  ;;  %v4631_v45 = vrot.slane %v4390_v49, 1 }
 0x35f   : > { %v4635_v6 = vrot.slane %v4392_v39, 1  ;;  %v4961_v13 = vunpack.c.h.bf16 %v9504_v50  ;;  %v5199_v40 = vrot.slane %v4957_v53, 2  ;;  %v5200_v42 = vrot.slane %v4959_v11, 2 }
 0x360   : > { %v901_v19 = vmax.f32 %v10388_v60, 0.0  ;;  %v1567_v61 = vunpack.c.l.bf16 %v9382_v27  ;;  %v4632_v24 = vsel %vm1859_vm4, %v4630_v62, %v4631_v45  ;;  %v1569_v29 = vunpack.c.l.bf16 %v9386_v37 }
 0x361   : > { %v4636_v14 = vsel %vm1859_vm4, %v4631_v45, %v4635_v6  ;;  %v5204_v44 = vrot.slane %v4961_v13, 2  ;;  %v4780_v18 = vadd.f32 %v4632_v24, %v4222_v43  ;;  %v5201_v34 = vsel %vm2418_vm5, %v5199_v40, %v5200_v42 }
 0x362   : > { %v4782_v38 = vadd.f32 %v4636_v14, %v4224_v12  ;;  %v9515_v31 = vmin.f32 %v901_v19, 6.0  ;;  %v1739_v16 = vunpack.c.l.bf16 %v9393_v28  ;;  %v1741_v49 = vunpack.c.l.bf16 %v9397_v5 }
 0x363   : > { %v5205_v41 = vsel %vm2418_vm5, %v5200_v42, %v5204_v44  ;;  %v1743_v27 = vunpack.c.l.bf16 %v9403_v4  ;;  %v5349_v39 = vadd.f32 %v5201_v34, %v4780_v18  ;;  %v2298_v53 = vunpack.c.l.bf16 %v9406_v20 }
 0x364   : > { %v5351_v62 = vadd.f32 %v5205_v41, %v4782_v38  ;;  %v2300_v37 = vunpack.c.l.bf16 %v9412_v9  ;;  %v1980_v43 = vrot.slane %v1739_v16, 1  ;;  %v1981_v11 = vrot.slane %v1741_v49, 1 }
 0x365   : > { %v1986_v12 = vrot.slane %v1743_v27, 1  ;;  %v2302_v45 = vunpack.c.l.bf16 %v9418_v8  ;;  %v5413_v6 = vmax.f32 %v5349_v39, 0.0  ;;  %v2539_v40 = vrot.slane %v2298_v53, 2 }
 0x366   : > { %v5415_v13 = vmax.f32 %v5351_v62, 0.0  ;;  %v2540_v42 = vrot.slane %v2300_v37, 2  ;;  %v1982_v28 = vsel %vm1859_vm4, %v1980_v43, %v1981_v11  ;;  %v2834_v60 = vunpack.c.l.bf16 %v9423_v7 }
 0x367   : > { %v1987_v5 = vsel %vm1859_vm4, %v1981_v11, %v1986_v12  ;;  %v2545_v4 = vrot.slane %v2302_v45, 2  ;;  %v5477_v19 = vmin.f32 %v5413_v6, 6.0  ;;  %v2132_v24 = vadd.f32 %v1982_v28, %v1567_v61 }
 0x368   : > { %v5479_v20 = vmin.f32 %v5415_v13, 6.0  ;;  %v2134_v9 = vadd.f32 %v1987_v5, %v1569_v29  ;;  %v2541_v14 = vsel %vm2418_vm5, %v2539_v40, %v2540_v42  ;;  %v2836_v8 = vunpack.c.l.bf16 %v9428_v59 }
 0x369   : > { %v2546_v44 = vsel %vm2418_vm5, %v2540_v42, %v2545_v4  ;;  %v3064_v18 = vunpack.c.l.bf16 %v9436_v54  ;;  %v2691_v34 = vadd.f32 %v2541_v14, %v2132_v24  ;;  %v3066_v16 = vunpack.c.l.bf16 %v9441_v55 }
 0x36a   : > { %v5517_v38 = vpack.c.bf16 %v5479_v20, %v5477_v19  ;;  %v2693_v41 = vadd.f32 %v2546_v44, %v2134_v9  ;;  %v3068_v49 = vunpack.c.l.bf16 %v9445_v35  ;;  %v3622_v27 = vunpack.c.l.bf16 %v9451_v1 }
 0x36b   : > { %v3304_v7 = vrot.slane %v3064_v18, 1  ;;  %v3624_v61 = vunpack.c.l.bf16 %v9458_v48  ;;  %v2898_v29 = vadd.f32 %v2834_v60, %v2691_v34  ;;  %v3305_v62 = vrot.slane %v3066_v16, 1 }
 0x36c   : > { %6462 = vmatprep.mubr.msk.bf16.mxu1 %vm5620_vm6, %v5517_v38  ;;  %v2900_v39 = vadd.f32 %v2836_v8, %v2693_v41  ;;  %v3626_v59 = vunpack.c.l.bf16 %v9463_v23  ;;  %v3310_v54 = vrot.slane %v3068_v49, 1  ;;  %v3862_v53 = vrot.slane %v3622_v27, 2  ;;  %v2161_v38 = vld [vmem:[#allocation2 + $0x138] sm:$0xee] }
 0x36d   : > { %v3863_v37 = vrot.slane %v3624_v61, 2  ;;  %v4157_v43 = vunpack.c.l.bf16 %v9469_v3  ;;  %v3306_v55 = vsel %vm1859_vm4, %v3304_v7, %v3305_v62  ;;  %v4159_v11 = vunpack.c.l.bf16 %v9475_v36 }
 0x36e   : > { %v3868_v35 = vrot.slane %v3626_v59, 2  ;;  %v4387_v1 = vunpack.c.l.bf16 %v9482_v32  ;;  %v3311_v48 = vsel %vm1859_vm4, %v3305_v62, %v3310_v54  ;;  %v3456_v12 = vadd.f32 %v3306_v55, %v2898_v29 }
 0x36f   : > { %v3864_v45 = vsel %vm2418_vm5, %v3862_v53, %v3863_v37  ;;  %v4389_v6 = vunpack.c.l.bf16 %v9487_v30  ;;  %v3458_v23 = vadd.f32 %v3311_v48, %v2900_v39  ;;  %v4391_v40 = vunpack.c.l.bf16 %v9490_v46 }
 0x370   : > { %v3869_v13 = vsel %vm2418_vm5, %v3863_v37, %v3868_v35  ;;  %v4627_v3 = vrot.slane %v4387_v1, 1  ;;  %v4014_v42 = vadd.f32 %v3864_v45, %v3456_v12  ;;  %v4956_v5 = vunpack.c.l.bf16 %v9493_v15 }
 0x371   : > { %v4628_v28 = vrot.slane %v4389_v6, 1  ;;  %v4958_v36 = vunpack.c.l.bf16 %v9499_v0  ;;  %v4016_v32 = vadd.f32 %v3869_v13, %v3458_v23  ;;  %v4633_v4 = vrot.slane %v4391_v40, 1 }
 0x372   : > { %v4960_v60 = vunpack.c.l.bf16 %v9504_v50  ;;  %v902_v19 = vmax.f32 %v9151_v47, 0.0  ;;  %v4221_v20 = vadd.f32 %v4157_v43, %v4014_v42  ;;  %v5196_v24 = vrot.slane %v4956_v5, 2  ;;  %v1596_v50 = vld [vmem:[#allocation2 + $0x148] sm:$0x11] }
 0x373   : > { %v4629_v30 = vsel %vm1859_vm4, %v4627_v3, %v4628_v28  ;;  %v5197_v9 = vrot.slane %v4958_v36, 2  ;;  %v4223_v14 = vadd.f32 %v4159_v11, %v4016_v32  ;;  %v4634_v46 = vsel %vm1859_vm4, %v4628_v28, %v4633_v4  ;;  %v2927_v28 = vld [vmem:[#allocation2 + $0x160] sm:$0x11] }
 0x374   : > { %v5202_v44 = vrot.slane %v4960_v60, 2  ;;  %v1010_v8 = vmin.f32 %v902_v19, 6.0  ;;  %v4779_v18 = vadd.f32 %v4629_v30, %v4221_v20  ;;  %v9555_v0 = vmul.bf16 %v7050_v17, %v9281_v33  ;;  %v3485_v60 = vld [vmem:[#allocation2 + $0x150] sm:$0xee] }
 0x375   : > { %v5198_v15 = vsel %vm2418_vm5, %v5196_v24, %v5197_v9  ;;  %v9559_v47 = vmul.bf16 %v7050_v17, %v9287_v26  ;;  %v4781_v34 = vadd.f32 %v4634_v46, %v4223_v14  ;;  %v9565_v49 = vmul.bf16 %v7054_v21, %v9281_v33 }
 0x376   : > { %v5203_v41 = vsel %vm2418_vm5, %v5197_v9, %v5202_v44  ;;  %v6556_v16 = vpack.c.bf16 %v1010_v8, %v9515_v31  ;;  %v5348_v7 = vadd.f32 %v5198_v15, %v4779_v18  ;;  %v1572_v27 = vunpack.c.h.bf16 %v9555_v0 }
 0x377   : > { %v1574_v61 = vunpack.c.h.bf16 %v9559_v47  ;;  %v9571_v29 = vmul.bf16 %v7054_v21, %v9287_v26  ;;  %v5350_v39 = vadd.f32 %v5203_v41, %v4781_v34  ;;  %v9576_v62 = vmul.bf16 %v7054_v21, %v1596_v50 }
 0x378   : > { %1427 = vst.msk [vmem:[#allocation2 + $0x1a8] sm:$0xff] %vm7046_vm3, %v6556_v16  ;;  %v1746_v31 = vunpack.c.h.bf16 %v9565_v49  ;;  %v9580_v33 = vmul.bf16 %v7056_v22, %v2161_v38  ;;  %v5412_v59 = vmax.f32 %v5348_v7, 0.0  ;;  %v9585_v53 = vmul.bf16 %v7056_v22, %v9287_v26  ;;  %v9629_v38 = vld [vmem:[#allocation2 + $0x168] sm:$0xff] }
 0x379   : > { %v1748_v54 = vunpack.c.h.bf16 %v9571_v29  ;;  %v9588_v37 = vmul.bf16 %v7056_v22, %v1596_v50  ;;  %v5414_v10 = vmax.f32 %v5350_v39, 0.0  ;;  %v1750_v43 = vunpack.c.h.bf16 %v9576_v62 }
 0x37a   : > { %v1993_v55 = vrot.slane %v1746_v31, 1  ;;  %v2305_v35 = vunpack.c.h.bf16 %v9580_v33  ;;  %v5476_v11 = vmin.f32 %v5412_v59, 6.0  ;;  %v2307_v48 = vunpack.c.h.bf16 %v9585_v53 }
 0x37b   : > { %v1994_v1 = vrot.slane %v1748_v54, 1  ;;  %v2309_v12 = vunpack.c.h.bf16 %v9588_v37  ;;  %v5478_v45 = vmin.f32 %v5414_v10, 6.0  ;;  %v1998_v6 = vrot.slane %v1750_v43, 1  ;;  %v9639_v54 = vpop.f32.mrb[0].mxu1 }
 0x37c   : > { %v2552_v23 = vrot.slane %v2305_v35, 2  ;;  %v9596_v26 = vmul.bf16 %v7072_v56, %v9453_v2  ;;  %v2553_v40 = vrot.slane %v2307_v48, 2  ;;  %v9601_v42 = vmul.bf16 %v7072_v56, %v9460_v25 }
 0x37d   : > { %v1995_v13 = vsel %vm1859_vm4, %v1993_v55, %v1994_v1  ;;  %v2557_v3 = vrot.slane %v2309_v12, 2  ;;  %v5516_v5 = vpack.c.bf16 %v5478_v45, %v5476_v11  ;;  %v1999_v36 = vsel %vm1859_vm4, %v1994_v1, %v1998_v6  ;;  %v5705_v11 = vpop.f32.mrb[1].mxu1  ;;  %v4250_v6 = vld [vmem:[#allocation2 + $0x178] sm:$0x11] }
 0x37e   : > { %v2137_v32 = vadd.f32 %v1995_v13, %v1572_v27  ;;  %v2839_v4 = vunpack.c.h.bf16 %v9596_v26  ;;  %v2139_v19 = vadd.f32 %v1999_v36, %v1574_v61  ;;  %v2554_v20 = vsel %vm2418_vm5, %v2552_v23, %v2553_v40  ;;  %v9634_v27 = vld [vmem:[#allocation2 + $0x170] sm:$0xff]  ;;  %v9649_v23 = vpop.f32.mrb[2].mxu1 }
 0x37f   : > { %v2558_v30 = vsel %vm2418_vm5, %v2553_v40, %v2557_v3  ;;  %v2841_v24 = vunpack.c.h.bf16 %v9601_v42  ;;  %5798 = vmatmul.mubr.bf16.gmra.mrb[48].mxu1 %v5516_v5  ;;  %v9610_v14 = vmul.bf16 %v7074_v57, %v9453_v2  ;;  %v9614_v46 = vmul.bf16 %v7074_v57, %v9460_v25  ;;  %v4808_v5 = vld [vmem:[#allocation2 + $0x168] sm:$0xee]  ;;  %v5708_v36 = vpop.f32.mrb[3].mxu1 }
 0x380   : > { %v2696_v9 = vadd.f32 %v2554_v20, %v2137_v32  ;;  %v9617_v44 = vmul.bf16 %v7074_v57, %v2927_v28  ;;  %v2698_v8 = vadd.f32 %v2558_v30, %v2139_v19  ;;  %v9620_v18 = vmul.bf16 %v7076_v51, %v3485_v60  ;;  %v9660_v20 = vpop.f32.mrb[4].mxu1 }
 0x381   : > { %v9624_v15 = vmul.bf16 %v7076_v51, %v9460_v25  ;;  %v9627_v50 = vmul.bf16 %v7076_v51, %v2927_v28  ;;  %v3071_v41 = vunpack.c.h.bf16 %v9610_v14  ;;  %v3073_v16 = vunpack.c.h.bf16 %v9614_v46 }
 0x382   : > { %v2903_v34 = vadd.f32 %v2839_v4, %v2696_v9  ;;  %v3075_v7 = vunpack.c.h.bf16 %v9617_v44  ;;  %v2905_v61 = vadd.f32 %v2841_v24, %v2698_v8  ;;  %v3629_v39 = vunpack.c.h.bf16 %v9620_v18 }
 0x383   : > { %v3631_v31 = vunpack.c.h.bf16 %v9624_v15  ;;  %v3633_v59 = vunpack.c.h.bf16 %v9627_v50  ;;  %v3317_v10 = vrot.slane %v3071_v41, 1  ;;  %v3318_v43 = vrot.slane %v3073_v16, 1  ;;  %v5713_v41 = vpop.f32.mrb[5].mxu1 }
 0x384   : > { %v3322_v55 = vrot.slane %v3075_v7, 1  ;;  %v9643_v35 = vmul.bf16 %v7086_v58, %v9629_v38  ;;  %v3875_v1 = vrot.slane %v3629_v39, 2  ;;  %v9647_v45 = vmul.bf16 %v7086_v58, %v9634_v27  ;;  %v9678_v39 = vpop.f32.mrb[6].mxu1 }
 0x385   : > { %v3876_v48 = vrot.slane %v3631_v31, 2  ;;  %v3880_v12 = vrot.slane %v3633_v59, 2  ;;  %v3319_v13 = vsel %vm1859_vm4, %v3317_v10, %v3318_v43  ;;  %v9656_v28 = vmul.bf16 %v7091_v63, %v9629_v38 }
 0x386   : > { %v3323_v40 = vsel %vm1859_vm4, %v3318_v43, %v3322_v55  ;;  %v4162_v3 = vunpack.c.h.bf16 %v9643_v35  ;;  %v3461_v32 = vadd.f32 %v3319_v13, %v2903_v34  ;;  %v4164_v30 = vunpack.c.h.bf16 %v9647_v45  ;;  %v5716_v55 = vpop.f32.mrb[7].mxu1 }
 0x387   : > { %v3463_v4 = vadd.f32 %v3323_v40, %v2905_v61  ;;  %v3877_v60 = vsel %vm2418_vm5, %v3875_v1, %v3876_v48  ;;  %v3881_v19 = vsel %vm2418_vm5, %v3876_v48, %v3880_v12  ;;  %v9665_v24 = vmul.bf16 %v7091_v63, %v9634_v27  ;;  %v9687_v13 = vpop.f32.mrb[8].mxu1 }
 0x388   : > { %v9668_v9 = vmul.bf16 %v7091_v63, %v4250_v6  ;;  %v4394_v8 = vunpack.c.h.bf16 %v9656_v28  ;;  %v4019_v34 = vadd.f32 %v3877_v60, %v3461_v32  ;;  %v9672_v7 = vmul.bf16 %v10310_v52, %v4808_v5 }
 0x389   : > { %v4021_v16 = vadd.f32 %v3881_v19, %v3463_v4  ;;  %v9676_v61 = vmul.bf16 %v10310_v52, %v9634_v27  ;;  %v4396_v31 = vunpack.c.h.bf16 %v9665_v24  ;;  %v9683_v43 = vmul.bf16 %v10310_v52, %v4250_v6  ;;  %v5721_v4 = vpop.f32.mrb[9].mxu1 }
 0x38a   : > { %v4398_v59 = vunpack.c.h.bf16 %v9668_v9  ;;  %v4640_v10 = vrot.slane %v4394_v8, 1  ;;  %v4226_v11 = vadd.f32 %v4162_v3, %v4019_v34  ;;  %v4963_v48 = vunpack.c.h.bf16 %v9672_v7 }
 0x38b   : > { %v4228_v1 = vadd.f32 %v4164_v30, %v4021_v16  ;;  %v4965_v12 = vunpack.c.h.bf16 %v9676_v61  ;;  %v4641_v40 = vrot.slane %v4396_v31, 1  ;;  %v4967_v36 = vunpack.c.h.bf16 %v9683_v43  ;;  %v9693_v30 = vpop.f32.mrb[10].mxu1 }
 0x38c   : > { %v4645_v5 = vrot.slane %v4398_v59, 1  ;;  %v1571_v32 = vunpack.c.l.bf16 %v9555_v0  ;;  %v5209_v60 = vrot.slane %v4963_v48, 2  ;;  %v1573_v6 = vunpack.c.l.bf16 %v9559_v47  ;;  %10389 = vst [vmem:[#allocation13_spill] sm:$0xff] %v9693_v30  ;;  %v5724_v31 = vpop.f32.mrb[11].mxu1 }
 0x38d   : > { %v5210_v19 = vrot.slane %v4965_v12, 2  ;;  %v1745_v3 = vunpack.c.l.bf16 %v9565_v49  ;;  %v4642_v8 = vsel %vm1859_vm4, %v4640_v10, %v4641_v40  ;;  %v5214_v34 = vrot.slane %v4967_v36, 2  ;;  %v9700_v12 = vpop.f32.mrb[12].mxu1 }
 0x38e   : > { %v4646_v41 = vsel %vm1859_vm4, %v4641_v40, %v4645_v5  ;;  %v1747_v16 = vunpack.c.l.bf16 %v9571_v29  ;;  %v4784_v59 = vadd.f32 %v4642_v8, %v4226_v11  ;;  %v1749_v48 = vunpack.c.l.bf16 %v9576_v62  ;;  %10390 = vst [vmem:[#allocation14_spill] sm:$0xff] %v9700_v12  ;;  %v5729_v30 = vpop.f32.mrb[13].mxu1 }
 0x38f   : > { %v4786_v55 = vadd.f32 %v4646_v41, %v4228_v1  ;;  %v5211_v0 = vsel %vm2418_vm5, %v5209_v60, %v5210_v19  ;;  %v5215_v47 = vsel %vm2418_vm5, %v5210_v19, %v5214_v34  ;;  %v1990_v49 = vrot.slane %v1745_v3, 1  ;;  %v9705_v11 = vpop.f32.mrb[14].mxu1 }
 0x390   : > { %v1991_v4 = vrot.slane %v1747_v16, 1  ;;  %v2304_v10 = vunpack.c.l.bf16 %v9580_v33  ;;  %v5353_v40 = vadd.f32 %v5211_v0, %v4784_v59  ;;  %v1996_v36 = vrot.slane %v1749_v48, 1  ;;  %10391 = vst [vmem:[#allocation15_spill] sm:$0xff] %v9705_v11  ;;  %v5732_v19 = vpop.f32.mrb[15].mxu1 }
 0x391   : > { %v5355_v5 = vadd.f32 %v5215_v47, %v4786_v55  ;;  %v2306_v29 = vunpack.c.l.bf16 %v9585_v53  ;;  %v2308_v62 = vunpack.c.l.bf16 %v9588_v37  ;;  %v2838_v8 = vunpack.c.l.bf16 %v9596_v26  ;;  %v9711_v34 = vpop.f32.mrb[16].mxu1 }
 0x392   : > { %v1992_v1 = vsel %vm1859_vm4, %v1990_v49, %v1991_v4  ;;  %v2549_v60 = vrot.slane %v2304_v10, 2  ;;  %v5417_v3 = vmax.f32 %v5353_v40, 0.0  ;;  %v1997_v33 = vsel %vm1859_vm4, %v1991_v4, %v1996_v36  ;;  %10392 = vst [vmem:[#allocation16_spill] sm:$0xff] %v9711_v34  ;;  %v5737_v55 = vpop.f32.mrb[17].mxu1 }
 0x393   : > { %v5419_v41 = vmax.f32 %v5355_v5, 0.0  ;;  %v2136_v30 = vadd.f32 %v1992_v1, %v1571_v32  ;;  %v2138_v16 = vadd.f32 %v1997_v33, %v1573_v6  ;;  %v2550_v31 = vrot.slane %v2306_v29, 2  ;;  %v9716_v47 = vpop.f32.mrb[18].mxu1 }
 0x394   : > { %v2555_v53 = vrot.slane %v2308_v62, 2  ;;  %v2840_v59 = vunpack.c.l.bf16 %v9601_v42  ;;  %v5481_v0 = vmin.f32 %v5417_v3, 6.0  ;;  %v3070_v37 = vunpack.c.l.bf16 %v9610_v14  ;;  %10393 = vst [vmem:[#allocation6_spill] sm:$0xff] %v9716_v47  ;;  %v5740_v10 = vpop.f32.mrb[19].mxu1 }
 0x395   : > { %v5483_v48 = vmin.f32 %v5419_v41, 6.0  ;;  %v3072_v26 = vunpack.c.l.bf16 %v9614_v46  ;;  %v2551_v49 = vsel %vm2418_vm5, %v2549_v60, %v2550_v31  ;;  %v3074_v4 = vunpack.c.l.bf16 %v9617_v44  ;;  %v9722_v29 = vpop.f32.mrb[20].mxu1 }
 0x396   : > { %v2556_v32 = vsel %vm2418_vm5, %v2550_v31, %v2555_v53  ;;  %v3628_v6 = vunpack.c.l.bf16 %v9620_v18  ;;  %v2695_v42 = vadd.f32 %v2551_v49, %v2136_v30  ;;  %v3314_v36 = vrot.slane %v3070_v37, 1  ;;  %10394 = vst [vmem:[#allocation7_spill] sm:$0xff] %v9722_v29  ;;  %v5745_v60 = vpop.f32.mrb[21].mxu1 }
 0x397   : > { %v5519_v40 = vpack.c.bf16 %v5483_v48, %v5481_v0  ;;  %v2697_v5 = vadd.f32 %v2556_v32, %v2138_v16  ;;  %v3315_v14 = vrot.slane %v3072_v26, 1  ;;  %v3320_v1 = vrot.slane %v3074_v4, 1  ;;  %v9728_v41 = vpop.f32.mrb[22].mxu1 }
 0x398   : > { %v3630_v46 = vunpack.c.l.bf16 %v9624_v15  ;;  %v3632_v62 = vunpack.c.l.bf16 %v9627_v50  ;;  %v2902_v19 = vadd.f32 %v2838_v8, %v2695_v42  ;;  %v3872_v3 = vrot.slane %v3628_v6, 2  ;;  %10395 = vst [vmem:[#allocation17_spill] sm:$0xff] %v9728_v41  ;;  %v5748_v53 = vpop.f32.mrb[23].mxu1 }
 0x399   : > { %6463 = vmatprep.mubr.msk.bf16.mxu1 %vm5620_vm6, %v5519_v40  ;;  %v2904_v44 = vadd.f32 %v2840_v59, %v2697_v5  ;;  %v4161_v18 = vunpack.c.l.bf16 %v9643_v35  ;;  %v3316_v33 = vsel %vm1859_vm4, %v3314_v36, %v3315_v14  ;;  %v3321_v30 = vsel %vm1859_vm4, %v3315_v14, %v3320_v1  ;;  %v9734_v8 = vpop.f32.mrb[24].mxu1 }
 0x39a   : > { %v3873_v16 = vrot.slane %v3630_v46, 2  ;;  %v3878_v31 = vrot.slane %v3632_v62, 2  ;;  %v3460_v15 = vadd.f32 %v3316_v33, %v2902_v19  ;;  %v4163_v50 = vunpack.c.l.bf16 %v9647_v45  ;;  %10396 = vst [vmem:[#allocation18_spill] sm:$0xff] %v9734_v8  ;;  %v5753_v26 = vpop.f32.mrb[25].mxu1  ;;  %v1597_v19 = vld [vmem:[#allocation2 + $0x160] sm:$0x11] }
 0x39b   : > { %v3462_v55 = vadd.f32 %v3321_v30, %v2904_v44  ;;  %v4393_v0 = vunpack.c.l.bf16 %v9656_v28  ;;  %v4395_v48 = vunpack.c.l.bf16 %v9665_v24  ;;  %v4397_v37 = vunpack.c.l.bf16 %v9668_v9  ;;  %v9741_v10 = vpop.f32.mrb[26].mxu1  ;;  %v2162_v33 = vld [vmem:[#allocation2 + $0x150] sm:$0xee] }
 0x39c   : > { %v3874_v59 = vsel %vm2418_vm5, %v3872_v3, %v3873_v16  ;;  %v3879_v35 = vsel %vm2418_vm5, %v3873_v16, %v3878_v31  ;;  %v4962_v6 = vunpack.c.l.bf16 %v9672_v7  ;;  %10397 = vst [vmem:[#allocation8_spill] sm:$0xff] %v9741_v10  ;;  %v4964_v40 = vunpack.c.l.bf16 %v9676_v61  ;;  %v5756_v5 = vpop.f32.mrb[27].mxu1 }
 0x39d   : > { %v4018_v49 = vadd.f32 %v3874_v59, %v3460_v15  ;;  %v4020_v32 = vadd.f32 %v3879_v35, %v3462_v55  ;;  %v4637_v4 = vrot.slane %v4393_v0, 1  ;;  %v4638_v45 = vrot.slane %v4395_v48, 1  ;;  %v9749_v1 = vpop.f32.mrb[28].mxu1 }
 0x39e   : > { %v4643_v28 = vrot.slane %v4397_v37, 1  ;;  %v4966_v42 = vunpack.c.l.bf16 %v9683_v43  ;;  %v5206_v24 = vrot.slane %v4962_v6, 2  ;;  %v9747_v9 = vmul.bf16 %v7050_v17, %v9453_v2  ;;  %10398 = vst [vmem:[#allocation9_spill] sm:$0xff] %v9749_v1  ;;  %v5761_v61 = vpop.f32.mrb[29].mxu1 }
 0x39f   : > { %v4225_v36 = vadd.f32 %v4161_v18, %v4018_v49  ;;  %v4227_v14 = vadd.f32 %v4163_v50, %v4020_v32  ;;  %v4639_v7 = vsel %vm1859_vm4, %v4637_v4, %v4638_v45  ;;  %v5207_v62 = vrot.slane %v4964_v40, 2  ;;  %v9758_v30 = vpop.f32.mrb[30].mxu1 }
 0x3a0   : > { %v4644_v46 = vsel %vm1859_vm4, %v4638_v45, %v4643_v28  ;;  %v5212_v60 = vrot.slane %v4966_v42, 2  ;;  %v9755_v3 = vmul.bf16 %v7050_v17, %v9460_v25  ;;  %v1576_v18 = vunpack.c.h.bf16 %v9747_v9  ;;  %10399 = vst [vmem:[#allocation10_spill] sm:$0xff] %v9758_v30  ;;  %v5764_v55 = vpop.f32.mrb[31].mxu1 }
 0x3a1   : > { %v4783_v44 = vadd.f32 %v4639_v7, %v4225_v36  ;;  %v4785_v43 = vadd.f32 %v4644_v46, %v4227_v14  ;;  %v5208_v16 = vsel %vm2418_vm5, %v5206_v24, %v5207_v62  ;;  %v9764_v53 = vmul.bf16 %v7054_v21, %v9453_v2  ;;  %v9774_v48 = vpop.f32.mrb[32].mxu1  ;;  %v2928_v55 = vld [vmem:[#allocation2 + $0x178] sm:$0x11] }
 0x3a2   : > { %v5213_v31 = vsel %vm2418_vm5, %v5207_v62, %v5212_v60  ;;  %v9768_v15 = vmul.bf16 %v7054_v21, %v9460_v25  ;;  %v1578_v59 = vunpack.c.h.bf16 %v9755_v3  ;;  %v9772_v35 = vmul.bf16 %v7054_v21, %v1597_v19  ;;  %10400 = vst [vmem:[#allocation11_spill] sm:$0xff] %v9774_v48  ;;  %v5769_v32 = vpop.f32.mrb[33].mxu1 }
 0x3a3   : > { %v5352_v50 = vadd.f32 %v5208_v16, %v4783_v44  ;;  %v5354_v0 = vadd.f32 %v5213_v31, %v4785_v43  ;;  %v1752_v37 = vunpack.c.h.bf16 %v9764_v53  ;;  %v9779_v2 = vmul.bf16 %v7056_v22, %v2162_v33  ;;  %v9789_v40 = vpop.f32.mrb[34].mxu1 }
 0x3a4   : > { %v1754_v26 = vunpack.c.h.bf16 %v9768_v15  ;;  %v9783_v49 = vmul.bf16 %v7056_v22, %v9460_v25  ;;  %v1756_v45 = vunpack.c.h.bf16 %v9772_v35  ;;  %v9787_v28 = vmul.bf16 %v7056_v22, %v1597_v19  ;;  %10401 = vst [vmem:[#allocation12_spill] sm:$0xff] %v9789_v40  ;;  %v5772_v24 = vpop.f32.mrb[35].mxu1 }
 0x3a5   : > { %v5416_v4 = vmax.f32 %v5352_v50, 0.0  ;;  %v5418_v6 = vmax.f32 %v5354_v0, 0.0  ;;  %v2003_v42 = vrot.slane %v1752_v37, 1  ;;  %v2311_v36 = vunpack.c.h.bf16 %v9779_v2  ;;  %v3486_v50 = vld [vmem:[#allocation2 + $0x168] sm:$0xee] }
 0x3a6   : > { %v2004_v5 = vrot.slane %v1754_v26, 1  ;;  %v2313_v14 = vunpack.c.h.bf16 %v9783_v49  ;;  %v2008_v46 = vrot.slane %v1756_v45, 1  ;;  %v2315_v62 = vunpack.c.h.bf16 %v9787_v28 }
 0x3a7   : > { %v5480_v7 = vmin.f32 %v5416_v4, 6.0  ;;  %v5482_v25 = vmin.f32 %v5418_v6, 6.0  ;;  %v2562_v61 = vrot.slane %v2311_v36, 2  ;;  %v9797_v19 = vmul.bf16 %v7072_v56, %v9629_v38 }
 0x3a8   : > { %v2005_v60 = vsel %vm1859_vm4, %v2003_v42, %v2004_v5  ;;  %v2563_v44 = vrot.slane %v2313_v14, 2  ;;  %v2009_v33 = vsel %vm1859_vm4, %v2004_v5, %v2008_v46  ;;  %v2567_v31 = vrot.slane %v2315_v62, 2  ;;  %v9822_v14 = vld [vmem:[#allocation2 + $0x180] sm:$0xff]  ;;  %v9830_v62 = vld [vmem:[#allocation2 + $0x188] sm:$0xff] }
 0x3a9   : > { %v5518_v43 = vpack.c.bf16 %v5482_v25, %v5480_v7  ;;  %v2141_v16 = vadd.f32 %v2005_v60, %v1576_v18  ;;  %v2143_v0 = vadd.f32 %v2009_v33, %v1578_v59  ;;  %v9803_v26 = vmul.bf16 %v7072_v56, %v9634_v27 }
 0x3aa   : > { %v2564_v37 = vsel %vm2418_vm5, %v2562_v61, %v2563_v44  ;;  %v2843_v32 = vunpack.c.h.bf16 %v9797_v19  ;;  %v2568_v4 = vsel %vm2418_vm5, %v2563_v44, %v2567_v31  ;;  %v9809_v45 = vmul.bf16 %v7074_v57, %v9629_v38 }
 0x3ab   : > { %5806 = vmatmul.mubr.bf16.gmra.mrb[52].mxu1 %v5518_v43  ;;  %v2700_v6 = vadd.f32 %v2564_v37, %v2141_v16  ;;  %v9813_v18 = vmul.bf16 %v7074_v57, %v9634_v27  ;;  %v2702_v59 = vadd.f32 %v2568_v4, %v2143_v0  ;;  %v2845_v42 = vunpack.c.h.bf16 %v9803_v26 }
 0x3ac   : > { %v9817_v5 = vmul.bf16 %v7074_v57, %v2928_v55  ;;  %v9820_v36 = vmul.bf16 %v7076_v51, %v3486_v50  ;;  %v3077_v7 = vunpack.c.h.bf16 %v9809_v45  ;;  %v9828_v46 = vmul.bf16 %v7076_v51, %v9634_v27 }
 0x3ad   : > { %v2907_v24 = vadd.f32 %v2843_v32, %v2700_v6  ;;  %v3079_v25 = vunpack.c.h.bf16 %v9813_v18  ;;  %v2909_v60 = vadd.f32 %v2845_v42, %v2702_v59  ;;  %v9834_v44 = vmul.bf16 %v7076_v51, %v2928_v55  ;;  %v4251_v55 = vld [vmem:[#allocation2 + $0x190] sm:$0x11] }
 0x3ae   : > { %v3081_v61 = vunpack.c.h.bf16 %v9817_v5  ;;  %v3635_v43 = vunpack.c.h.bf16 %v9820_v36  ;;  %v3327_v33 = vrot.slane %v3077_v7, 1  ;;  %v3637_v31 = vunpack.c.h.bf16 %v9828_v46 }
 0x3af   : > { %v3328_v16 = vrot.slane %v3079_v25, 1  ;;  %v9840_v50 = vmul.bf16 %v7086_v58, %v9822_v14  ;;  %v3639_v37 = vunpack.c.h.bf16 %v9834_v44  ;;  %v9845_v4 = vmul.bf16 %v7086_v58, %v9830_v62  ;;  %v4809_v25 = vld [vmem:[#allocation2 + $0x180] sm:$0xee] }
 0x3b0   : > { %v3332_v0 = vrot.slane %v3081_v61, 1  ;;  %v3885_v32 = vrot.slane %v3635_v43, 2  ;;  %v3886_v59 = vrot.slane %v3637_v31, 2  ;;  %v9851_v7 = vmul.bf16 %v7091_v63, %v9822_v14 }
 0x3b1   : > { %v3329_v6 = vsel %vm1859_vm4, %v3327_v33, %v3328_v16  ;;  %v4166_v42 = vunpack.c.h.bf16 %v9840_v50  ;;  %v3890_v48 = vrot.slane %v3639_v37, 2  ;;  %v4168_v43 = vunpack.c.h.bf16 %v9845_v4 }
 0x3b2   : > { %v3333_v61 = vsel %vm1859_vm4, %v3328_v16, %v3332_v0  ;;  %v3465_v40 = vadd.f32 %v3329_v6, %v2907_v24  ;;  %v3887_v1 = vsel %vm2418_vm5, %v3885_v32, %v3886_v59  ;;  %v9858_v33 = vmul.bf16 %v7091_v63, %v9830_v62 }
 0x3b3   : > { %v3467_v30 = vadd.f32 %v3333_v61, %v2909_v60  ;;  %v9861_v31 = vmul.bf16 %v7091_v63, %v4251_v55  ;;  %v3891_v10 = vsel %vm2418_vm5, %v3886_v59, %v3890_v48  ;;  %v4400_v41 = vunpack.c.h.bf16 %v9851_v7 }
 0x3b4   : > { %v4023_v8 = vadd.f32 %v3887_v1, %v3465_v40  ;;  %v9866_v24 = vmul.bf16 %v10310_v52, %v4809_v25  ;;  %v4402_v60 = vunpack.c.h.bf16 %v9858_v33  ;;  %v9872_v37 = vmul.bf16 %v10310_v52, %v9830_v62 }
 0x3b5   : > { %v4025_v16 = vadd.f32 %v3891_v10, %v3467_v30  ;;  %v4404_v0 = vunpack.c.h.bf16 %v9861_v31  ;;  %v4650_v6 = vrot.slane %v4400_v41, 1  ;;  %v9875_v61 = vmul.bf16 %v10310_v52, %v4251_v55 }
 0x3b6   : > { %v4230_v32 = vadd.f32 %v4166_v42, %v4023_v8  ;;  %v4969_v1 = vunpack.c.h.bf16 %v9866_v24  ;;  %v4651_v40 = vrot.slane %v4402_v60, 1  ;;  %v4971_v10 = vunpack.c.h.bf16 %v9872_v37 }
 0x3b7   : > { %v4232_v48 = vadd.f32 %v4168_v43, %v4025_v16  ;;  %v4655_v59 = vrot.slane %v4404_v0, 1  ;;  %v4973_v30 = vunpack.c.h.bf16 %v9875_v61  ;;  %v1575_v29 = vunpack.c.l.bf16 %v9747_v9 }
 0x3b8   : > { %v5219_v25 = vrot.slane %v4969_v1, 2  ;;  %v1577_v47 = vunpack.c.l.bf16 %v9755_v3  ;;  %v4652_v8 = vsel %vm1859_vm4, %v4650_v6, %v4651_v40  ;;  %v5220_v55 = vrot.slane %v4971_v10, 2 }
 0x3b9   : > { %v4656_v41 = vsel %vm1859_vm4, %v4651_v40, %v4655_v59  ;;  %v1751_v42 = vunpack.c.l.bf16 %v9764_v53  ;;  %v4788_v34 = vadd.f32 %v4652_v8, %v4230_v32  ;;  %v5224_v16 = vrot.slane %v4973_v30, 2 }
 0x3ba   : > { %v4790_v43 = vadd.f32 %v4656_v41, %v4232_v48  ;;  %v1753_v60 = vunpack.c.l.bf16 %v9768_v15  ;;  %v5221_v0 = vsel %vm2418_vm5, %v5219_v25, %v5220_v55  ;;  %v1755_v1 = vunpack.c.l.bf16 %v9772_v35 }
 0x3bb   : > { %v2000_v11 = vrot.slane %v1751_v42, 1  ;;  %v2310_v9 = vunpack.c.l.bf16 %v9779_v2  ;;  %v5225_v3 = vsel %vm2418_vm5, %v5220_v55, %v5224_v16  ;;  %v5357_v6 = vadd.f32 %v5221_v0, %v4788_v34 }
 0x3bc   : > { %v2001_v12 = vrot.slane %v1753_v60, 1  ;;  %v2312_v40 = vunpack.c.l.bf16 %v9783_v49  ;;  %v5359_v59 = vadd.f32 %v5225_v3, %v4790_v43  ;;  %v2006_v53 = vrot.slane %v1755_v1, 1 }
 0x3bd   : > { %v2314_v32 = vunpack.c.l.bf16 %v9787_v28  ;;  %v2559_v48 = vrot.slane %v2310_v9, 2  ;;  %v5421_v10 = vmax.f32 %v5357_v6, 0.0  ;;  %v2842_v35 = vunpack.c.l.bf16 %v9797_v19 }
 0x3be   : > { %v2002_v15 = vsel %vm1859_vm4, %v2000_v11, %v2001_v12  ;;  %v2560_v30 = vrot.slane %v2312_v40, 2  ;;  %v5423_v25 = vmax.f32 %v5359_v59, 0.0  ;;  %v2007_v2 = vsel %vm1859_vm4, %v2001_v12, %v2006_v53 }
 0x3bf   : > { %v2140_v8 = vadd.f32 %v2002_v15, %v1575_v29  ;;  %v2565_v41 = vrot.slane %v2314_v32, 2  ;;  %v5485_v34 = vmin.f32 %v5421_v10, 6.0  ;;  %v2142_v55 = vadd.f32 %v2007_v2, %v1577_v47 }
 0x3c0   : > { %v2561_v49 = vsel %vm2418_vm5, %v2559_v48, %v2560_v30  ;;  %v2844_v42 = vunpack.c.l.bf16 %v9803_v26  ;;  %v5487_v43 = vmin.f32 %v5423_v25, 6.0  ;;  %v3076_v11 = vunpack.c.l.bf16 %v9809_v45 }
 0x3c1   : > { %v2566_v28 = vsel %vm2418_vm5, %v2560_v30, %v2565_v41  ;;  %v2699_v16 = vadd.f32 %v2561_v49, %v2140_v8  ;;  %v3078_v19 = vunpack.c.l.bf16 %v9813_v18  ;;  %v3080_v0 = vunpack.c.l.bf16 %v9817_v5 }
 0x3c2   : > { %v2701_v60 = vadd.f32 %v2566_v28, %v2142_v55  ;;  %v3634_v12 = vunpack.c.l.bf16 %v9820_v36  ;;  %v5521_v29 = vpack.c.bf16 %v5487_v43, %v5485_v34  ;;  %v3324_v47 = vrot.slane %v3076_v11, 1 }
 0x3c3   : > { %v2906_v1 = vadd.f32 %v2842_v35, %v2699_v16  ;;  %v3636_v9 = vunpack.c.l.bf16 %v9828_v46  ;;  %v3325_v26 = vrot.slane %v3078_v19, 1  ;;  %v3330_v6 = vrot.slane %v3080_v0, 1  ;;  %v1598_v19 = vld [vmem:[#allocation2 + $0x178] sm:$0x11] }
 0x3c4   : > { %v2908_v3 = vadd.f32 %v2844_v42, %v2701_v60  ;;  %v3638_v40 = vunpack.c.l.bf16 %v9834_v44  ;;  %v9904_v59 = vpop.f32.mrb[36].mxu1  ;;  %6464 = vmatprep.mubr.msk.bf16.mxu1 %vm5620_vm6, %v5521_v29  ;;  %v3882_v45 = vrot.slane %v3634_v12, 2  ;;  %v4165_v5 = vunpack.c.l.bf16 %v9840_v50  ;;  %v2163_v12 = vld [vmem:[#allocation2 + $0x168] sm:$0xee] }
 0x3c5   : > { %v3883_v18 = vrot.slane %v3636_v9, 2  ;;  %v4167_v36 = vunpack.c.l.bf16 %v9845_v4  ;;  %v5777_v53 = vpop.f32.mrb[37].mxu1  ;;  %v3326_v32 = vsel %vm1859_vm4, %v3324_v47, %v3325_v26  ;;  %v3331_v46 = vsel %vm1859_vm4, %v3325_v26, %v3330_v6 }
 0x3c6   : > { %v3888_v48 = vrot.slane %v3638_v40, 2  ;;  %v4399_v10 = vunpack.c.l.bf16 %v9851_v7  ;;  %v9912_v15 = vpop.f32.mrb[38].mxu1  ;;  %v3464_v44 = vadd.f32 %v3326_v32, %v2906_v1  ;;  %v3466_v30 = vadd.f32 %v3331_v46, %v2908_v3 }
 0x3c7   : > { %v3884_v35 = vsel %vm2418_vm5, %v3882_v45, %v3883_v18  ;;  %v4401_v25 = vunpack.c.l.bf16 %v9858_v33  ;;  %v5780_v2 = vpop.f32.mrb[39].mxu1  ;;  %v4403_v4 = vunpack.c.l.bf16 %v9861_v31  ;;  %v4968_v41 = vunpack.c.l.bf16 %v9866_v24 }
 0x3c8   : > { %v3889_v50 = vsel %vm2418_vm5, %v3883_v18, %v3888_v48  ;;  %v4647_v8 = vrot.slane %v4399_v10, 1  ;;  %v4022_v34 = vadd.f32 %v3884_v35, %v3464_v44  ;;  %v4970_v7 = vunpack.c.l.bf16 %v9872_v37 }
 0x3c9   : > { %v4024_v55 = vadd.f32 %v3889_v50, %v3466_v30  ;;  %v4648_v49 = vrot.slane %v4401_v25, 1  ;;  %v4653_v42 = vrot.slane %v4403_v4, 1  ;;  %v4972_v43 = vunpack.c.l.bf16 %v9875_v61 }
 0x3ca   : > { %v5216_v28 = vrot.slane %v4968_v41, 2  ;;  %v9923_v33 = vmul.bf16 %v7050_v17, %v9629_v38  ;;  %v4229_v16 = vadd.f32 %v4165_v5, %v4022_v34  ;;  %v5217_v60 = vrot.slane %v4970_v7, 2 }
 0x3cb   : > { %v4231_v11 = vadd.f32 %v4167_v36, %v4024_v55  ;;  %v4649_v31 = vsel %vm1859_vm4, %v4647_v8, %v4648_v49  ;;  %v4654_v24 = vsel %vm1859_vm4, %v4648_v49, %v4653_v42  ;;  %v5222_v0 = vrot.slane %v4972_v43, 2  ;;  %v2929_v43 = vld [vmem:[#allocation2 + $0x190] sm:$0x11] }
 0x3cc   : > { %v9929_v37 = vmul.bf16 %v7050_v17, %v9634_v27  ;;  %v1580_v61 = vunpack.c.h.bf16 %v9923_v33  ;;  %v4787_v29 = vadd.f32 %v4649_v31, %v4229_v16  ;;  %v5218_v47 = vsel %vm2418_vm5, %v5216_v28, %v5217_v60  ;;  %v3487_v28 = vld [vmem:[#allocation2 + $0x180] sm:$0xee] }
 0x3cd   : > { %v4789_v1 = vadd.f32 %v4654_v24, %v4231_v11  ;;  %v9935_v9 = vmul.bf16 %v7054_v21, %v9629_v38  ;;  %v5223_v3 = vsel %vm2418_vm5, %v5217_v60, %v5222_v0  ;;  %v9941_v6 = vmul.bf16 %v7054_v21, %v9634_v27 }
 0x3ce   : > { %v1582_v26 = vunpack.c.h.bf16 %v9929_v37  ;;  %v9944_v17 = vmul.bf16 %v7054_v21, %v1598_v19  ;;  %v5356_v40 = vadd.f32 %v5218_v47, %v4787_v29  ;;  %v9948_v5 = vmul.bf16 %v7056_v22, %v2163_v12  ;;  %v4062_v47 = vld [vmem:[#allocation2 + $0x1a0] sm:$0xff] }
 0x3cf   : > { %v5358_v45 = vadd.f32 %v5223_v3, %v4789_v1  ;;  %v1758_v18 = vunpack.c.h.bf16 %v9935_v9  ;;  %v1760_v38 = vunpack.c.h.bf16 %v9941_v6  ;;  %v9954_v53 = vmul.bf16 %v7056_v22, %v9634_v27  ;;  %v4061_v1 = vld [vmem:[#allocation2 + $0x198] sm:$0xff] }
 0x3d0   : > { %v1762_v36 = vunpack.c.h.bf16 %v9944_v17  ;;  %v9957_v32 = vmul.bf16 %v7056_v22, %v1598_v19  ;;  %v5420_v21 = vmax.f32 %v5356_v40, 0.0  ;;  %v2317_v10 = vunpack.c.h.bf16 %v9948_v5 }
 0x3d1   : > { %v5422_v46 = vmax.f32 %v5358_v45, 0.0  ;;  %v2013_v48 = vrot.slane %v1758_v18, 1  ;;  %v2014_v44 = vrot.slane %v1760_v38, 1  ;;  %v2319_v35 = vunpack.c.h.bf16 %v9954_v53 }
 0x3d2   : > { %v2018_v30 = vrot.slane %v1762_v36, 1  ;;  %v2321_v25 = vunpack.c.h.bf16 %v9957_v32  ;;  %v5484_v2 = vmin.f32 %v5420_v21, 6.0  ;;  %v2572_v4 = vrot.slane %v2317_v10, 2 }
 0x3d3   : > { %v5486_v50 = vmin.f32 %v5422_v46, 6.0  ;;  %v9964_v27 = vmul.bf16 %v7072_v56, %v9822_v14  ;;  %v2015_v22 = vsel %vm1859_vm4, %v2013_v48, %v2014_v44  ;;  %v2573_v41 = vrot.slane %v2319_v35, 2 }
 0x3d4   : > { %v2019_v8 = vsel %vm1859_vm4, %v2014_v44, %v2018_v30  ;;  %v2577_v34 = vrot.slane %v2321_v25, 2  ;;  %v2145_v49 = vadd.f32 %v2015_v22, %v1580_v61  ;;  %v9970_v42 = vmul.bf16 %v7072_v56, %v9830_v62  ;;  %v4252_v30 = vld [vmem:[#allocation2 + $0x1a8] sm:$0x11]  ;;  %v4810_v22 = vld [vmem:[#allocation2 + $0x198] sm:$0xee] }
 0x3d5   : > { %v5520_v55 = vpack.c.bf16 %v5486_v50, %v5484_v2  ;;  %v2147_v7 = vadd.f32 %v2019_v8, %v1582_v26  ;;  %v2574_v16 = vsel %vm2418_vm5, %v2572_v4, %v2573_v41  ;;  %v2847_v31 = vunpack.c.h.bf16 %v9964_v27 }
 0x3d6   : > { %v2578_v11 = vsel %vm2418_vm5, %v2573_v41, %v2577_v34  ;;  %v9977_v60 = vmul.bf16 %v7074_v57, %v9822_v14  ;;  %v2704_v19 = vadd.f32 %v2574_v16, %v2145_v49  ;;  %v2849_v0 = vunpack.c.h.bf16 %v9970_v42 }
 0x3d7   : > { %5814 = vmatmul.mubr.bf16.gmra.mrb[56].mxu1 %v5520_v55  ;;  %v2706_v24 = vadd.f32 %v2578_v11, %v2147_v7  ;;  %v9982_v56 = vmul.bf16 %v7074_v57, %v9830_v62  ;;  %v9985_v61 = vmul.bf16 %v7074_v57, %v2929_v43  ;;  %v9989_v29 = vmul.bf16 %v7076_v51, %v3487_v28 }
 0x3d8   : > { %v3083_v12 = vunpack.c.h.bf16 %v9977_v60  ;;  %v9993_v14 = vmul.bf16 %v7076_v51, %v9830_v62  ;;  %v2911_v3 = vadd.f32 %v2847_v31, %v2704_v19  ;;  %v9997_v45 = vmul.bf16 %v7076_v51, %v2929_v43 }
 0x3d9   : > { %v2913_v26 = vadd.f32 %v2849_v0, %v2706_v24  ;;  %v3085_v40 = vunpack.c.h.bf16 %v9982_v56  ;;  %v3087_v57 = vunpack.c.h.bf16 %v9985_v61  ;;  %v3641_v38 = vunpack.c.h.bf16 %v9989_v29 }
 0x3da   : > { %v3337_v18 = vrot.slane %v3083_v12, 1  ;;  %v3643_v36 = vunpack.c.h.bf16 %v9993_v14  ;;  %v3645_v62 = vunpack.c.h.bf16 %v9997_v45  ;;  %v10004_v46 = vmul.bf16 %v7086_v58, %v4061_v1 }
 0x3db   : > { %v3338_v21 = vrot.slane %v3085_v40, 1  ;;  %v10007_v48 = vmul.bf16 %v7086_v58, %v4062_v47  ;;  %v3342_v10 = vrot.slane %v3087_v57, 1  ;;  %v3895_v44 = vrot.slane %v3641_v38, 2 }
 0x3dc   : > { %v3896_v51 = vrot.slane %v3643_v36, 2  ;;  %v10010_v35 = vmul.bf16 %v7091_v63, %v4061_v1  ;;  %v3900_v2 = vrot.slane %v3645_v62, 2  ;;  %v4170_v50 = vunpack.c.h.bf16 %v10004_v46 }
 0x3dd   : > { %v3339_v25 = vsel %vm1859_vm4, %v3337_v18, %v3338_v21  ;;  %v4172_v4 = vunpack.c.h.bf16 %v10007_v48  ;;  %v3343_v8 = vsel %vm1859_vm4, %v3338_v21, %v3342_v10  ;;  %v10018_v34 = vmul.bf16 %v7091_v63, %v4062_v47 }
 0x3de   : > { %v3469_v41 = vadd.f32 %v3339_v25, %v2911_v3  ;;  %v3897_v58 = vsel %vm2418_vm5, %v3895_v44, %v3896_v51  ;;  %v3471_v55 = vadd.f32 %v3343_v8, %v2913_v26  ;;  %v3901_v49 = vsel %vm2418_vm5, %v3896_v51, %v3900_v2 }
 0x3df   : > { %v10022_v7 = vmul.bf16 %v7091_v63, %v4252_v30  ;;  %v4406_v43 = vunpack.c.h.bf16 %v10010_v35  ;;  %v4408_v16 = vunpack.c.h.bf16 %v10018_v34  ;;  %v10027_v11 = vmul.bf16 %v10310_v52, %v4810_v22 }
 0x3e0   : > { %v4027_v28 = vadd.f32 %v3897_v58, %v3469_v41  ;;  %v10030_v31 = vmul.bf16 %v10310_v52, %v4062_v47  ;;  %v4029_v19 = vadd.f32 %v3901_v49, %v3471_v55  ;;  %v10034_v12 = vmul.bf16 %v10310_v52, %v4252_v30 }
 0x3e1   : > { %v4410_v24 = vunpack.c.h.bf16 %v10022_v7  ;;  %v4660_v0 = vrot.slane %v4406_v43, 1  ;;  %v4661_v1 = vrot.slane %v4408_v16, 1  ;;  %v4975_v3 = vunpack.c.h.bf16 %v10027_v11 }
 0x3e2   : > { %v4234_v63 = vadd.f32 %v4170_v50, %v4027_v28  ;;  %v4977_v26 = vunpack.c.h.bf16 %v10030_v31  ;;  %v4236_v40 = vadd.f32 %v4172_v4, %v4029_v19  ;;  %v4979_v18 = vunpack.c.h.bf16 %v10034_v12 }
 0x3e3   : > { %v4665_v57 = vrot.slane %v4410_v24, 1  ;;  %v1579_v47 = vunpack.c.l.bf16 %v9923_v33  ;;  %v4662_v38 = vsel %vm1859_vm4, %v4660_v0, %v4661_v1  ;;  %v5229_v36 = vrot.slane %v4975_v3, 2 }
 0x3e4   : > { %v5230_v21 = vrot.slane %v4977_v26, 2  ;;  %v1581_v62 = vunpack.c.l.bf16 %v9929_v37  ;;  %v4792_v10 = vadd.f32 %v4662_v38, %v4234_v63  ;;  %v5234_v44 = vrot.slane %v4979_v18, 2 }
 0x3e5   : > { %v4666_v52 = vsel %vm1859_vm4, %v4661_v1, %v4665_v57  ;;  %v1757_v51 = vunpack.c.l.bf16 %v9935_v9  ;;  %v1759_v2 = vunpack.c.l.bf16 %v9941_v6  ;;  %v1761_v50 = vunpack.c.l.bf16 %v9944_v17 }
 0x3e6   : > { %v4794_v30 = vadd.f32 %v4666_v52, %v4236_v40  ;;  %v5231_v25 = vsel %vm2418_vm5, %v5229_v36, %v5230_v21  ;;  %v5235_v33 = vsel %vm2418_vm5, %v5230_v21, %v5234_v44  ;;  %v2316_v8 = vunpack.c.l.bf16 %v9948_v5 }
 0x3e7   : > { %v5361_v4 = vadd.f32 %v5231_v25, %v4792_v10  ;;  %v2010_v22 = vrot.slane %v1757_v51, 1  ;;  %v2011_v41 = vrot.slane %v1759_v2, 1  ;;  %v2016_v58 = vrot.slane %v1761_v50, 1 }
 0x3e8   : > { %v5363_v37 = vadd.f32 %v5235_v33, %v4794_v30  ;;  %v2318_v55 = vunpack.c.l.bf16 %v9954_v53  ;;  %v2320_v9 = vunpack.c.l.bf16 %v9957_v32  ;;  %v2569_v43 = vrot.slane %v2316_v8, 2 }
 0x3e9   : > { %v5425_v49 = vmax.f32 %v5361_v4, 0.0  ;;  %v2846_v28 = vunpack.c.l.bf16 %v9964_v27  ;;  %v2012_v17 = vsel %vm1859_vm4, %v2010_v22, %v2011_v41  ;;  %v2017_v16 = vsel %vm1859_vm4, %v2011_v41, %v2016_v58 }
 0x3ea   : > { %v5427_v6 = vmax.f32 %v5363_v37, 0.0  ;;  %v2570_v19 = vrot.slane %v2318_v55, 2  ;;  %v2144_v0 = vadd.f32 %v2012_v17, %v1579_v47  ;;  %v2146_v5 = vadd.f32 %v2017_v16, %v1581_v62 }
 0x3eb   : > { %v5489_v24 = vmin.f32 %v5425_v49, 6.0  ;;  %v2575_v63 = vrot.slane %v2320_v9, 2  ;;  %v2848_v53 = vunpack.c.l.bf16 %v9970_v42  ;;  %v3082_v32 = vunpack.c.l.bf16 %v9977_v60 }
 0x3ec   : > { %v5491_v1 = vmin.f32 %v5427_v6, 6.0  ;;  %v2571_v3 = vsel %vm2418_vm5, %v2569_v43, %v2570_v19  ;;  %v3084_v40 = vunpack.c.l.bf16 %v9982_v56  ;;  %v3086_v57 = vunpack.c.l.bf16 %v9985_v61 }
 0x3ed   : > { %v2576_v26 = vsel %vm2418_vm5, %v2570_v19, %v2575_v63  ;;  %v2703_v27 = vadd.f32 %v2571_v3, %v2144_v0  ;;  %v3334_v36 = vrot.slane %v3082_v32, 1  ;;  %v3640_v47 = vunpack.c.l.bf16 %v9989_v29 }
 0x3ee   : > { %v5523_v18 = vpack.c.bf16 %v5491_v1, %v5489_v24  ;;  %v2705_v38 = vadd.f32 %v2576_v26, %v2146_v5  ;;  %v3335_v62 = vrot.slane %v3084_v40, 1  ;;  %v3340_v52 = vrot.slane %v3086_v57, 1  ;;  %v6708_v5 = vld [vmem:[%s6892_s13 + $0x10] sm:$0xff]   ;;  %v6709_v40 = vld [vmem:[%s6892_s13 + $0x18] sm:$0xff]  }
 0x3ef   : > { %v2910_v21 = vadd.f32 %v2846_v28, %v2703_v27  ;;  %v3642_v10 = vunpack.c.l.bf16 %v9993_v14  ;;  %v3644_v60 = vunpack.c.l.bf16 %v9997_v45  ;;  %v3892_v44 = vrot.slane %v3640_v47, 2  ;;  %v6710_v47 = vld [vmem:[%s6892_s13 + $0x20] sm:$0xff]  }
 0x3f0   : > { %6465 = vmatprep.mubr.msk.bf16.mxu1 %vm5620_vm6, %v5523_v18  ;;  %v2912_v42 = vadd.f32 %v2848_v53, %v2705_v38  ;;  %v4169_v56 = vunpack.c.l.bf16 %v10004_v46  ;;  %v3336_v61 = vsel %vm1859_vm4, %v3334_v36, %v3335_v62  ;;  %v3341_v51 = vsel %vm1859_vm4, %v3335_v62, %v3340_v52 }
 0x3f1   : > { %v3893_v30 = vrot.slane %v3642_v10, 2  ;;  %v4171_v29 = vunpack.c.l.bf16 %v10007_v48  ;;  %v3468_v25 = vadd.f32 %v3336_v61, %v2910_v21  ;;  %v3898_v50 = vrot.slane %v3644_v60, 2 }
 0x3f2   : > { %v3470_v2 = vadd.f32 %v3341_v51, %v2912_v42  ;;  %v4405_v14 = vunpack.c.l.bf16 %v10010_v35  ;;  %v4407_v4 = vunpack.c.l.bf16 %v10018_v34  ;;  %v4409_v45 = vunpack.c.l.bf16 %v10022_v7 }
 0x3f3   : > { %v3894_v33 = vsel %vm2418_vm5, %v3892_v44, %v3893_v30  ;;  %v4974_v46 = vunpack.c.l.bf16 %v10027_v11  ;;  %v3899_v22 = vsel %vm2418_vm5, %v3893_v30, %v3898_v50  ;;  %v4976_v48 = vunpack.c.l.bf16 %v10030_v31  ;;  %v6707_v11 = vld [vmem:[%s6892_s13 + $0x8] sm:$0xff]  }
 0x3f4   : > { %v4026_v8 = vadd.f32 %v3894_v33, %v3468_v25  ;;  %v4657_v37 = vrot.slane %v4405_v14, 1  ;;  %v10075_v41 = vpop.f32.mrb[40].mxu1  ;;  %v4028_v58 = vadd.f32 %v3899_v22, %v3470_v2  ;;  %v4658_v55 = vrot.slane %v4407_v4, 1  ;;  %v6711_v2 = vld [vmem:[%s6892_s13 + $0x28] sm:$0xff]  }
 0x3f5   : > { %v4663_v35 = vrot.slane %v4409_v45, 1  ;;  %v4978_v49 = vunpack.c.l.bf16 %v10034_v12  ;;  %v5785_v34 = vpop.f32.mrb[41].mxu1  ;;  %v5226_v7 = vrot.slane %v4974_v46, 2  ;;  %v5227_v43 = vrot.slane %v4976_v48, 2 }
 0x3f6   : > { %v4233_v9 = vadd.f32 %v4169_v56, %v4026_v8  ;;  %v5830_v28 = vunpack.c.h.bf16 %v6707_v11  ;;  %v10079_v6 = vpop.f32.mrb[42].mxu1  ;;  %v4235_v17 = vadd.f32 %v4171_v29, %v4028_v58  ;;  %v4659_v31 = vsel %vm1859_vm4, %v4657_v37, %v4658_v55 }
 0x3f7   : > { %v4664_v16 = vsel %vm1859_vm4, %v4658_v55, %v4663_v35  ;;  %v5232_v19 = vrot.slane %v4978_v49, 2  ;;  %v5788_v24 = vpop.f32.mrb[43].mxu1  ;;  %v5228_v12 = vsel %vm2418_vm5, %v5226_v7, %v5227_v43  ;;  %v5831_v63 = vunpack.c.l.bf16 %v6708_v5  ;;  %v6713_v49 = vld [vmem:[%s6892_s13 + $0x38] sm:$0xff]  }
 0x3f8   : > { %v4791_v0 = vadd.f32 %v4659_v31, %v4233_v9  ;;  %v5926_v1 = vrot.slane %v5830_v28, 1  ;;  %v4793_v3 = vadd.f32 %v4664_v16, %v4235_v17  ;;  %v5832_v32 = vunpack.c.h.bf16 %v6708_v5  ;;  %v6714_v31 = vld [vmem:[%s6892_s13 + $0x40] sm:$0xff]   ;;  %v6715_v5 = vld [vmem:[%s6892_s13 + $0x48] sm:$0xff]  }
 0x3f9   : > { %v5233_v53 = vsel %vm2418_vm5, %v5227_v43, %v5232_v19  ;;  %v5927_v27 = vrot.slane %v5831_v63, 1  ;;  %v5833_v57 = vunpack.c.l.bf16 %v6709_v40  ;;  %v5834_v18 = vunpack.c.h.bf16 %v6709_v40  ;;  %v10404_v40 = vld [vmem:[#allocation15_spill] sm:$0xff] }
 0x3fa   : > { %v5360_v26 = vadd.f32 %v5228_v12, %v4791_v0  ;;  %v5362_v38 = vadd.f32 %v5233_v53, %v4793_v3  ;;  %v5929_v36 = vrot.slane %v5832_v32, 1  ;;  %v5835_v21 = vunpack.c.l.bf16 %v6710_v47 }
 0x3fb   : > { %v5836_v62 = vunpack.c.h.bf16 %v6710_v47  ;;  %v5928_v10 = vsel %vm1859_vm4, %v5926_v1, %v5927_v27  ;;  %v5931_v42 = vrot.slane %v5833_v57, 1  ;;  %v5932_v60 = vrot.slane %v5834_v18, 1  ;;  %v10402_v1 = vld [vmem:[#allocation13_spill] sm:$0xff] }
 0x3fc   : > { %v5424_v52 = vmax.f32 %v5360_v26, 0.0  ;;  %v5426_v44 = vmax.f32 %v5362_v38, 0.0  ;;  %v6038_v56 = vadd.f32 %v5928_v10, %v9639_v54  ;;  %v5930_v61 = vsel %vm1859_vm4, %v5927_v27, %v5929_v36  ;;  %v10403_v26 = vld [vmem:[#allocation14_spill] sm:$0xff] }
 0x3fd   : > { %v5934_v51 = vrot.slane %v5835_v21, 1  ;;  %v6039_v29 = vadd.f32 %v5930_v61, %v9649_v23  ;;  %v5933_v25 = vsel %vm1859_vm4, %v5931_v42, %v5932_v60  ;;  %v5837_v50 = vunpack.c.l.bf16 %v6711_v2  ;;  %v10406_v61 = vld [vmem:[#allocation6_spill] sm:$0xff] }
 0x3fe   : > { %v5488_v30 = vmin.f32 %v5424_v52, 6.0  ;;  %v5490_v14 = vmin.f32 %v5426_v44, 6.0  ;;  %v6557_v33 = vpack.c.bf16 %v6038_v56, %v6038_v56  ;;  %v6040_v4 = vadd.f32 %v5933_v25, %v9660_v20  ;;  %v6712_v20 = vld [vmem:[%s6892_s13 + $0x30] sm:$0xff]  }
 0x3ff   : > { %v5935_v45 = vsel %vm1859_vm4, %v5932_v60, %v5934_v51  ;;  %v6558_v46 = vpack.c.bf16 %v6039_v29, %v6039_v29  ;;  %v5936_v22 = vrot.slane %v5836_v62, 1  ;;  %v5937_v8 = vrot.slane %v5837_v50, 1  ;;  %v6716_v62 = vld [vmem:[%s6892_s13 + $0x50] sm:$0xff]   ;;  %v10405_v60 = vld [vmem:[#allocation16_spill] sm:$0xff]  ;;  %v6717_v50 = vld [vmem:[%s6892_s13 + $0x58] sm:$0xff]  }
 0x400   : > { %v6041_v54 = vadd.f32 %v5935_v45, %v9678_v39  ;;  %v5522_v37 = vpack.c.bf16 %v5490_v14, %v5488_v30  ;;  %6199 = vst.msk [vmem:[%s10100_s11] sm:$0xf] %vm6198_vm7, %v6557_v33  ;;  %v6559_v23 = vpack.c.bf16 %v6040_v4, %v6040_v4  ;;  %v5838_v48 = vunpack.c.h.bf16 %v6711_v2  ;;  %v6718_v4 = vld [vmem:[%s6892_s13 + $0x60] sm:$0xff]  }
 0x401   : > { %v5839_v58 = vunpack.c.l.bf16 %v6712_v20  ;;  %6200 = vst.msk [vmem:[%s10100_s11 + $0x4] sm:$0xf] %vm6198_vm7, %v6558_v46  ;;  %v5938_v39 = vsel %vm1859_vm4, %v5936_v22, %v5937_v8  ;;  %v5840_v35 = vunpack.c.h.bf16 %v6712_v20  ;;  %v5841_v34 = vunpack.c.l.bf16 %v6713_v49 }
 0x402   : > { %v6560_v55 = vpack.c.bf16 %v6041_v54, %v6041_v54  ;;  %5822 = vmatmul.mubr.bf16.gmra.mrb[60].mxu1 %v5522_v37  ;;  %6201 = vst.msk [vmem:[%s10100_s11 + $0x8] sm:$0xf] %vm6198_vm7, %v6559_v23  ;;  %v6042_v9 = vadd.f32 %v5938_v39, %v9687_v13  ;;  %v5939_v7 = vrot.slane %v5838_v48, 1  ;;  %v5842_v11 = vunpack.c.h.bf16 %v6713_v49  ;;  %v10407_v37 = vld [vmem:[#allocation7_spill] sm:$0xff]  ;;  %v10408_v48 = vld [vmem:[#allocation17_spill] sm:$0xff] }
 0x403   : > { %v5941_v43 = vrot.slane %v5839_v58, 1  ;;  %v5942_v28 = vrot.slane %v5840_v35, 1  ;;  %v5944_v17 = vrot.slane %v5841_v34, 1  ;;  %v5843_v16 = vunpack.c.l.bf16 %v6714_v31  ;;  %v6719_v49 = vld [vmem:[%s6892_s13 + $0x68] sm:$0xff]  }
 0x404   : > { %6202 = vst.msk [vmem:[%s10100_s11 + $0xc] sm:$0xf] %vm6198_vm7, %v6560_v55  ;;  %v5844_v19 = vunpack.c.h.bf16 %v6714_v31  ;;  %v6561_v24 = vpack.c.bf16 %v6042_v9, %v6042_v9  ;;  %v5940_v0 = vsel %vm1859_vm4, %v5937_v8, %v5939_v7  ;;  %v5946_v12 = vrot.slane %v5842_v11, 1 }
 0x405   : > { %v5845_v63 = vunpack.c.l.bf16 %v6715_v5  ;;  %v6043_v13 = vadd.f32 %v5940_v0, %v10402_v1  ;;  %v5943_v3 = vsel %vm1859_vm4, %v5941_v43, %v5942_v28  ;;  %v5945_v53 = vsel %vm1859_vm4, %v5942_v28, %v5944_v17  ;;  %v10409_v17 = vld [vmem:[#allocation18_spill] sm:$0xff] }
 0x406   : > { %v5947_v32 = vrot.slane %v5843_v16, 1  ;;  %6203 = vst.msk [vmem:[%s10100_s11 + $0x10] sm:$0xf] %vm6198_vm7, %v6561_v24  ;;  %v6044_v27 = vadd.f32 %v5943_v3, %v10403_v26  ;;  %v6045_v57 = vadd.f32 %v5945_v53, %v10404_v40  ;;  %v5949_v18 = vrot.slane %v5844_v19, 1  ;;  %v10410_v16 = vld [vmem:[#allocation8_spill] sm:$0xff]  ;;  %v10411_v40 = vld [vmem:[#allocation9_spill] sm:$0xff] }
 0x407   : > { %v5846_v38 = vunpack.c.h.bf16 %v6715_v5  ;;  %v6562_v36 = vpack.c.bf16 %v6043_v13, %v6043_v13  ;;  %v5951_v21 = vrot.slane %v5845_v63, 1  ;;  %v5847_v52 = vunpack.c.l.bf16 %v6716_v62  ;;  %v6721_v13 = vld [vmem:[%s6892_s13 + $0x78] sm:$0xff]  }
 0x408   : > { %v5948_v47 = vsel %vm1859_vm4, %v5946_v12, %v5947_v32  ;;  %v6563_v10 = vpack.c.bf16 %v6044_v27, %v6044_v27  ;;  %v6564_v42 = vpack.c.bf16 %v6045_v57, %v6045_v57  ;;  %v5950_v56 = vsel %vm1859_vm4, %v5947_v32, %v5949_v18  ;;  %v6720_v12 = vld [vmem:[%s6892_s13 + $0x70] sm:$0xff]  }
 0x409   : > { %v6046_v44 = vadd.f32 %v5948_v47, %v10405_v60  ;;  %6204 = vst.msk [vmem:[%s10100_s11 + $0x14] sm:$0xf] %vm6198_vm7, %v6562_v36  ;;  %v6047_v51 = vadd.f32 %v5950_v56, %v10406_v61  ;;  %v5952_v30 = vrot.slane %v5846_v38, 1  ;;  %v5954_v29 = vrot.slane %v5847_v52, 1  ;;  %v10412_v18 = vld [vmem:[#allocation10_spill] sm:$0xff]  ;;  %v6722_v52 = vld [vmem:[%s6892_s13 + $0x80] sm:$0xff]  }
 0x40a   : > { %v5848_v25 = vunpack.c.h.bf16 %v6716_v62  ;;  %6205 = vst.msk [vmem:[%s10100_s11 + $0x18] sm:$0xf] %vm6198_vm7, %v6563_v10  ;;  %6206 = vst.msk [vmem:[%s10100_s11 + $0x1c] sm:$0xf] %vm6198_vm7, %v6564_v42  ;;  %v5849_v14 = vunpack.c.l.bf16 %v6717_v50  ;;  %v5850_v33 = vunpack.c.h.bf16 %v6717_v50  ;;  %v5851_v45 = vunpack.c.l.bf16 %v6718_v4 }
 0x40b   : > { %v6565_v2 = vpack.c.bf16 %v6046_v44, %v6046_v44  ;;  %v6566_v46 = vpack.c.bf16 %v6047_v51, %v6047_v51  ;;  %v5953_v54 = vsel %vm1859_vm4, %v5951_v21, %v5952_v30  ;;  %v5955_v22 = vsel %vm1859_vm4, %v5952_v30, %v5954_v29  ;;  %v10413_v51 = vld [vmem:[#allocation11_spill] sm:$0xff]  ;;  %v10414_v29 = vld [vmem:[#allocation12_spill] sm:$0xff] }
 0x40c   : > { %v5956_v8 = vrot.slane %v5848_v25, 1  ;;  %v6048_v23 = vadd.f32 %v5953_v54, %v10407_v37  ;;  %v6049_v20 = vadd.f32 %v5955_v22, %v10408_v48  ;;  %v5957_v58 = vrot.slane %v5849_v14, 1  ;;  %v6723_v14 = vld [vmem:[%s6892_s13 + $0x88] sm:$0xff]  }
 0x40d   : > { %6207 = vst.msk [vmem:[%s10100_s11 + $0x20] sm:$0xf] %vm6198_vm7, %v6565_v2  ;;  %v5959_v55 = vrot.slane %v5850_v33, 1  ;;  %6208 = vst.msk [vmem:[%s10100_s11 + $0x24] sm:$0xf] %vm6198_vm7, %v6566_v46  ;;  %v5852_v39 = vunpack.c.h.bf16 %v6718_v4  ;;  %v5961_v35 = vrot.slane %v5851_v45, 1  ;;  %v5853_v34 = vunpack.c.l.bf16 %v6719_v49 }
 0x40e   : > { %v5854_v9 = vunpack.c.h.bf16 %v6719_v49  ;;  %v6567_v7 = vpack.c.bf16 %v6048_v23, %v6048_v23  ;;  %v6568_v43 = vpack.c.bf16 %v6049_v20, %v6049_v20  ;;  %v5958_v11 = vsel %vm1859_vm4, %v5956_v8, %v5957_v58  ;;  %v6724_v46 = vld [vmem:[%s6892_s13 + $0x90] sm:$0xff]  }
 0x40f   : > { %v5960_v28 = vsel %vm1859_vm4, %v5957_v58, %v5959_v55  ;;  %v6050_v31 = vadd.f32 %v5958_v11, %v10409_v17  ;;  %v5962_v24 = vrot.slane %v5852_v39, 1  ;;  %v5964_v0 = vrot.slane %v5853_v34, 1 }
 0x410   : > { %v6051_v19 = vadd.f32 %v5960_v28, %v10410_v16  ;;  %6209 = vst.msk [vmem:[%s10100_s11 + $0x28] sm:$0xf] %vm6198_vm7, %v6567_v7  ;;  %6210 = vst.msk [vmem:[%s10100_s11 + $0x2c] sm:$0xf] %vm6198_vm7, %v6568_v43  ;;  %v5855_v5 = vunpack.c.l.bf16 %v6720_v12  ;;  %v5966_v63 = vrot.slane %v5854_v9, 1  ;;  %v5856_v1 = vunpack.c.h.bf16 %v6720_v12 }
 0x411   : > { %v5857_v3 = vunpack.c.l.bf16 %v6721_v13  ;;  %v6569_v53 = vpack.c.bf16 %v6050_v31, %v6050_v31  ;;  %v5963_v26 = vsel %vm1859_vm4, %v5961_v35, %v5962_v24  ;;  %v5965_v27 = vsel %vm1859_vm4, %v5962_v24, %v5964_v0  ;;  %v6725_v35 = vld [vmem:[%s6892_s13 + $0x98] sm:$0xff]  }
 0x412   : > { %v6570_v32 = vpack.c.bf16 %v6051_v19, %v6051_v19  ;;  %v6052_v57 = vadd.f32 %v5963_v26, %v10411_v40  ;;  %v6053_v38 = vadd.f32 %v5965_v27, %v10412_v18  ;;  %v5967_v36 = vrot.slane %v5855_v5, 1 }
 0x413   : > { %v5969_v47 = vrot.slane %v5856_v1, 1  ;;  %6211 = vst.msk [vmem:[%s10100_s11 + $0x30] sm:$0xf] %vm6198_vm7, %v6569_v53  ;;  %v5858_v21 = vunpack.c.h.bf16 %v6721_v13  ;;  %v5971_v62 = vrot.slane %v5857_v3, 1  ;;  %v5859_v10 = vunpack.c.l.bf16 %v6722_v52  ;;  %v6726_v53 = vld [vmem:[%s6892_s13 + $0xa0] sm:$0xff]  }
 0x414   : > { %6212 = vst.msk [vmem:[%s10100_s11 + $0x34] sm:$0xf] %vm6198_vm7, %v6570_v32  ;;  %v5860_v42 = vunpack.c.h.bf16 %v6722_v52  ;;  %v6571_v60 = vpack.c.bf16 %v6052_v57, %v6052_v57  ;;  %v6572_v44 = vpack.c.bf16 %v6053_v38, %v6053_v38  ;;  %v5968_v56 = vsel %vm1859_vm4, %v5966_v63, %v5967_v36 }
 0x415   : > { %v5970_v61 = vsel %vm1859_vm4, %v5967_v36, %v5969_v47  ;;  %v6054_v30 = vadd.f32 %v5968_v56, %v10413_v51  ;;  %v5972_v2 = vrot.slane %v5858_v21, 1  ;;  %v5974_v50 = vrot.slane %v5859_v10, 1  ;;  %v6728_v51 = vld [vmem:[%s6892_s13 + $0xb0] sm:$0xff]  }
 0x416   : > { %v6055_v25 = vadd.f32 %v5970_v61, %v10414_v29  ;;  %6213 = vst.msk [vmem:[%s10100_s11 + $0x38] sm:$0xf] %vm6198_vm7, %v6571_v60  ;;  %6214 = vst.msk [vmem:[%s10100_s11 + $0x3c] sm:$0xf] %vm6198_vm7, %v6572_v44  ;;  %v5861_v33 = vunpack.c.l.bf16 %v6723_v14  ;;  %v5976_v4 = vrot.slane %v5860_v42, 1  ;;  %v5862_v45 = vunpack.c.h.bf16 %v6723_v14  ;;  %v6727_v44 = vld [vmem:[%s6892_s13 + $0xa8] sm:$0xff]  }
 0x417   : > { %v5863_v54 = vunpack.c.l.bf16 %v6724_v46  ;;  %v6573_v22 = vpack.c.bf16 %v6054_v30, %v6054_v30  ;;  %v5973_v37 = vsel %vm1859_vm4, %v5971_v62, %v5972_v2  ;;  %v5975_v23 = vsel %vm1859_vm4, %v5972_v2, %v5974_v50 }
 0x418   : > { %v6574_v8 = vpack.c.bf16 %v6055_v25, %v6055_v25  ;;  %v6056_v48 = vadd.f32 %v5973_v37, %v9904_v59  ;;  %v6057_v20 = vadd.f32 %v5975_v23, %v9912_v15  ;;  %v5977_v58 = vrot.slane %v5861_v33, 1 }
 0x419   : > { %v5979_v55 = vrot.slane %v5862_v45, 1  ;;  %6215 = vst.msk [vmem:[%s10100_s11 + $0x40] sm:$0xf] %vm6198_vm7, %v6573_v22  ;;  %v5864_v39 = vunpack.c.h.bf16 %v6724_v46  ;;  %v5865_v49 = vunpack.c.l.bf16 %v6725_v35  ;;  %v5981_v11 = vrot.slane %v5863_v54, 1 }
 0x41a   : > { %6216 = vst.msk [vmem:[%s10100_s11 + $0x44] sm:$0xf] %vm6198_vm7, %v6574_v8  ;;  %v6575_v34 = vpack.c.bf16 %v6056_v48, %v6056_v48  ;;  %v6576_v9 = vpack.c.bf16 %v6057_v20, %v6057_v20  ;;  %v5978_v7 = vsel %vm1859_vm4, %v5976_v4, %v5977_v58  ;;  %v5866_v3 = vunpack.c.h.bf16 %v6725_v35  ;;  %v6729_v48 = vld [vmem:[%s6892_s13 + $0xb8] sm:$0xff]  }
 0x41b   : > { %v5980_v59 = vsel %vm1859_vm4, %v5977_v58, %v5979_v55  ;;  %v6058_v15 = vadd.f32 %v5978_v7, %v10075_v41  ;;  %v5982_v28 = vrot.slane %v5864_v39, 1  ;;  %v5984_v16 = vrot.slane %v5865_v49, 1 }
 0x41c   : > { %v6059_v43 = vadd.f32 %v5980_v59, %v10079_v6  ;;  %6217 = vst.msk [vmem:[%s10100_s11 + $0x48] sm:$0xf] %vm6198_vm7, %v6575_v34  ;;  %6218 = vst.msk [vmem:[%s10100_s11 + $0x4c] sm:$0xf] %vm6198_vm7, %v6576_v9  ;;  %v5867_v32 = vunpack.c.l.bf16 %v6726_v53  ;;  %v5868_v26 = vunpack.c.h.bf16 %v6726_v53  ;;  %v5986_v27 = vrot.slane %v5866_v3, 1 }
 0x41d   : > { %v6577_v17 = vpack.c.bf16 %v6058_v15, %v6058_v15  ;;  %v5983_v41 = vsel %vm1859_vm4, %v5981_v11, %v5982_v28  ;;  %v5985_v6 = vsel %vm1859_vm4, %v5982_v28, %v5984_v16  ;;  %v5869_v56 = vunpack.c.l.bf16 %v6727_v44 }
 0x41e   : > { %v6578_v31 = vpack.c.bf16 %v6059_v43, %v6059_v43  ;;  %v5987_v40 = vrot.slane %v5867_v32, 1  ;;  %v5989_v57 = vrot.slane %v5868_v26, 1  ;;  %v5870_v61 = vunpack.c.h.bf16 %v6727_v44 }
 0x41f   : > { %6219 = vst.msk [vmem:[%s10100_s11 + $0x50] sm:$0xf] %vm6198_vm7, %v6577_v17  ;;  %v5871_v30 = vunpack.c.l.bf16 %v6728_v51  ;;  %v5991_v29 = vrot.slane %v5869_v56, 1  ;;  %v5872_v23 = vunpack.c.h.bf16 %v6728_v51  ;;  %v5873_v20 = vunpack.c.l.bf16 %v6729_v48 }
 0x420   : > { %6220 = vst.msk [vmem:[%s10100_s11 + $0x54] sm:$0xf] %vm6198_vm7, %v6578_v31  ;;  %v5988_v18 = vsel %vm1859_vm4, %v5986_v27, %v5987_v40  ;;  %v5990_v36 = vsel %vm1859_vm4, %v5987_v40, %v5989_v57  ;;  %v5992_v25 = vrot.slane %v5870_v61, 1  ;;  %v5874_v58 = vunpack.c.h.bf16 %v6729_v48  ;;  %v6730_v31 = vld [vmem:[%s6892_s13 + $0xc0] sm:$0xff]  }
 0x421   : > { %v5994_v2 = vrot.slane %v5871_v30, 1  ;;  %v5996_v55 = vrot.slane %v5872_v23, 1  ;;  %v5997_v39 = vrot.slane %v5873_v20, 1  ;;  %v5875_v16 = vunpack.c.l.bf16 %v6730_v31 }
 0x422   : > { %v5791_v19 = vpop.f32.mrb[44].mxu1  ;;  %v5993_v50 = vsel %vm1859_vm4, %v5991_v29, %v5992_v25  ;;  %v5999_v35 = vrot.slane %v5874_v58, 1 }
 0x423   : > { %v6060_v24 = vadd.f32 %v5983_v41, %v5791_v19  ;;  %v5793_v0 = vpop.f32.mrb[45].mxu1  ;;  %v5995_v33 = vsel %vm1859_vm4, %v5992_v25, %v5994_v2  ;;  %v5998_v49 = vsel %vm1859_vm4, %v5996_v55, %v5997_v39  ;;  %v5876_v41 = vunpack.c.h.bf16 %v6730_v31  ;;  %v6731_v19 = vld [vmem:[%s6892_s13 + $0xc8] sm:$0xff]  }
 0x424   : > { %v5794_v12 = vpop.f32.mrb[46].mxu1  ;;  %v6000_v9 = vsel %vm1859_vm4, %v5997_v39, %v5999_v35 }
 0x425   : > { %v6579_v5 = vpack.c.bf16 %v6060_v24, %v6060_v24  ;;  %v6061_v63 = vadd.f32 %v5985_v6, %v5794_v12  ;;  %v5796_v1 = vpop.f32.mrb[47].mxu1  ;;  %v5877_v6 = vunpack.c.l.bf16 %v6731_v19  ;;  %v6001_v24 = vrot.slane %v5875_v16, 1 }
 0x426   : > { %v6002_v0 = vrot.slane %v5876_v41, 1 }
 0x427   : > { %6221 = vst.msk [vmem:[%s10100_s11 + $0x58] sm:$0xf] %vm6198_vm7, %v6579_v5  ;;  %v6580_v13 = vpack.c.bf16 %v6061_v63, %v6061_v63  ;;  %v6004_v12 = vrot.slane %v5877_v6, 1 }
 0x428   : > { %v6003_v5 = vsel %vm1859_vm4, %v6001_v24, %v6002_v0 }
 0x429   : > { %6222 = vst.msk [vmem:[%s10100_s11 + $0x5c] sm:$0xf] %vm6198_vm7, %v6580_v13  ;;  %v6005_v1 = vsel %vm1859_vm4, %v6002_v0, %v6004_v12 }
 0x452   : > { %v5799_v38 = vpop.f32.mrb[48].mxu1 }
 0x453   : > { %v6062_v47 = vadd.f32 %v5988_v18, %v5799_v38  ;;  %v5801_v21 = vpop.f32.mrb[49].mxu1 }
 0x454   : > { %v5802_v62 = vpop.f32.mrb[50].mxu1 }
 0x455   : > { %v6581_v52 = vpack.c.bf16 %v6062_v47, %v6062_v47  ;;  %v6063_v10 = vadd.f32 %v5990_v36, %v5802_v62  ;;  %v5804_v42 = vpop.f32.mrb[51].mxu1 }
 0x457   : > { %6223 = vst.msk [vmem:[%s10100_s11 + $0x60] sm:$0xf] %vm6198_vm7, %v6581_v52  ;;  %v6582_v60 = vpack.c.bf16 %v6063_v10, %v6063_v10 }
 0x459   : > { %6224 = vst.msk [vmem:[%s10100_s11 + $0x64] sm:$0xf] %vm6198_vm7, %v6582_v60 }
 0x47e   : > { %v5807_v14 = vpop.f32.mrb[52].mxu1 }
 0x47f   : > { %v6064_v4 = vadd.f32 %v5993_v50, %v5807_v14  ;;  %v5809_v45 = vpop.f32.mrb[53].mxu1 }
 0x480   : > { %v5810_v46 = vpop.f32.mrb[54].mxu1 }
 0x481   : > { %v6583_v54 = vpack.c.bf16 %v6064_v4, %v6064_v4  ;;  %v6065_v22 = vadd.f32 %v5995_v33, %v5810_v46  ;;  %v5812_v8 = vpop.f32.mrb[55].mxu1 }
 0x483   : > { %6225 = vst.msk [vmem:[%s10100_s11 + $0x68] sm:$0xf] %vm6198_vm7, %v6583_v54  ;;  %v6584_v37 = vpack.c.bf16 %v6065_v22, %v6065_v22 }
 0x485   : > { %6226 = vst.msk [vmem:[%s10100_s11 + $0x6c] sm:$0xf] %vm6198_vm7, %v6584_v37 }
 0x4aa   : > { %v5815_v34 = vpop.f32.mrb[56].mxu1 }
 0x4ab   : > { %v6066_v7 = vadd.f32 %v5998_v49, %v5815_v34  ;;  %v5817_v59 = vpop.f32.mrb[57].mxu1 }
 0x4ac   : > { %v5818_v15 = vpop.f32.mrb[58].mxu1 }
 0x4ad   : > { %v6585_v43 = vpack.c.bf16 %v6066_v7, %v6066_v7  ;;  %v6067_v11 = vadd.f32 %v6000_v9, %v5818_v15  ;;  %v5820_v28 = vpop.f32.mrb[59].mxu1 }
 0x4af   : > { %6227 = vst.msk [vmem:[%s10100_s11 + $0x70] sm:$0xf] %vm6198_vm7, %v6585_v43  ;;  %v6586_v17 = vpack.c.bf16 %v6067_v11, %v6067_v11 }
 0x4b1   : > { %6228 = vst.msk [vmem:[%s10100_s11 + $0x74] sm:$0xf] %vm6198_vm7, %v6586_v17 }
 0x4d5   : > { %v5823_v63 = vpop.f32.mrb[60].mxu1 }
 0x4d6   : > { %v6068_v13 = vadd.f32 %v6003_v5, %v5823_v63  ;;  %v5825_v3 = vpop.f32.mrb[61].mxu1 }
 0x4d7   : > { %v5826_v53 = vpop.f32.mrb[62].mxu1 }
 0x4d8   : > { %v6587_v32 = vpack.c.bf16 %v6068_v13, %v6068_v13  ;;  %v6069_v26 = vadd.f32 %v6005_v1, %v5826_v53  ;;  %v5828_v27 = vpop.f32.mrb[63].mxu1 }
 0x4da   : > { %6229 = vst.msk [vmem:[%s10100_s11 + $0x78] sm:$0xf] %vm6198_vm7, %v6587_v32  ;;  %v6588_v40 = vpack.c.bf16 %v6069_v26, %v6069_v26 }
 0x4dc   : > { %6230 = vst.msk [vmem:[%s10100_s11 + $0x7c] sm:$0xf] %vm6198_vm7, %v6588_v40 }
 0x4dd   : > { %6745 = shalt.err (!%p6742_p3)
}
 0x4de   : > { %s6746_s30 = scalar_lea.hbm %s10233_s22, 2048  ;;  %s6750_s7 = scalar_lea.hbm %s10288_s4, 4096 }
 0x4df   : > { %p6747_p4 = scmp.ne.s32.totalorder %s10233_s22, %s6746_s30  ;;  %p6751_p9 = scmp.lt.u32.totalorder %s10233_s22, %s10288_s4 }
 0x4e0   : > { %p6752_p10 = scmp.lt.u32.totalorder %s6750_s7, %s6746_s30  ;;  %p6754_p12 = scmp.lt.u32.totalorder %s6746_s30, %s10233_s22 }
 0x4e1   : > { %p6748_p7 = pnand %p6747_p4, %p6863_p5 }
 0x4e2   : > { %p6753_p11 = por %p6752_p10, %p6751_p9 }
 0x4e3   : > { %p6749_p8 = pneg %p6748_p7 }
 0x4e4   : > { %p6755_p13 = por %p6754_p12, %p6753_p11 }
 0x4e6   : > { %p6756_p0 = pnand %p6755_p13, %p6749_p8 }
 0x4e8   : > { %6759 = shalt.err (!%p6756_p0)
}
 0x4e9   : > { %s6798_s10 = smov 64   ;;  %s6799_s11 = smov 4  }
 0x4ea   : > { %6591 = dma.vmem_to_hbm [thread:$0]  (%p6863_p5), %s10235_s14, 2048, %s10233_s22, %s10243_s19, %s6798_s10, %s6798_s10, %s6799_s11  }
 0x4eb PF: > { %p6597_p1 = scmp.ge.s32.totalorder %s6794_s18, 2  ;;  %s6260_s12 = sand.u32 1, %s6782_s15  }
 0x4ec   : > { %s6261_s13 = scalar_lea.sflag [#allocation4], %s6260_s12 }
 0x4ed   : > { %p6594_p2 = pnand %p6597_p1, %p6867_p6 }
 0x4ef   : > { %6777 = dma.done.wait (!%p6594_p2), %s6261_s13, 2048  }
 0x4f0   : > { %6779 = vsyncadd (!%p6594_p2), %s6261_s13, 4294965248  ;;  %p14_p3 = scmp.ge.s32.totalorder %s6850_s21, 4   ;;  %s10415_s15 = smov %s6786_s16 }
 0x4f1   : > { %s10416_s16 = smov %s6790_s17  ;;  %s10417_s17 = smov %s6861_s24 }
 0x4f2   : > { %s10418_s18 = smov %s6850_s21  ;;  %16 = sbr.rel (!%p14_p3) target bundleno = 3 (0x3), region = 73 }
 0x4f9   :  { %6266 = vsyncpa [#allocation4], 1 }
 0x4fa   :  { %6268 = vsyncpa [#allocation4 + $0x1], 1 }

</bundles_post_ra>
